<compile_context>
chip_gen: v7x
topology: tpu7x:2x2x1
jax: 0.10.0
libtpu: 0.0.40
codegen_flags: <defaults>
</compile_context>

<pallas_src>
import functools

import jax
import jax.numpy as jnp
from jax.experimental import pallas as pl
from jax.experimental.pallas import tpu as pltpu

BN_EPS = 1e-5
_MIN_NOUT = 8   # pad tiny C_out (final 1-channel layer) up to 8 output lanes


# ----------------------------- Pallas kernel -------------------------------

def _conv_bn_relu_kernel(x0_ref, x1_ref, x2_ref, w_ref, b_ref, o_ref, *, H, W, C):
    """One (b, d) output slice of a 3x3x3 'same' conv + folded BN + ReLU.

    x*_ref : (H+2, W+2, C)  bf16  padded input slices at depth d, d+1, d+2
    w_ref  : (3, 9*C, Np)   bf16  BN-folded weights, grouped per depth tap
    b_ref  : (1, Np)        f32   BN shift
    o_ref  : (H*W, Np)            output (bf16 for hidden layers, f32 last)
    """
    HW = H * W
    acc = jnp.zeros((HW, w_ref.shape[2]), jnp.float32)
    slabs = (x0_ref, x1_ref, x2_ref)
    for kd in range(3):                                    # static unroll (3)
        s = slabs[kd][...]                                 # (H+2, W+2, C) bf16
        taps = []
        for kh in range(3):
            for kw in range(3):
                taps.append(s[kh:kh + H, kw:kw + W, :].reshape(HW, C))
        patch = jnp.concatenate(taps, axis=-1)             # (HW, 9*C) bf16
        acc = acc + jnp.dot(patch, w_ref[kd],
                            preferred_element_type=jnp.float32)
    o_ref[...] = jnp.maximum(acc + b_ref[...], 0.0).astype(o_ref.dtype)


# ------------------------------ layer wrapper --------------------------------

def conv_bn_relu_3d(x, params, out_dtype=jnp.bfloat16):
    """One ConvBnReLU3D layer, channels-last.

    x : (B, D, H, W, C_in) bf16  ->  (B, D, H, W, C_out) out_dtype
    Best layout when W is a multiple of 16 (bf16 sublane tile).
    """
    w, gamma, beta, mean, var = params          # w: (C_out, C_in, 3, 3, 3)
    B, D, H, W, C = x.shape
    C_out = w.shape[0]
    Np = max(C_out, _MIN_NOUT)

    # Fold BN (inference form):  y = relu(patch @ (W*scale) + shift)
    scale = gamma / jnp.sqrt(var + BN_EPS)
    shift = beta - mean * scale

    # (C_out, C_in, kd, kh, kw) -> (kd, kh, kw, C_in, C_out) -> (3, 9*C, C_out)
    # The (kh, kw, c_in) flattening matches the tap concatenation in-kernel.
    w_mat = jnp.transpose(w, (2, 3, 4, 1, 0)).reshape(3, 9 * C, C_out)
    w_folded = (w_mat * scale[None, None, :]).astype(jnp.bfloat16)
    bias = shift.reshape(1, C_out).astype(jnp.float32)
    if Np != C_out:
        w_folded = jnp.pad(w_folded, ((0, 0), (0, 0), (0, Np - C_out)))
        bias = jnp.pad(bias, ((0, 0), (0, Np - C_out)))

    # Zero 'same'-padding once per layer (~1.2x one activation pass).
    xp = jnp.pad(x.astype(jnp.bfloat16),
                 ((0, 0), (1, 1), (1, 1), (1, 1), (0, 0)))

    kernel = functools.partial(_conv_bn_relu_kernel, H=H, W=W, C=C)
    out_isize = jnp.dtype(out_dtype).itemsize
    cost = pl.CostEstimate(
        flops=2 * B * D * H * W * 27 * C * Np,
        transcendentals=0,
        bytes_accessed=(3 * B * D * (H + 2) * (W + 2) * C * 2     # 3x halo reads (bf16)
                        + w_folded.size * 2 + bias.size * 4
                        + B * D * H * W * Np * out_isize),
    )

    out = pl.pallas_call(
        kernel,
        out_shape=jax.ShapeDtypeStruct((B, D, H * W, Np), out_dtype),
        grid_spec=pltpu.PrefetchScalarGridSpec(
            num_scalar_prefetch=0,
            grid=(B, D),
            in_specs=[
                pl.BlockSpec((None, None, H + 2, W + 2, C),
                             lambda b, d: (b, d, 0, 0, 0)),
                pl.BlockSpec((None, None, H + 2, W + 2, C),
                             lambda b, d: (b, d + 1, 0, 0, 0)),
                pl.BlockSpec((None, None, H + 2, W + 2, C),
                             lambda b, d: (b, d + 2, 0, 0, 0)),
                pl.BlockSpec((3, 9 * C, Np), lambda b, d: (0, 0, 0)),
                pl.BlockSpec((1, Np), lambda b, d: (0, 0)),
            ],
            out_specs=pl.BlockSpec((None, None, H * W, Np),
                                   lambda b, d: (b, d, 0, 0)),
        ),
        compiler_params=pltpu.CompilerParams(
            dimension_semantics=("parallel", "parallel")),
        cost_estimate=cost,
    )(xp, xp, xp, w_folded, bias)

    out = out.reshape(B, D, H, W, Np)
    if Np != C_out:
        out = out[..., :C_out]
    return out


# ------------------------------- module --------------------------------------

@jax.jit
def attnet3d_channel(x, params):
    """x: (B, 32, D, H, W) f32 NCDHW  ->  (B, 1, D, H, W) f32."""
    x = jnp.transpose(x, (0, 2, 3, 4, 1)).astype(jnp.bfloat16)   # one boundary transpose
    x = conv_bn_relu_3d(x, params[0], out_dtype=jnp.bfloat16)    # 32 -> 32
    x = conv_bn_relu_3d(x, params[1], out_dtype=jnp.bfloat16)    # 32 -> 32
    att = conv_bn_relu_3d(x, params[2], out_dtype=jnp.float32)   # 32 -> 1
    return jnp.transpose(att, (0, 4, 1, 2, 3))                   # back to NCDHW


# --------------------------- parameter init ----------------------------------

def _init_layer(key, c_in, c_out):
    kw, kg, kb, km, kv = jax.random.split(key, 5)
    w = 0.05 * jax.random.normal(kw, (c_out, c_in, 3, 3, 3), jnp.float32)
    gamma = 1.0 + 0.1 * jax.random.normal(kg, (c_out,), jnp.float32)
    beta = 0.1 * jax.random.normal(kb, (c_out,), jnp.float32)
    mean = 0.1 * jax.random.normal(km, (c_out,), jnp.float32)
    var = 1.0 + 0.1 * jax.random.uniform(kv, (c_out,), jnp.float32)
    return (w, gamma, beta, mean, var)


def init_params(key):
    k0, k1, k2 = jax.random.split(key, 3)
    return (
        _init_layer(k0, 32, 32),
        _init_layer(k1, 32, 32),
        _init_layer(k2, 32, 1),
    )


# --------------------------- pure-JAX reference ------------------------------
# Same numerics as the kernel path: bf16 activations/folded weights, f32
# accumulation, f32 BN shift + ReLU.  (TODO(synk): training-mode BatchNorm
# running-stat updates are not modeled; inference-form BN folding only.)

def _ref_layer(x, params, out_dtype):
    w, gamma, beta, mean, var = params
    scale = gamma / jnp.sqrt(var + BN_EPS)
    shift = beta - mean * scale
    w_folded = (w * scale[:, None, None, None, None]).astype(jnp.bfloat16)
    y = jax.lax.conv_general_dilated(
        x, w_folded, window_strides=(1, 1, 1),
        padding=((1, 1), (1, 1), (1, 1)),
        dimension_numbers=("NDHWC", "OIDHW", "NDHWC"),
        preferred_element_type=jnp.float32)
    y = y + shift[None, None, None, None, :]
    return jnp.maximum(y, 0.0).astype(out_dtype)


@jax.jit
def attnet3d_channel_ref(x, params):
    x = jnp.transpose(x, (0, 2, 3, 4, 1)).astype(jnp.bfloat16)
    x = _ref_layer(x, params[0], jnp.bfloat16)
    x = _ref_layer(x, params[1], jnp.bfloat16)
    y = _ref_layer(x, params[2], jnp.float32)
    return jnp.transpose(y, (0, 4, 1, 2, 3))


# --------------------------------- main ---------------------------------------

if __name__ == "__main__":
    key = jax.random.PRNGKey(0)
    kx, kp = jax.random.split(key)

    # Small 3D cost volume: [B, C=32, D, H, W]  (W multiple of 16 for bf16 tiling)
    B, C, D, H, W = 2, 32, 4, 8, 16
    x = jax.random.normal(kx, (B, C, D, H, W), jnp.float32)
    params = init_params(kp)

    att = jax.block_until_ready(attnet3d_channel(x, params))
    assert att.shape == (B, 1, D, H, W), att.shape

    ref = jax.block_until_ready(attnet3d_channel_ref(x, params))
    max_err = float(jnp.max(jnp.abs(att - ref)))
    assert jnp.allclose(att, ref, atol=1e-2, rtol=1e-2), max_err

    print("KERNEL_OK")
</pallas_src>

<mosaic_0001>
module attributes {stable_mosaic.version = 11 : i64} {
  func.func @_conv_bn_relu_kernel(%arg0: i32, %arg1: i32, %arg2: memref<1x1x10x18x32xbf16, #tpu.memory_space<vmem>>, %arg3: memref<1x1x10x18x32xbf16, #tpu.memory_space<vmem>>, %arg4: memref<1x1x10x18x32xbf16, #tpu.memory_space<vmem>>, %arg5: memref<3x288x32xbf16, #tpu.memory_space<vmem>>, %arg6: memref<1x32xf32, #tpu.memory_space<vmem>>, %arg7: memref<1x1x128x32xbf16, #tpu.memory_space<vmem>>) attributes {dimension_semantics = [#tpu.dimension_semantics<parallel>, #tpu.dimension_semantics<parallel>], iteration_bounds = array<i64: 2, 4>, scalar_prefetch = 0 : i64, scratch_operands = 0 : i64, tpu.core_type = #tpu.core_type<tc>, window_params = [{transform_indices = @transform_0, window_bounds = array<i64: 1, 1, 10, 18, 32>}, {transform_indices = @transform_1, window_bounds = array<i64: 1, 1, 10, 18, 32>}, {transform_indices = @transform_2, window_bounds = array<i64: 1, 1, 10, 18, 32>}, {pipeline_mode = #tpu.pipeline_mode<synchronous>, transform_indices = @transform_3, window_bounds = array<i64: 3, 288, 32>}, {pipeline_mode = #tpu.pipeline_mode<synchronous>, transform_indices = @transform_4, window_bounds = array<i64: 1, 32>}, {transform_indices = @transform_5, window_bounds = array<i64: 1, 1, 128, 32>}]} {
    %cst = arith.constant 0.000000e+00 : f32
    %0 = vector.broadcast %cst : f32 to vector<128x32xf32>
    %c0 = arith.constant 0 : index
    %c0_0 = arith.constant 0 : index
    %c0_1 = arith.constant 0 : index
    %c0_2 = arith.constant 0 : index
    %c0_3 = arith.constant 0 : index
    %1 = vector.load %arg2[%c0, %c0_0, %c0_1, %c0_2, %c0_3] : memref<1x1x10x18x32xbf16, #tpu.memory_space<vmem>>, vector<1x1x10x18x32xbf16>
    %2 = vector.shape_cast %1 : vector<1x1x10x18x32xbf16> to vector<10x18x32xbf16>
    %3 = vector.extract_strided_slice %2 {offsets = [0, 0, 0], sizes = [8, 16, 32], strides = [1, 1, 1]} : vector<10x18x32xbf16> to vector<8x16x32xbf16>
    %4 = vector.shape_cast %3 : vector<8x16x32xbf16> to vector<128x32xbf16>
    %5 = vector.extract_strided_slice %2 {offsets = [0, 1, 0], sizes = [8, 16, 32], strides = [1, 1, 1]} : vector<10x18x32xbf16> to vector<8x16x32xbf16>
    %6 = vector.shape_cast %5 : vector<8x16x32xbf16> to vector<128x32xbf16>
    %7 = vector.extract_strided_slice %2 {offsets = [0, 2, 0], sizes = [8, 16, 32], strides = [1, 1, 1]} : vector<10x18x32xbf16> to vector<8x16x32xbf16>
    %8 = vector.shape_cast %7 : vector<8x16x32xbf16> to vector<128x32xbf16>
    %9 = vector.extract_strided_slice %2 {offsets = [1, 0, 0], sizes = [8, 16, 32], strides = [1, 1, 1]} : vector<10x18x32xbf16> to vector<8x16x32xbf16>
    %10 = vector.shape_cast %9 : vector<8x16x32xbf16> to vector<128x32xbf16>
    %11 = vector.extract_strided_slice %2 {offsets = [1, 1, 0], sizes = [8, 16, 32], strides = [1, 1, 1]} : vector<10x18x32xbf16> to vector<8x16x32xbf16>
    %12 = vector.shape_cast %11 : vector<8x16x32xbf16> to vector<128x32xbf16>
    %13 = vector.extract_strided_slice %2 {offsets = [1, 2, 0], sizes = [8, 16, 32], strides = [1, 1, 1]} : vector<10x18x32xbf16> to vector<8x16x32xbf16>
    %14 = vector.shape_cast %13 : vector<8x16x32xbf16> to vector<128x32xbf16>
    %15 = vector.extract_strided_slice %2 {offsets = [2, 0, 0], sizes = [8, 16, 32], strides = [1, 1, 1]} : vector<10x18x32xbf16> to vector<8x16x32xbf16>
    %16 = vector.shape_cast %15 : vector<8x16x32xbf16> to vector<128x32xbf16>
    %17 = vector.extract_strided_slice %2 {offsets = [2, 1, 0], sizes = [8, 16, 32], strides = [1, 1, 1]} : vector<10x18x32xbf16> to vector<8x16x32xbf16>
    %18 = vector.shape_cast %17 : vector<8x16x32xbf16> to vector<128x32xbf16>
    %19 = vector.extract_strided_slice %2 {offsets = [2, 2, 0], sizes = [8, 16, 32], strides = [1, 1, 1]} : vector<10x18x32xbf16> to vector<8x16x32xbf16>
    %20 = vector.shape_cast %19 : vector<8x16x32xbf16> to vector<128x32xbf16>
    %21 = tpu.concatenate %4, %6, %8, %10, %12, %14, %16, %18, %20 in 1 : vector<128x32xbf16>, vector<128x32xbf16>, vector<128x32xbf16>, vector<128x32xbf16>, vector<128x32xbf16>, vector<128x32xbf16>, vector<128x32xbf16>, vector<128x32xbf16>, vector<128x32xbf16> -> vector<128x288xbf16>
    %c0_4 = arith.constant 0 : index
    %c0_5 = arith.constant 0 : index
    %c0_6 = arith.constant 0 : index
    %22 = vector.load %arg5[%c0_4, %c0_5, %c0_6] : memref<3x288x32xbf16, #tpu.memory_space<vmem>>, vector<1x288x32xbf16>
    %23 = vector.shape_cast %22 : vector<1x288x32xbf16> to vector<288x32xbf16>
    %cst_7 = arith.constant dense<0.000000e+00> : vector<128x32xf32>
    %24 = tpu.matmul %21, %23, %cst_7 {dimension_numbers = #tpu.dot_dimension_numbers<[1], [0], [0], [1], [0, 0, 1, 1], [], []>} : vector<128x288xbf16>, vector<288x32xbf16>, vector<128x32xf32> -> vector<128x32xf32>
    %25 = arith.addf %0, %24 : vector<128x32xf32>
    %c0_8 = arith.constant 0 : index
    %c0_9 = arith.constant 0 : index
    %c0_10 = arith.constant 0 : index
    %c0_11 = arith.constant 0 : index
    %c0_12 = arith.constant 0 : index
    %26 = vector.load %arg3[%c0_8, %c0_9, %c0_10, %c0_11, %c0_12] : memref<1x1x10x18x32xbf16, #tpu.memory_space<vmem>>, vector<1x1x10x18x32xbf16>
    %27 = vector.shape_cast %26 : vector<1x1x10x18x32xbf16> to vector<10x18x32xbf16>
    %28 = vector.extract_strided_slice %27 {offsets = [0, 0, 0], sizes = [8, 16, 32], strides = [1, 1, 1]} : vector<10x18x32xbf16> to vector<8x16x32xbf16>
    %29 = vector.shape_cast %28 : vector<8x16x32xbf16> to vector<128x32xbf16>
    %30 = vector.extract_strided_slice %27 {offsets = [0, 1, 0], sizes = [8, 16, 32], strides = [1, 1, 1]} : vector<10x18x32xbf16> to vector<8x16x32xbf16>
    %31 = vector.shape_cast %30 : vector<8x16x32xbf16> to vector<128x32xbf16>
    %32 = vector.extract_strided_slice %27 {offsets = [0, 2, 0], sizes = [8, 16, 32], strides = [1, 1, 1]} : vector<10x18x32xbf16> to vector<8x16x32xbf16>
    %33 = vector.shape_cast %32 : vector<8x16x32xbf16> to vector<128x32xbf16>
    %34 = vector.extract_strided_slice %27 {offsets = [1, 0, 0], sizes = [8, 16, 32], strides = [1, 1, 1]} : vector<10x18x32xbf16> to vector<8x16x32xbf16>
    %35 = vector.shape_cast %34 : vector<8x16x32xbf16> to vector<128x32xbf16>
    %36 = vector.extract_strided_slice %27 {offsets = [1, 1, 0], sizes = [8, 16, 32], strides = [1, 1, 1]} : vector<10x18x32xbf16> to vector<8x16x32xbf16>
    %37 = vector.shape_cast %36 : vector<8x16x32xbf16> to vector<128x32xbf16>
    %38 = vector.extract_strided_slice %27 {offsets = [1, 2, 0], sizes = [8, 16, 32], strides = [1, 1, 1]} : vector<10x18x32xbf16> to vector<8x16x32xbf16>
    %39 = vector.shape_cast %38 : vector<8x16x32xbf16> to vector<128x32xbf16>
    %40 = vector.extract_strided_slice %27 {offsets = [2, 0, 0], sizes = [8, 16, 32], strides = [1, 1, 1]} : vector<10x18x32xbf16> to vector<8x16x32xbf16>
    %41 = vector.shape_cast %40 : vector<8x16x32xbf16> to vector<128x32xbf16>
    %42 = vector.extract_strided_slice %27 {offsets = [2, 1, 0], sizes = [8, 16, 32], strides = [1, 1, 1]} : vector<10x18x32xbf16> to vector<8x16x32xbf16>
    %43 = vector.shape_cast %42 : vector<8x16x32xbf16> to vector<128x32xbf16>
    %44 = vector.extract_strided_slice %27 {offsets = [2, 2, 0], sizes = [8, 16, 32], strides = [1, 1, 1]} : vector<10x18x32xbf16> to vector<8x16x32xbf16>
    %45 = vector.shape_cast %44 : vector<8x16x32xbf16> to vector<128x32xbf16>
    %46 = tpu.concatenate %29, %31, %33, %35, %37, %39, %41, %43, %45 in 1 : vector<128x32xbf16>, vector<128x32xbf16>, vector<128x32xbf16>, vector<128x32xbf16>, vector<128x32xbf16>, vector<128x32xbf16>, vector<128x32xbf16>, vector<128x32xbf16>, vector<128x32xbf16> -> vector<128x288xbf16>
    %c1 = arith.constant 1 : index
    %c0_13 = arith.constant 0 : index
    %c0_14 = arith.constant 0 : index
    %47 = vector.load %arg5[%c1, %c0_13, %c0_14] : memref<3x288x32xbf16, #tpu.memory_space<vmem>>, vector<1x288x32xbf16>
    %48 = vector.shape_cast %47 : vector<1x288x32xbf16> to vector<288x32xbf16>
    %cst_15 = arith.constant dense<0.000000e+00> : vector<128x32xf32>
    %49 = tpu.matmul %46, %48, %cst_15 {dimension_numbers = #tpu.dot_dimension_numbers<[1], [0], [0], [1], [0, 0, 1, 1], [], []>} : vector<128x288xbf16>, vector<288x32xbf16>, vector<128x32xf32> -> vector<128x32xf32>
    %50 = arith.addf %25, %49 : vector<128x32xf32>
    %c0_16 = arith.constant 0 : index
    %c0_17 = arith.constant 0 : index
    %c0_18 = arith.constant 0 : index
    %c0_19 = arith.constant 0 : index
    %c0_20 = arith.constant 0 : index
    %51 = vector.load %arg4[%c0_16, %c0_17, %c0_18, %c0_19, %c0_20] : memref<1x1x10x18x32xbf16, #tpu.memory_space<vmem>>, vector<1x1x10x18x32xbf16>
    %52 = vector.shape_cast %51 : vector<1x1x10x18x32xbf16> to vector<10x18x32xbf16>
    %53 = vector.extract_strided_slice %52 {offsets = [0, 0, 0], sizes = [8, 16, 32], strides = [1, 1, 1]} : vector<10x18x32xbf16> to vector<8x16x32xbf16>
    %54 = vector.shape_cast %53 : vector<8x16x32xbf16> to vector<128x32xbf16>
    %55 = vector.extract_strided_slice %52 {offsets = [0, 1, 0], sizes = [8, 16, 32], strides = [1, 1, 1]} : vector<10x18x32xbf16> to vector<8x16x32xbf16>
    %56 = vector.shape_cast %55 : vector<8x16x32xbf16> to vector<128x32xbf16>
    %57 = vector.extract_strided_slice %52 {offsets = [0, 2, 0], sizes = [8, 16, 32], strides = [1, 1, 1]} : vector<10x18x32xbf16> to vector<8x16x32xbf16>
    %58 = vector.shape_cast %57 : vector<8x16x32xbf16> to vector<128x32xbf16>
    %59 = vector.extract_strided_slice %52 {offsets = [1, 0, 0], sizes = [8, 16, 32], strides = [1, 1, 1]} : vector<10x18x32xbf16> to vector<8x16x32xbf16>
    %60 = vector.shape_cast %59 : vector<8x16x32xbf16> to vector<128x32xbf16>
    %61 = vector.extract_strided_slice %52 {offsets = [1, 1, 0], sizes = [8, 16, 32], strides = [1, 1, 1]} : vector<10x18x32xbf16> to vector<8x16x32xbf16>
    %62 = vector.shape_cast %61 : vector<8x16x32xbf16> to vector<128x32xbf16>
    %63 = vector.extract_strided_slice %52 {offsets = [1, 2, 0], sizes = [8, 16, 32], strides = [1, 1, 1]} : vector<10x18x32xbf16> to vector<8x16x32xbf16>
    %64 = vector.shape_cast %63 : vector<8x16x32xbf16> to vector<128x32xbf16>
    %65 = vector.extract_strided_slice %52 {offsets = [2, 0, 0], sizes = [8, 16, 32], strides = [1, 1, 1]} : vector<10x18x32xbf16> to vector<8x16x32xbf16>
    %66 = vector.shape_cast %65 : vector<8x16x32xbf16> to vector<128x32xbf16>
    %67 = vector.extract_strided_slice %52 {offsets = [2, 1, 0], sizes = [8, 16, 32], strides = [1, 1, 1]} : vector<10x18x32xbf16> to vector<8x16x32xbf16>
    %68 = vector.shape_cast %67 : vector<8x16x32xbf16> to vector<128x32xbf16>
    %69 = vector.extract_strided_slice %52 {offsets = [2, 2, 0], sizes = [8, 16, 32], strides = [1, 1, 1]} : vector<10x18x32xbf16> to vector<8x16x32xbf16>
    %70 = vector.shape_cast %69 : vector<8x16x32xbf16> to vector<128x32xbf16>
    %71 = tpu.concatenate %54, %56, %58, %60, %62, %64, %66, %68, %70 in 1 : vector<128x32xbf16>, vector<128x32xbf16>, vector<128x32xbf16>, vector<128x32xbf16>, vector<128x32xbf16>, vector<128x32xbf16>, vector<128x32xbf16>, vector<128x32xbf16>, vector<128x32xbf16> -> vector<128x288xbf16>
    %c2 = arith.constant 2 : index
    %c0_21 = arith.constant 0 : index
    %c0_22 = arith.constant 0 : index
    %72 = vector.load %arg5[%c2, %c0_21, %c0_22] : memref<3x288x32xbf16, #tpu.memory_space<vmem>>, vector<1x288x32xbf16>
    %73 = vector.shape_cast %72 : vector<1x288x32xbf16> to vector<288x32xbf16>
    %cst_23 = arith.constant dense<0.000000e+00> : vector<128x32xf32>
    %74 = tpu.matmul %71, %73, %cst_23 {dimension_numbers = #tpu.dot_dimension_numbers<[1], [0], [0], [1], [0, 0, 1, 1], [], []>} : vector<128x288xbf16>, vector<288x32xbf16>, vector<128x32xf32> -> vector<128x32xf32>
    %75 = arith.addf %50, %74 : vector<128x32xf32>
    %c0_24 = arith.constant 0 : index
    %c0_25 = arith.constant 0 : index
    %76 = vector.load %arg6[%c0_24, %c0_25] : memref<1x32xf32, #tpu.memory_space<vmem>>, vector<1x32xf32>
    %77 = vector.broadcast %76 : vector<1x32xf32> to vector<128x32xf32>
    %78 = arith.addf %75, %77 : vector<128x32xf32>
    %cst_26 = arith.constant 0.000000e+00 : f32
    %79 = vector.broadcast %cst_26 : f32 to vector<128x32xf32>
    %80 = arith.maximumf %78, %79 : vector<128x32xf32>
    %81 = arith.truncf %80 : vector<128x32xf32> to vector<128x32xbf16>
    %c0_27 = arith.constant 0 : index
    %c0_28 = arith.constant 0 : index
    %c0_29 = arith.constant 0 : index
    %c0_30 = arith.constant 0 : index
    %82 = vector.load %arg7[%c0_27, %c0_28, %c0_29, %c0_30] : memref<1x1x128x32xbf16, #tpu.memory_space<vmem>>, vector<1x1x128x32xbf16>
    %83 = vector.shape_cast %82 : vector<1x1x128x32xbf16> to vector<128x32xbf16>
    %84 = vector.shape_cast %81 : vector<128x32xbf16> to vector<1x1x128x32xbf16>
    tpu.vector_store %arg7[%c0_27, %c0_28, %c0_29, %c0_30], %84 {strides = array<i32>} : memref<1x1x128x32xbf16, #tpu.memory_space<vmem>>, vector<1x1x128x32xbf16>,
    return
  }
  func.func @transform_0(%arg0: i32, %arg1: i32) -> (i32, i32, i32, i32, i32) {
    %c0_i32 = arith.constant 0 : i32
    %c0_i32_0 = arith.constant 0 : i32
    %c0_i32_1 = arith.constant 0 : i32
    %c0_i32_2 = arith.constant 0 : i32
    return %arg0, %arg1, %c0_i32, %c0_i32_0, %c0_i32_1 : i32, i32, i32, i32, i32
  }
  func.func @transform_1(%arg0: i32, %arg1: i32) -> (i32, i32, i32, i32, i32) {
    %c1_i32 = arith.constant 1 : i32
    %0 = arith.addi %arg1, %c1_i32 : i32
    %c0_i32 = arith.constant 0 : i32
    %c0_i32_0 = arith.constant 0 : i32
    %c0_i32_1 = arith.constant 0 : i32
    %c0_i32_2 = arith.constant 0 : i32
    return %arg0, %0, %c0_i32, %c0_i32_0, %c0_i32_1 : i32, i32, i32, i32, i32
  }
  func.func @transform_2(%arg0: i32, %arg1: i32) -> (i32, i32, i32, i32, i32) {
    %c2_i32 = arith.constant 2 : i32
    %0 = arith.addi %arg1, %c2_i32 : i32
    %c0_i32 = arith.constant 0 : i32
    %c0_i32_0 = arith.constant 0 : i32
    %c0_i32_1 = arith.constant 0 : i32
    %c0_i32_2 = arith.constant 0 : i32
    return %arg0, %0, %c0_i32, %c0_i32_0, %c0_i32_1 : i32, i32, i32, i32, i32
  }
  func.func @transform_3(%arg0: i32, %arg1: i32) -> (i32, i32, i32) {
    %c0_i32 = arith.constant 0 : i32
    %c0_i32_0 = arith.constant 0 : i32
    %c0_i32_1 = arith.constant 0 : i32
    %c0_i32_2 = arith.constant 0 : i32
    return %c0_i32, %c0_i32_0, %c0_i32_1 : i32, i32, i32
  }
  func.func @transform_4(%arg0: i32, %arg1: i32) -> (i32, i32) {
    %c0_i32 = arith.constant 0 : i32
    %c0_i32_0 = arith.constant 0 : i32
    %c0_i32_1 = arith.constant 0 : i32
    return %c0_i32, %c0_i32_0 : i32, i32
  }
  func.func @transform_5(%arg0: i32, %arg1: i32) -> (i32, i32, i32, i32) {
    %c0_i32 = arith.constant 0 : i32
    %c0_i32_0 = arith.constant 0 : i32
    %c0_i32_1 = arith.constant 0 : i32
    return %arg0, %arg1, %c0_i32, %c0_i32_0 : i32, i32, i32, i32
  }
}

module attributes {stable_mosaic.version = 11 : i64} {
  func.func @_conv_bn_relu_kernel(%arg0: i32, %arg1: i32, %arg2: memref<1x1x10x18x32xbf16, #tpu.memory_space<vmem>>, %arg3: memref<1x1x10x18x32xbf16, #tpu.memory_space<vmem>>, %arg4: memref<1x1x10x18x32xbf16, #tpu.memory_space<vmem>>, %arg5: memref<3x288x8xbf16, #tpu.memory_space<vmem>>, %arg6: memref<1x8xf32, #tpu.memory_space<vmem>>, %arg7: memref<1x1x128x8xf32, #tpu.memory_space<vmem>>) attributes {dimension_semantics = [#tpu.dimension_semantics<parallel>, #tpu.dimension_semantics<parallel>], iteration_bounds = array<i64: 2, 4>, scalar_prefetch = 0 : i64, scratch_operands = 0 : i64, tpu.core_type = #tpu.core_type<tc>, window_params = [{transform_indices = @transform_0, window_bounds = array<i64: 1, 1, 10, 18, 32>}, {transform_indices = @transform_1, window_bounds = array<i64: 1, 1, 10, 18, 32>}, {transform_indices = @transform_2, window_bounds = array<i64: 1, 1, 10, 18, 32>}, {pipeline_mode = #tpu.pipeline_mode<synchronous>, transform_indices = @transform_3, window_bounds = array<i64: 3, 288, 8>}, {pipeline_mode = #tpu.pipeline_mode<synchronous>, transform_indices = @transform_4, window_bounds = array<i64: 1, 8>}, {transform_indices = @transform_5, window_bounds = array<i64: 1, 1, 128, 8>}]} {
    %cst = arith.constant 0.000000e+00 : f32
    %0 = vector.broadcast %cst : f32 to vector<128x8xf32>
    %c0 = arith.constant 0 : index
    %c0_0 = arith.constant 0 : index
    %c0_1 = arith.constant 0 : index
    %c0_2 = arith.constant 0 : index
    %c0_3 = arith.constant 0 : index
    %1 = vector.load %arg2[%c0, %c0_0, %c0_1, %c0_2, %c0_3] : memref<1x1x10x18x32xbf16, #tpu.memory_space<vmem>>, vector<1x1x10x18x32xbf16>
    %2 = vector.shape_cast %1 : vector<1x1x10x18x32xbf16> to vector<10x18x32xbf16>
    %3 = vector.extract_strided_slice %2 {offsets = [0, 0, 0], sizes = [8, 16, 32], strides = [1, 1, 1]} : vector<10x18x32xbf16> to vector<8x16x32xbf16>
    %4 = vector.shape_cast %3 : vector<8x16x32xbf16> to vector<128x32xbf16>
    %5 = vector.extract_strided_slice %2 {offsets = [0, 1, 0], sizes = [8, 16, 32], strides = [1, 1, 1]} : vector<10x18x32xbf16> to vector<8x16x32xbf16>
    %6 = vector.shape_cast %5 : vector<8x16x32xbf16> to vector<128x32xbf16>
    %7 = vector.extract_strided_slice %2 {offsets = [0, 2, 0], sizes = [8, 16, 32], strides = [1, 1, 1]} : vector<10x18x32xbf16> to vector<8x16x32xbf16>
    %8 = vector.shape_cast %7 : vector<8x16x32xbf16> to vector<128x32xbf16>
    %9 = vector.extract_strided_slice %2 {offsets = [1, 0, 0], sizes = [8, 16, 32], strides = [1, 1, 1]} : vector<10x18x32xbf16> to vector<8x16x32xbf16>
    %10 = vector.shape_cast %9 : vector<8x16x32xbf16> to vector<128x32xbf16>
    %11 = vector.extract_strided_slice %2 {offsets = [1, 1, 0], sizes = [8, 16, 32], strides = [1, 1, 1]} : vector<10x18x32xbf16> to vector<8x16x32xbf16>
    %12 = vector.shape_cast %11 : vector<8x16x32xbf16> to vector<128x32xbf16>
    %13 = vector.extract_strided_slice %2 {offsets = [1, 2, 0], sizes = [8, 16, 32], strides = [1, 1, 1]} : vector<10x18x32xbf16> to vector<8x16x32xbf16>
    %14 = vector.shape_cast %13 : vector<8x16x32xbf16> to vector<128x32xbf16>
    %15 = vector.extract_strided_slice %2 {offsets = [2, 0, 0], sizes = [8, 16, 32], strides = [1, 1, 1]} : vector<10x18x32xbf16> to vector<8x16x32xbf16>
    %16 = vector.shape_cast %15 : vector<8x16x32xbf16> to vector<128x32xbf16>
    %17 = vector.extract_strided_slice %2 {offsets = [2, 1, 0], sizes = [8, 16, 32], strides = [1, 1, 1]} : vector<10x18x32xbf16> to vector<8x16x32xbf16>
    %18 = vector.shape_cast %17 : vector<8x16x32xbf16> to vector<128x32xbf16>
    %19 = vector.extract_strided_slice %2 {offsets = [2, 2, 0], sizes = [8, 16, 32], strides = [1, 1, 1]} : vector<10x18x32xbf16> to vector<8x16x32xbf16>
    %20 = vector.shape_cast %19 : vector<8x16x32xbf16> to vector<128x32xbf16>
    %21 = tpu.concatenate %4, %6, %8, %10, %12, %14, %16, %18, %20 in 1 : vector<128x32xbf16>, vector<128x32xbf16>, vector<128x32xbf16>, vector<128x32xbf16>, vector<128x32xbf16>, vector<128x32xbf16>, vector<128x32xbf16>, vector<128x32xbf16>, vector<128x32xbf16> -> vector<128x288xbf16>
    %c0_4 = arith.constant 0 : index
    %c0_5 = arith.constant 0 : index
    %c0_6 = arith.constant 0 : index
    %22 = vector.load %arg5[%c0_4, %c0_5, %c0_6] : memref<3x288x8xbf16, #tpu.memory_space<vmem>>, vector<1x288x8xbf16>
    %23 = vector.shape_cast %22 : vector<1x288x8xbf16> to vector<288x8xbf16>
    %cst_7 = arith.constant dense<0.000000e+00> : vector<128x8xf32>
    %24 = tpu.matmul %21, %23, %cst_7 {dimension_numbers = #tpu.dot_dimension_numbers<[1], [0], [0], [1], [0, 0, 1, 1], [], []>} : vector<128x288xbf16>, vector<288x8xbf16>, vector<128x8xf32> -> vector<128x8xf32>
    %25 = arith.addf %0, %24 : vector<128x8xf32>
    %c0_8 = arith.constant 0 : index
    %c0_9 = arith.constant 0 : index
    %c0_10 = arith.constant 0 : index
    %c0_11 = arith.constant 0 : index
    %c0_12 = arith.constant 0 : index
    %26 = vector.load %arg3[%c0_8, %c0_9, %c0_10, %c0_11, %c0_12] : memref<1x1x10x18x32xbf16, #tpu.memory_space<vmem>>, vector<1x1x10x18x32xbf16>
    %27 = vector.shape_cast %26 : vector<1x1x10x18x32xbf16> to vector<10x18x32xbf16>
    %28 = vector.extract_strided_slice %27 {offsets = [0, 0, 0], sizes = [8, 16, 32], strides = [1, 1, 1]} : vector<10x18x32xbf16> to vector<8x16x32xbf16>
    %29 = vector.shape_cast %28 : vector<8x16x32xbf16> to vector<128x32xbf16>
    %30 = vector.extract_strided_slice %27 {offsets = [0, 1, 0], sizes = [8, 16, 32], strides = [1, 1, 1]} : vector<10x18x32xbf16> to vector<8x16x32xbf16>
    %31 = vector.shape_cast %30 : vector<8x16x32xbf16> to vector<128x32xbf16>
    %32 = vector.extract_strided_slice %27 {offsets = [0, 2, 0], sizes = [8, 16, 32], strides = [1, 1, 1]} : vector<10x18x32xbf16> to vector<8x16x32xbf16>
    %33 = vector.shape_cast %32 : vector<8x16x32xbf16> to vector<128x32xbf16>
    %34 = vector.extract_strided_slice %27 {offsets = [1, 0, 0], sizes = [8, 16, 32], strides = [1, 1, 1]} : vector<10x18x32xbf16> to vector<8x16x32xbf16>
    %35 = vector.shape_cast %34 : vector<8x16x32xbf16> to vector<128x32xbf16>
    %36 = vector.extract_strided_slice %27 {offsets = [1, 1, 0], sizes = [8, 16, 32], strides = [1, 1, 1]} : vector<10x18x32xbf16> to vector<8x16x32xbf16>
    %37 = vector.shape_cast %36 : vector<8x16x32xbf16> to vector<128x32xbf16>
    %38 = vector.extract_strided_slice %27 {offsets = [1, 2, 0], sizes = [8, 16, 32], strides = [1, 1, 1]} : vector<10x18x32xbf16> to vector<8x16x32xbf16>
    %39 = vector.shape_cast %38 : vector<8x16x32xbf16> to vector<128x32xbf16>
    %40 = vector.extract_strided_slice %27 {offsets = [2, 0, 0], sizes = [8, 16, 32], strides = [1, 1, 1]} : vector<10x18x32xbf16> to vector<8x16x32xbf16>
    %41 = vector.shape_cast %40 : vector<8x16x32xbf16> to vector<128x32xbf16>
    %42 = vector.extract_strided_slice %27 {offsets = [2, 1, 0], sizes = [8, 16, 32], strides = [1, 1, 1]} : vector<10x18x32xbf16> to vector<8x16x32xbf16>
    %43 = vector.shape_cast %42 : vector<8x16x32xbf16> to vector<128x32xbf16>
    %44 = vector.extract_strided_slice %27 {offsets = [2, 2, 0], sizes = [8, 16, 32], strides = [1, 1, 1]} : vector<10x18x32xbf16> to vector<8x16x32xbf16>
    %45 = vector.shape_cast %44 : vector<8x16x32xbf16> to vector<128x32xbf16>
    %46 = tpu.concatenate %29, %31, %33, %35, %37, %39, %41, %43, %45 in 1 : vector<128x32xbf16>, vector<128x32xbf16>, vector<128x32xbf16>, vector<128x32xbf16>, vector<128x32xbf16>, vector<128x32xbf16>, vector<128x32xbf16>, vector<128x32xbf16>, vector<128x32xbf16> -> vector<128x288xbf16>
    %c1 = arith.constant 1 : index
    %c0_13 = arith.constant 0 : index
    %c0_14 = arith.constant 0 : index
    %47 = vector.load %arg5[%c1, %c0_13, %c0_14] : memref<3x288x8xbf16, #tpu.memory_space<vmem>>, vector<1x288x8xbf16>
    %48 = vector.shape_cast %47 : vector<1x288x8xbf16> to vector<288x8xbf16>
    %cst_15 = arith.constant dense<0.000000e+00> : vector<128x8xf32>
    %49 = tpu.matmul %46, %48, %cst_15 {dimension_numbers = #tpu.dot_dimension_numbers<[1], [0], [0], [1], [0, 0, 1, 1], [], []>} : vector<128x288xbf16>, vector<288x8xbf16>, vector<128x8xf32> -> vector<128x8xf32>
    %50 = arith.addf %25, %49 : vector<128x8xf32>
    %c0_16 = arith.constant 0 : index
    %c0_17 = arith.constant 0 : index
    %c0_18 = arith.constant 0 : index
    %c0_19 = arith.constant 0 : index
    %c0_20 = arith.constant 0 : index
    %51 = vector.load %arg4[%c0_16, %c0_17, %c0_18, %c0_19, %c0_20] : memref<1x1x10x18x32xbf16, #tpu.memory_space<vmem>>, vector<1x1x10x18x32xbf16>
    %52 = vector.shape_cast %51 : vector<1x1x10x18x32xbf16> to vector<10x18x32xbf16>
    %53 = vector.extract_strided_slice %52 {offsets = [0, 0, 0], sizes = [8, 16, 32], strides = [1, 1, 1]} : vector<10x18x32xbf16> to vector<8x16x32xbf16>
    %54 = vector.shape_cast %53 : vector<8x16x32xbf16> to vector<128x32xbf16>
    %55 = vector.extract_strided_slice %52 {offsets = [0, 1, 0], sizes = [8, 16, 32], strides = [1, 1, 1]} : vector<10x18x32xbf16> to vector<8x16x32xbf16>
    %56 = vector.shape_cast %55 : vector<8x16x32xbf16> to vector<128x32xbf16>
    %57 = vector.extract_strided_slice %52 {offsets = [0, 2, 0], sizes = [8, 16, 32], strides = [1, 1, 1]} : vector<10x18x32xbf16> to vector<8x16x32xbf16>
    %58 = vector.shape_cast %57 : vector<8x16x32xbf16> to vector<128x32xbf16>
    %59 = vector.extract_strided_slice %52 {offsets = [1, 0, 0], sizes = [8, 16, 32], strides = [1, 1, 1]} : vector<10x18x32xbf16> to vector<8x16x32xbf16>
    %60 = vector.shape_cast %59 : vector<8x16x32xbf16> to vector<128x32xbf16>
    %61 = vector.extract_strided_slice %52 {offsets = [1, 1, 0], sizes = [8, 16, 32], strides = [1, 1, 1]} : vector<10x18x32xbf16> to vector<8x16x32xbf16>
    %62 = vector.shape_cast %61 : vector<8x16x32xbf16> to vector<128x32xbf16>
    %63 = vector.extract_strided_slice %52 {offsets = [1, 2, 0], sizes = [8, 16, 32], strides = [1, 1, 1]} : vector<10x18x32xbf16> to vector<8x16x32xbf16>
    %64 = vector.shape_cast %63 : vector<8x16x32xbf16> to vector<128x32xbf16>
    %65 = vector.extract_strided_slice %52 {offsets = [2, 0, 0], sizes = [8, 16, 32], strides = [1, 1, 1]} : vector<10x18x32xbf16> to vector<8x16x32xbf16>
    %66 = vector.shape_cast %65 : vector<8x16x32xbf16> to vector<128x32xbf16>
    %67 = vector.extract_strided_slice %52 {offsets = [2, 1, 0], sizes = [8, 16, 32], strides = [1, 1, 1]} : vector<10x18x32xbf16> to vector<8x16x32xbf16>
    %68 = vector.shape_cast %67 : vector<8x16x32xbf16> to vector<128x32xbf16>
    %69 = vector.extract_strided_slice %52 {offsets = [2, 2, 0], sizes = [8, 16, 32], strides = [1, 1, 1]} : vector<10x18x32xbf16> to vector<8x16x32xbf16>
    %70 = vector.shape_cast %69 : vector<8x16x32xbf16> to vector<128x32xbf16>
    %71 = tpu.concatenate %54, %56, %58, %60, %62, %64, %66, %68, %70 in 1 : vector<128x32xbf16>, vector<128x32xbf16>, vector<128x32xbf16>, vector<128x32xbf16>, vector<128x32xbf16>, vector<128x32xbf16>, vector<128x32xbf16>, vector<128x32xbf16>, vector<128x32xbf16> -> vector<128x288xbf16>
    %c2 = arith.constant 2 : index
    %c0_21 = arith.constant 0 : index
    %c0_22 = arith.constant 0 : index
    %72 = vector.load %arg5[%c2, %c0_21, %c0_22] : memref<3x288x8xbf16, #tpu.memory_space<vmem>>, vector<1x288x8xbf16>
    %73 = vector.shape_cast %72 : vector<1x288x8xbf16> to vector<288x8xbf16>
    %cst_23 = arith.constant dense<0.000000e+00> : vector<128x8xf32>
    %74 = tpu.matmul %71, %73, %cst_23 {dimension_numbers = #tpu.dot_dimension_numbers<[1], [0], [0], [1], [0, 0, 1, 1], [], []>} : vector<128x288xbf16>, vector<288x8xbf16>, vector<128x8xf32> -> vector<128x8xf32>
    %75 = arith.addf %50, %74 : vector<128x8xf32>
    %c0_24 = arith.constant 0 : index
    %c0_25 = arith.constant 0 : index
    %76 = vector.load %arg6[%c0_24, %c0_25] : memref<1x8xf32, #tpu.memory_space<vmem>>, vector<1x8xf32>
    %77 = vector.broadcast %76 : vector<1x8xf32> to vector<128x8xf32>
    %78 = arith.addf %75, %77 : vector<128x8xf32>
    %cst_26 = arith.constant 0.000000e+00 : f32
    %79 = vector.broadcast %cst_26 : f32 to vector<128x8xf32>
    %80 = arith.maximumf %78, %79 : vector<128x8xf32>
    %c0_27 = arith.constant 0 : index
    %c0_28 = arith.constant 0 : index
    %c0_29 = arith.constant 0 : index
    %c0_30 = arith.constant 0 : index
    %81 = vector.load %arg7[%c0_27, %c0_28, %c0_29, %c0_30] : memref<1x1x128x8xf32, #tpu.memory_space<vmem>>, vector<1x1x128x8xf32>
    %82 = vector.shape_cast %81 : vector<1x1x128x8xf32> to vector<128x8xf32>
    %83 = vector.shape_cast %80 : vector<128x8xf32> to vector<1x1x128x8xf32>
    tpu.vector_store %arg7[%c0_27, %c0_28, %c0_29, %c0_30], %83 {strides = array<i32>} : memref<1x1x128x8xf32, #tpu.memory_space<vmem>>, vector<1x1x128x8xf32>,
    return
  }
  func.func @transform_0(%arg0: i32, %arg1: i32) -> (i32, i32, i32, i32, i32) {
    %c0_i32 = arith.constant 0 : i32
    %c0_i32_0 = arith.constant 0 : i32
    %c0_i32_1 = arith.constant 0 : i32
    %c0_i32_2 = arith.constant 0 : i32
    return %arg0, %arg1, %c0_i32, %c0_i32_0, %c0_i32_1 : i32, i32, i32, i32, i32
  }
  func.func @transform_1(%arg0: i32, %arg1: i32) -> (i32, i32, i32, i32, i32) {
    %c1_i32 = arith.constant 1 : i32
    %0 = arith.addi %arg1, %c1_i32 : i32
    %c0_i32 = arith.constant 0 : i32
    %c0_i32_0 = arith.constant 0 : i32
    %c0_i32_1 = arith.constant 0 : i32
    %c0_i32_2 = arith.constant 0 : i32
    return %arg0, %0, %c0_i32, %c0_i32_0, %c0_i32_1 : i32, i32, i32, i32, i32
  }
  func.func @transform_2(%arg0: i32, %arg1: i32) -> (i32, i32, i32, i32, i32) {
    %c2_i32 = arith.constant 2 : i32
    %0 = arith.addi %arg1, %c2_i32 : i32
    %c0_i32 = arith.constant 0 : i32
    %c0_i32_0 = arith.constant 0 : i32
    %c0_i32_1 = arith.constant 0 : i32
    %c0_i32_2 = arith.constant 0 : i32
    return %arg0, %0, %c0_i32, %c0_i32_0, %c0_i32_1 : i32, i32, i32, i32, i32
  }
  func.func @transform_3(%arg0: i32, %arg1: i32) -> (i32, i32, i32) {
    %c0_i32 = arith.constant 0 : i32
    %c0_i32_0 = arith.constant 0 : i32
    %c0_i32_1 = arith.constant 0 : i32
    %c0_i32_2 = arith.constant 0 : i32
    return %c0_i32, %c0_i32_0, %c0_i32_1 : i32, i32, i32
  }
  func.func @transform_4(%arg0: i32, %arg1: i32) -> (i32, i32) {
    %c0_i32 = arith.constant 0 : i32
    %c0_i32_0 = arith.constant 0 : i32
    %c0_i32_1 = arith.constant 0 : i32
    return %c0_i32, %c0_i32_0 : i32, i32
  }
  func.func @transform_5(%arg0: i32, %arg1: i32) -> (i32, i32, i32, i32) {
    %c0_i32 = arith.constant 0 : i32
    %c0_i32_0 = arith.constant 0 : i32
    %c0_i32_1 = arith.constant 0 : i32
    return %arg0, %arg1, %c0_i32, %c0_i32_0 : i32, i32, i32, i32
  }
}

</mosaic_0001>

<bundles_post_ra>
// kernel: attnet3d_channel.5
= control target key start
LH: loop header
LB: loop body
LE: loop exit
PB: predicated region body
PF: predicated region fallthrough
CT: control target
= control target key end

     0   :  { %s4558_s18 = smov 0   ;;  %s4560_s19 = smov 0   ;;  %s6478_s0 = inlined_call_operand.vmem [shape: bf16[2,6,10,18,32], index: 0, kind: input, shape index: {}, may-alias: {0,1,2}]   ;;  %s6479_s1 = inlined_call_operand.vmem [shape: bf16[2,6,10,18,32], index: 1, kind: input, shape index: {}, may-alias: {0,1,2}]   ;;  %s6480_s2 = inlined_call_operand.vmem [shape: bf16[2,6,10,18,32], index: 2, kind: input, shape index: {}, may-alias: {0,1,2}]   ;;  %s6481_s3 = inlined_call_operand.vmem [shape: bf16[3,288,8], index: 3, kind: input, shape index: {}]   ;;  %s6482_s4 = inlined_call_operand.vmem [shape: f32[1,8], index: 4, kind: input, shape index: {}]   ;;  %s6483_s5 = inlined_call_operand.vmem [shape: f32[2,4,128,8], index: 5, kind: output, shape index: {}]  }
   0x1   :  { %s4562_s20 = smov 0   ;;  %s4564_s21 = smov 0  }
   0x2   :  { %s4566_s22 = smov 0  }
   0x3 LB: > { %s24_s23 = sadd.s32 1, %s4515_s20  ;;  %s27_s24 = sadd.s32 1, %s4519_s21  ;;  %s4523_s22 = sphi %s4566_s22, %s15_s22   ;;  %s4519_s21 = sphi %s4564_s21, %s6540_s21   ;;  %s4515_s20 = sphi %s4562_s20, %s6539_s20   ;;  %s4511_s19 = sphi %s4560_s19, %s6538_s19   ;;  %s4507_s18 = sphi %s4558_s18, %s6537_s18  }
   0x4   : > { %p25_p0 = scmp.ge.s32.totalorder %s24_s23, 4  ;;  %p3706_p1 = scmp.ge.s32.totalorder %s4523_s22, 1 }
   0x5   : > { %p247_p2 = scmp.lt.s32.totalorder %s4523_s22, 9 }
   0x6   : > { %s6542_s23 = smov (%p25_p0, %s24_s23), 0  ;;  %s6544_s24 = smov (!%p25_p0, %s27_s24), %s4519_s21 }
   0x7   : > { %p248_p3 = pnand %p3706_p1, %p247_p2  ;;  %p29_p4 = scmp.ge.s32.totalorder %s6544_s24, 2 }
   0x9   : > { %s6546_s24 = smov (%p29_p4, %s6544_s24), 0  ;;  %251 = sbr.rel (%p248_p3) target bundleno = 668 (0x29c), region = 40 }
  0x10   : > { %p303_p5 = scmp.lt.s32.totalorder %s4511_s19, 1  ;;  %p305_p6 = scmp.lt.s32.totalorder %s4507_s18, 5  ;;  %vm593_vm0 = vcmask 1042432   ;;  %v4405_v0 = vld [vmem:[%s6481_s3 + $0x110] sm:$0xff]   ;;  %v4406_v1 = vld [vmem:[%s6481_s3 + $0x118] sm:$0xff]   ;;  %vm594_vm1 = vcmask 1046532  }
  0x11   : > { %s312_s6 = sadd.s32 1, %s4507_s18  ;;  %4208 = vmatprep.subr.bf16.mxu1 %v4405_v0  ;;  %v4408_v2 = vld [vmem:[%s6481_s3 + $0xd0] sm:$0xff]   ;;  %v4409_v3 = vld [vmem:[%s6481_s3 + $0x40] sm:$0xff]   ;;  %v4412_v5 = vld [vmem:[%s6481_s3 + $0xd8] sm:$0xff]   ;;  %vm374_vm2 = vsmask.f32 3328 }
  0x12   : > { %s6548_s19 = smov (!%p303_p5, %s4511_s19), 1  ;;  %4209 = vmatpush3.bf16.msra.mxu1 %v4405_v0  ;;  %p4610_p7 = scmp.lt.s32.totalorder %s312_s6, 5  ;;  %v4410_v4 = vld [vmem:[%s6481_s3 + $0x90] sm:$0xff]   ;;  %3986 = vmatprep.subr.bf16.mxu0 %v4408_v2  ;;  %vm375_vm3 = vsmask.f32 7440  ;;  %vm4659_vm4 = vmor %vm593_vm0, %vm594_vm1  ;;  %v4414_v23 = vld [vmem:[%s6481_s3 + $0x98] sm:$0xff]  }
  0x13   : > { %s306_s27 = scalar_select %p305_p6, %s4507_s18, 5  ;;  %4210 = vmatprep.subr.bf16.mxu1 %v4406_v1  ;;  %3987 = vmatpush3.bf16.msra.mxu0 %v4410_v4  ;;  %v4417_v54 = vld [vmem:[%s6481_s3 + $0xe0] sm:$0xff]   ;;  %vm4746_vm5 = vmor %vm374_vm2, %vm375_vm3  ;;  %vm906_vm6 = vcmask 261120   ;;  %vm931_vm7 = vcmask 523264   ;;  %vm948_vm8 = vcmask 785408   ;;  %vm3548_vm9 = vcmask 64512  }
  0x14   : > { %s4601_s30 = smul.u32 180, %s6548_s19  ;;  %s6550_s6 = smov (!%p4610_p7, %s312_s6), 5  ;;  %3988 = vmatprep.subr.bf16.mxu0 %v4412_v5  ;;  %v4419_v2 = vld [vmem:[%s6481_s3 + $0xa0] sm:$0xff]  }
  0x15   : > { %s4348_s7 = smul.u32 30, %s306_s27  ;;  %s4525_s29 = smov 96  }
  0x16   : > { %4211 = vmatpush3.bf16.msra.mxu1 %v4406_v1  ;;  %s4526_s10 = smov 64   ;;  %s4527_s27 = smov 32  }
  0x17   : > { %s309_s15 = sadd.s32 %s4601_s30, %s4348_s7  ;;  %4060 = vmatprep.subr.bf16.mxu1 %v4409_v3  ;;  %s4350_s7 = smul.u32 30, %s6550_s6  ;;  %3989 = vmatpush3.bf16.msra.mxu0 %v4414_v23 }
  0x18   : > { %s3707_s16 = sshll.u32 %s309_s15, 2  ;;  %3990 = vmatprep.subr.bf16.mxu0 %v4417_v54  ;;  %p336_p9 = scmp.lt.s32.totalorder %s4507_s18, 3 }
  0x19   : > { %s4621_s26 = scalar_lea.vmem %s6478_s0, %s3707_s16  ;;  %s319_s6 = sadd.s32 %s4350_s7, %s4601_s30 }
  0x1a   : > { %v347_v6 = vld [vmem:[%s4621_s26 + $0xc] sm:$0xf]  ;;  %v4628_v7 = vld [vmem:[%s4621_s26 + $0x10] sm:$0xf]  ;;  %v4631_v8 = vld [vmem:[%s4621_s26 + $0x18] sm:$0xf] }
  0x1b   : > { %v411_v9 = vshll.u32 %v4628_v7, 16  ;;  %v4635_v10 = vcombine.low %v347_v6, %v4628_v7  ;;  %v402_v11 = vshrl.u32 %v347_v6, 16  ;;  %v4638_v12 = vld [vmem:[%s4621_s26 + $0x1c] sm:$0xf]  ;;  %v415_v13 = vshrl.u32 %v4628_v7, 16  ;;  %s3708_s11 = sshll.u32 %s319_s6, 2  ;;  %3991 = vmatpush3.bf16.msra.mxu0 %v4419_v2 }
  0x1c   : > { %v405_v14 = vshll.u32 %v347_v6, 16  ;;  %v4645_v15 = vcombine.low %v4631_v8, %v4638_v12  ;;  %v426_v16 = vshrl.u32 %v4631_v8, 16  ;;  %v4649_v17 = vld [vmem:[%s4621_s26 + $0x14] sm:$0x1]  ;;  %v439_v19 = vshrl.u32 %v4638_v12, 16  ;;  %s4694_s14 = scalar_lea.vmem %s6479_s1, %s3708_s11 }
  0x1d   : > { %827 = vrot.lane.b32.xlu1 %v4635_v10, %s4525_s29  ;;  %v4653_v18 = vrot.slane %v402_v11, 4  ;;  %v429_v20 = vshll.u32 %v4631_v8, 16  ;;  %v3714_v22 = vrot.slane %v347_v6, 9  ;;  %v605_v25 = vrot.slane %v4628_v7, 5  ;;  %v4673_v27 = vld [vmem:[%s4621_s26] sm:$0xf] }
  0x1e   : > { %v4666_v24 = vrot.slane %v405_v14, 5  ;;  %868 = vrot.lane.b32.xlu0 %v4645_v15, %s4526_s10  ;;  %v608_v26 = vrot.slane %v4649_v17, 5  ;;  %v428_v28 = vrot.slane %v426_v16, 4  ;;  %v4677_v29 = vld [vmem:[%s4621_s26 + $0x4] sm:$0xf]  ;;  %v3713_v31 = vrot.slane %v4673_v27, 9 }
  0x1f   : > { %v4680_v30 = vld [vmem:[%s4621_s26 + $0x8] sm:$0x1]  ;;  %v431_v32 = vrot.slane %v429_v20, 5  ;;  %v4683_v33 = vrot.slane %v415_v13, 4  ;;  %v606_v34 = vsel %vm4659_vm4, %v3714_v22, %v605_v25  ;;  %v607_v35 = vrot.slane %v605_v25, 4 }
  0x20   : > { %v598_v36 = vrot.slane %v4677_v29, 5  ;;  %v4689_v37 = vld [vmem:[%s4621_s26 + $0x20] sm:$0x1]  ;;  %v601_v38 = vrot.slane %v4680_v30, 5  ;;  %v435_v39 = vshll.u32 %v4638_v12, 16  ;;  %v441_v40 = vrot.slane %v439_v19, 4 }
  0x21   : > { %v445_v41 = vshll.u32 %v4689_v37, 16  ;;  %v4700_v42 = vld [vmem:[%s4694_s14 + $0x18] sm:$0xf]  ;;  %v4703_v43 = vld [vmem:[%s4694_s14 + $0x1c] sm:$0xf]  ;;  %v609_v44 = vsel %vm4659_vm4, %v607_v35, %v608_v26  ;;  %v432_v47 = vor.u32 %v431_v32, %v428_v28  ;;  %v408_v48 = vor.u32 %v4666_v24, %v4653_v18  ;;  %v4421_v28 = vld [vmem:[%s6481_s3 + $0xe8] sm:$0xff]  }
  0x22   : > { %v4708_v45 = vld [vmem:[%s4694_s14 + $0xc] sm:$0xf]  ;;  %v599_v46 = vsel %vm4659_vm4, %v3713_v31, %v598_v36  ;;  %v1152_v49 = vshrl.u32 %v4700_v42, 16  ;;  %v1155_v50 = vshll.u32 %v4700_v42, 16  ;;  %v1165_v51 = vshrl.u32 %v4703_v43, 16  ;;  %3992 = vmatprep.subr.bf16.mxu0 %v4421_v28 }
  0x23   : > { %v4719_v52 = vcombine.low %v4700_v42, %v4703_v43  ;;  %v4722_v53 = vld [vmem:[%s4694_s14 + $0x10] sm:$0xf]  ;;  %v4727_v55 = vcombine.low %v606_v34, %v609_v44  ;;  %v1128_v56 = vshrl.u32 %v4708_v45, 16  ;;  %v1131_v57 = vshll.u32 %v4708_v45, 16  ;;  %v4733_v59 = vld [vmem:[%s4694_s14 + $0x14] sm:$0x1] }
  0x24   : > { %v1141_v58 = vshrl.u32 %v4722_v53, 16  ;;  %v4739_v60 = vcombine.low %v4708_v45, %v4722_v53  ;;  %v3754_v61 = vrot.slane %v4708_v45, 9  ;;  %v1328_v62 = vrot.slane %v4722_v53, 5  ;;  %v1073_v1 = vld [vmem:[%s4694_s14] sm:$0xf] }
  0x25   : > { %1591 = vrot.lane.b32.xlu1 %v4719_v52, %s4526_s10  ;;  %v1331_v63 = vrot.slane %v4733_v59, 5  ;;  %849 = vrot.lane.b32.xlu0 %v4727_v55, %s4527_s27  ;;  %v600_v3 = vrot.slane %v598_v36, 4  ;;  %v433_v4 = vrot.slane %v432_v47, 4  ;;  %v437_v5 = vrot.slane %v435_v39, 5  ;;  %v1074_v11 = vld [vmem:[%s4694_s14 + $0x4] sm:$0xf] }
  0x26   : > { %v447_v6 = vrot.slane %v445_v41, 5  ;;  %v1329_v13 = vsel %vm4659_vm4, %v3754_v61, %v1328_v62  ;;  %v1330_v14 = vrot.slane %v1328_v62, 4  ;;  %v1075_v16 = vld [vmem:[%s4694_s14 + $0x8] sm:$0x1]  ;;  %v3753_v19 = vrot.slane %v1073_v1, 9 }
  0x27   : > { %v1321_v20 = vrot.slane %v1074_v11, 5  ;;  %v602_v22 = vsel %vm4659_vm4, %v600_v3, %v601_v38  ;;  %v438_v23 = vsel %vm4746_vm5, %v433_v4, %v437_v5  ;;  %v442_v25 = vor.u32 %v441_v40, %v437_v5  ;;  %v4423_v41 = vld [vmem:[%s6481_s3 + $0xa8] sm:$0xff]  }
  0x28   : > { %v1324_v26 = vrot.slane %v1075_v16, 5  ;;  %v1332_v31 = vsel %vm4659_vm4, %v1330_v14, %v1331_v63  ;;  %v3739_v32 = vcombine.low %v599_v46, %v602_v22  ;;  %v1104_v39 = vshrl.u32 %v1073_v1, 16  ;;  %3993 = vmatpush3.bf16.msra.mxu0 %v4423_v41 }
  0x29   : > { %1550 = vrot.lane.b32.xlu1 %v4739_v60, %s4525_s29  ;;  %v1322_v34 = vsel %vm4659_vm4, %v3753_v19, %v1321_v20  ;;  %v1323_v35 = vrot.slane %v1321_v20, 4  ;;  %v4773_v36 = vcombine.low %v1329_v13, %v1332_v31  ;;  %v443_v38 = vrot.slane %v442_v25, 4  ;;  %v4427_v25 = vld [vmem:[%s6481_s3 + $0xb0] sm:$0xff]  }
  0x2a   : > { %v1107_v40 = vshll.u32 %v1073_v1, 16  ;;  %v1113_v47 = vshll.u32 %v1074_v11, 16  ;;  %v1117_v54 = vshrl.u32 %v1074_v11, 16  ;;  %v1123_v46 = vshll.u32 %v1075_v16, 16  ;;  %v4425_v11 = vld [vmem:[%s6481_s3 + $0xf0] sm:$0xff]  }
  0x2b   : > { %v1325_v44 = vsel %vm4659_vm4, %v1323_v35, %v1324_v26  ;;  %1572 = vrot.lane.b32.xlu0 %v4773_v36, %s4527_s27  ;;  %v448_v61 = vsel %vm4746_vm5, %v443_v38, %v447_v6  ;;  %v1106_v63 = vrot.slane %v1104_v39, 4  ;;  %v378_v14 = vshrl.u32 %v4673_v27, 16  ;;  %3994 = vmatprep.subr.bf16.mxu0 %v4425_v11 }
  0x2c   : > { %v3779_v62 = vcombine.low %v1322_v34, %v1325_v44  ;;  %v1109_v1 = vrot.slane %v1107_v40, 5  ;;  %v4785_v2 = vcombine.low %v438_v23, %v448_v61  ;;  %v1115_v3 = vrot.slane %v1113_v47, 5  ;;  %3995 = vmatpush3.bf16.msra.mxu0 %v4427_v25 }
  0x2d   : > { %808 = vrot.lane.b32.xlu1 %v3739_v32, %s4526_s10  ;;  %v1119_v4 = vrot.slane %v1117_v54, 4  ;;  %v1125_v5 = vrot.slane %v1123_v46, 5  ;;  %v381_v6 = vshll.u32 %v4673_v27, 16  ;;  %v387_v16 = vshll.u32 %v4677_v29, 16  ;;  %v4803_v32 = vld [vmem:[%s4694_s14 + $0x20] sm:$0x1] }
  0x2e   : > { %v1110_v13 = vor.u32 %v1109_v1, %v1106_v63  ;;  %v391_v20 = vshrl.u32 %v4677_v29, 16  ;;  %v397_v22 = vshll.u32 %v4680_v30, 16  ;;  %v1154_v23 = vrot.slane %v1152_v49, 4  ;;  %v4430_v63 = vld [vmem:[%s6481_s3 + $0xf8] sm:$0xff]  }
  0x2f   : > { %v1120_v19 = vor.u32 %v1119_v4, %v1115_v3  ;;  %887 = vrot.lane.b32.xlu0 %v4785_v2, %s4525_s29  ;;  %v380_v27 = vrot.slane %v378_v14, 4  ;;  %v383_v28 = vrot.slane %v381_v6, 5  ;;  %v389_v31 = vrot.slane %v387_v16, 5  ;;  %v4830_v14 = vld [vmem:[%s4694_s14 + $0x24] sm:$0xf]  ;;  %3996 = vmatprep.subr.bf16.mxu0 %v4430_v63 }
  0x30   : > { %v1111_v26 = vrot.slane %v1110_v13, 4  ;;  %v393_v30 = vrot.slane %v391_v20, 4  ;;  %v399_v34 = vrot.slane %v397_v22, 5  ;;  %v1157_v49 = vrot.slane %v1155_v50, 5 }
  0x31   : > { %1531 = vrot.lane.b32.xlu1 %v3779_v62, %s4526_s10  ;;  %v1121_v29 = vrot.slane %v1120_v19, 4  ;;  %v384_v38 = vor.u32 %v383_v28, %v380_v27  ;;  %v1161_v39 = vshll.u32 %v4703_v43, 16  ;;  %v1167_v40 = vrot.slane %v1165_v51, 4  ;;  %v4838_v19 = vld [vmem:[%s4694_s14 + $0x28] sm:$0xf] }
  0x32   : > { %v1116_v35 = vsel %vm4746_vm5, %v1111_v26, %v1115_v3  ;;  %v394_v44 = vor.u32 %v393_v30, %v389_v31  ;;  %v1158_v47 = vor.u32 %v1157_v49, %v1154_v23  ;;  %v1171_v54 = vshll.u32 %v4803_v32, 16  ;;  %v4852_v30 = vld [vmem:[%s4694_s14 + $0x2c] sm:$0x1] }
  0x33   : > { %v1126_v41 = vsel %vm4746_vm5, %v1121_v29, %v1125_v5  ;;  %v385_v50 = vrot.slane %v384_v38, 4  ;;  %v1163_v61 = vrot.slane %v1161_v39, 5  ;;  %v1130_v62 = vrot.slane %v1128_v56, 4 }
  0x34   : > { %v3771_v46 = vcombine.low %v1116_v35, %v1126_v41  ;;  %v395_v1 = vrot.slane %v394_v44, 4  ;;  %v1159_v51 = vrot.slane %v1158_v47, 4  ;;  %v1173_v3 = vrot.slane %v1171_v54, 5  ;;  %v4866_v41 = vld [vmem:[%s4621_s26 + $0x24] sm:$0xf] }
  0x35   : > { %v1133_v4 = vrot.slane %v1131_v57, 5  ;;  %v390_v5 = vsel %vm4746_vm5, %v385_v50, %v389_v31  ;;  %v1168_v11 = vor.u32 %v1167_v40, %v1163_v61  ;;  %v1137_v56 = vshll.u32 %v4722_v53, 16  ;;  %v4434_v44 = vld [vmem:[%s6481_s3 + $0x100] sm:$0xff]  }
  0x36   : > { %1491 = vrot.lane.b32.xlu0 %v3771_v46, %s4527_s27  ;;  %v1143_v13 = vrot.slane %v1141_v58, 4  ;;  %v400_v6 = vsel %vm4746_vm5, %v395_v1, %v399_v34  ;;  %v1164_v45 = vsel %vm4746_vm5, %v1159_v51, %v1163_v61  ;;  %v1147_v16 = vshll.u32 %v4733_v59, 16  ;;  %v4432_v58 = vld [vmem:[%s6481_s3 + $0xb8] sm:$0xff]  }
  0x37   : > { %v1134_v57 = vor.u32 %v1133_v4, %v1130_v62  ;;  %v3731_v20 = vcombine.low %v390_v5, %v400_v6  ;;  %v1169_v22 = vrot.slane %v1168_v11, 4  ;;  %v1139_v23 = vrot.slane %v1137_v56, 5  ;;  %3997 = vmatpush3.bf16.msra.mxu0 %v4432_v58 }
  0x38   : > { %v3755_v53 = vrot.slane %v4700_v42, 9  ;;  %v1149_v26 = vrot.slane %v1147_v16, 5  ;;  %v1335_v27 = vrot.slane %v4703_v43, 5  ;;  %v1338_v28 = vrot.slane %v4803_v32, 5  ;;  %3998 = vmatprep.subr.bf16.mxu0 %v4434_v44  ;;  %v4945_v44 = vld [vmem:[%s4694_s14 + $0x34] sm:$0xf] }
  0x39   : > { %v1135_v25 = vrot.slane %v1134_v57, 4  ;;  %768 = vrot.lane.b32.xlu1 %v3731_v20, %s4527_s27  ;;  %v1174_v59 = vsel %vm4746_vm5, %v1169_v22, %v1173_v3  ;;  %v1144_v31 = vor.u32 %v1143_v13, %v1139_v23  ;;  %v1176_v29 = vshrl.u32 %v4830_v14, 16  ;;  %v4909_v57 = vld [vmem:[%s4621_s26 + $0x2c] sm:$0x1] }
  0x3a   : > { %v1179_v42 = vshll.u32 %v4830_v14, 16  ;;  %v4854_v34 = vcombine.low %v1164_v45, %v1174_v59  ;;  %v1336_v32 = vsel %vm4659_vm4, %v3755_v53, %v1335_v27  ;;  %v1337_v49 = vrot.slane %v1335_v27, 4  ;;  %v4892_v45 = vld [vmem:[%s4621_s26 + $0x28] sm:$0xf] }
  0x3b   : > { %v1140_v43 = vsel %vm4746_vm5, %v1135_v25, %v1139_v23  ;;  %v1145_v35 = vrot.slane %v1144_v31, 4  ;;  %v1189_v38 = vshrl.u32 %v4838_v19, 16  ;;  %v4863_v39 = vcombine.low %v4830_v14, %v4838_v19  ;;  %v4915_v23 = vld [vmem:[%s4694_s14 + $0x30] sm:$0xf] }
  0x3c   : > { %v1178_v40 = vrot.slane %v1176_v29, 4  ;;  %1610 = vrot.lane.b32.xlu0 %v4854_v34, %s4525_s29  ;;  %v1339_v47 = vsel %vm4659_vm4, %v1337_v49, %v1338_v28  ;;  %v1181_v54 = vrot.slane %v1179_v42, 5  ;;  %v1185_v46 = vshll.u32 %v4838_v19, 16 }
  0x3d   : > { %6503 = vst [vmem:[#allocation2_spill] sm:$0xff] %v4863_v39  ;;  %v1195_v50 = vshll.u32 %v4852_v30, 16  ;;  %v1150_v61 = vsel %vm4746_vm5, %v1145_v35, %v1149_v26  ;;  %v4879_v62 = vcombine.low %v1336_v32, %v1339_v47  ;;  %v1191_v63 = vrot.slane %v1189_v38, 4  ;;  %v4442_v32 = vld [vmem:[%s6481_s3 + $0xc8] sm:$0xff]  }
  0x3e   : > { %v409_v1 = vrot.slane %v408_v48, 4  ;;  %v4884_v51 = vcombine.low %v1140_v43, %v1150_v61  ;;  %v1182_v3 = vor.u32 %v1181_v54, %v1178_v40  ;;  %v1187_v4 = vrot.slane %v1185_v46, 5 }
  0x3f   : > { %v1197_v5 = vrot.slane %v1195_v50, 5  ;;  %v413_v11 = vrot.slane %v411_v9, 5  ;;  %v421_v56 = vshll.u32 %v4649_v17, 16  ;;  %v3715_v13 = vrot.slane %v4631_v8, 9  ;;  %4212 = vmatprep.mubr.msk.bf16.mxu1 %vm906_vm6, %v4879_v62 }
  0x40   : > { %v612_v6 = vrot.slane %v4638_v12, 5  ;;  %1493 = vrot.lane.b32.xlu1 %v4884_v51, %s4527_s27  ;;  %1574 = vrot.lane.b32.xlu0 %v4879_v62, %s4527_s27  ;;  %v1183_v7 = vrot.slane %v1182_v3, 4  ;;  %v1192_v9 = vor.u32 %v1191_v63, %v1187_v4  ;;  %v615_v17 = vrot.slane %v4689_v37, 5  ;;  %v4436_v12 = vld [vmem:[%s6481_s3 + $0xc0] sm:$0xff]  }
  0x41   : > { %v450_v8 = vshrl.u32 %v4866_v41, 16  ;;  %v418_v18 = vor.u32 %v4683_v33, %v413_v11  ;;  %v423_v24 = vrot.slane %v421_v56, 5  ;;  %v453_v37 = vshll.u32 %v4866_v41, 16  ;;  %3999 = vmatpush3.bf16.msra.mxu0 %v4436_v12  ;;  %v4439_v33 = vld [vmem:[%s6481_s3 + $0x108] sm:$0xff]  }
  0x42   : > { %v613_v48 = vsel %vm4659_vm4, %v3715_v13, %v612_v6  ;;  %v1188_v16 = vsel %vm4746_vm5, %v1183_v7, %v1187_v4  ;;  %v1193_v20 = vrot.slane %v1192_v9, 4  ;;  %v614_v22 = vrot.slane %v612_v6, 4  ;;  %4000 = vmatprep.subr.bf16.mxu0 %v4439_v33  ;;  %v4411_v13 = vld [vmem:[%s6481_s3] sm:$0xff]  }
  0x43   : > { %v414_v53 = vsel %vm4746_vm5, %v409_v1, %v413_v11  ;;  %v419_v58 = vrot.slane %v418_v18, 4  ;;  %v463_v25 = vshrl.u32 %v4892_v45, 16  ;;  %v452_v26 = vrot.slane %v450_v8, 4  ;;  %v1087_v11 = vld [vmem:[%s4694_s14 + $0x38] sm:$0x1] }
  0x44   : > { %1533 = vrot.lane.b32.xlu1 %v4773_v36, %s4526_s10  ;;  %1593 = vrot.lane.b32.xlu0 %v4863_v39, %s4526_s10  ;;  %v1198_v27 = vsel %vm4746_vm5, %v1193_v20, %v1197_v5  ;;  %v616_v28 = vsel %vm4659_vm4, %v614_v22, %v615_v17  ;;  %v455_v59 = vrot.slane %v453_v37, 5  ;;  %v459_v31 = vshll.u32 %v4892_v45, 16  ;;  %v4415_v20 = vld [vmem:[%s6481_s3 + $0x8] sm:$0xff]  }
  0x45   : > { %v4932_v29 = vcombine.low %v1188_v16, %v1198_v27  ;;  %v424_v42 = vsel %vm4746_vm5, %v419_v58, %v423_v24  ;;  %v4936_v43 = vcombine.low %v613_v48, %v616_v28  ;;  %v465_v36 = vrot.slane %v463_v25, 4  ;;  %4001 = vmatpush3.bf16.msra.mxu0 %v4442_v32  ;;  %v4413_v48 = vld [vmem:[%s6481_s3 + $0x48] sm:$0xff]   ;;  %v4998_v58 = vld [vmem:[%s4621_s26 + $0x34] sm:$0xf] }
  0x46   : > { %v4941_v49 = vcombine.low %v414_v53, %v424_v42  ;;  %v456_v35 = vor.u32 %v455_v59, %v452_v26  ;;  %v461_v38 = vrot.slane %v459_v31, 5  ;;  %v469_v40 = vshll.u32 %v4909_v57, 16  ;;  %v4995_v53 = vld [vmem:[%s4621_s26 + $0x30] sm:$0xf] }
  0x47   : > { %6504 = vst [vmem:[#allocation3_spill] sm:$0xff] %v4936_v43  ;;  %v3756_v47 = vrot.slane %v4830_v14, 9  ;;  %v1342_v54 = vrot.slane %v4838_v19, 5  ;;  %v1345_v46 = vrot.slane %v4852_v30, 5  ;;  %v1200_v50 = vshrl.u32 %v4915_v23, 16  ;;  %v4418_v25 = vld [vmem:[%s6481_s3 + $0x50] sm:$0xff]  }
  0x48   : > { %1552 = vrot.lane.b32.xlu1 %v4719_v52, %s4525_s29  ;;  %1612 = vrot.lane.b32.xlu0 %v4932_v29, %s4525_s29  ;;  %v457_v61 = vrot.slane %v456_v35, 4  ;;  %v466_v63 = vor.u32 %v465_v36, %v461_v38  ;;  %v471_v1 = vrot.slane %v469_v40, 5  ;;  %v1203_v3 = vshll.u32 %v4915_v23, 16 }
  0x49   : > { %v1343_v14 = vsel %vm4659_vm4, %v3756_v47, %v1342_v54  ;;  %v1344_v19 = vrot.slane %v1342_v54, 4  ;;  %v1213_v30 = vshrl.u32 %v4945_v44, 16  ;;  %v1209_v56 = vshll.u32 %v4945_v44, 16  ;;  %v4422_v54 = vld [vmem:[%s6481_s3 + $0x58] sm:$0xff]  }
  0x4a   : > { %v467_v4 = vrot.slane %v466_v63, 4  ;;  %v4972_v6 = vcombine.low %v4866_v41, %v4892_v45  ;;  %v1202_v9 = vrot.slane %v1200_v50, 4  ;;  %v1205_v17 = vrot.slane %v1203_v3, 5  ;;  %v4426_v3 = vld [vmem:[%s6481_s3 + $0x60] sm:$0xff]  }
  0x4b   : > { %v1346_v5 = vsel %vm4659_vm4, %v1344_v19, %v1345_v46  ;;  %v462_v8 = vsel %vm4746_vm5, %v457_v61, %v461_v38  ;;  %v1211_v18 = vrot.slane %v1209_v56, 5  ;;  %v1215_v24 = vrot.slane %v1213_v30, 4  ;;  %v4428_v56 = vld [vmem:[%s6481_s3 + $0x20] sm:$0xff]  }
  0x4c   : > { %770 = vrot.lane.b32.xlu1 %v4941_v49, %s4527_s27  ;;  %851 = vrot.lane.b32.xlu0 %v4936_v43, %s4527_s27  ;;  %6505 = vst [vmem:[#allocation4_spill] sm:$0xff] %v4972_v6  ;;  %v4974_v7 = vcombine.low %v1343_v14, %v1346_v5  ;;  %v472_v12 = vsel %vm4746_vm5, %v467_v4, %v471_v1  ;;  %v1219_v16 = vshll.u32 %v1087_v11, 16  ;;  %v3757_v26 = vrot.slane %v4915_v23, 9  ;;  %v4424_v1 = vld [vmem:[%s6481_s3 + $0x18] sm:$0xff]  }
  0x4d   : > { %v4992_v22 = vcombine.low %v462_v8, %v472_v12  ;;  %v1206_v37 = vor.u32 %v1205_v17, %v1202_v9  ;;  %v1216_v33 = vor.u32 %v1215_v24, %v1211_v18  ;;  %v619_v28 = vrot.slane %v4892_v45, 5  ;;  %v5049_v5 = vld [vmem:[%s4621_s26 + $0x38] sm:$0x1]  ;;  %v5066_v17 = vld [vmem:[%s4694_s14 + $0x40] sm:$0xf] }
  0x4e   : > { %4213 = vmatmul.mubr.msk.bf16.vlgmr.msra.gmra.mrb[0].mxu1 %vm906_vm6, %v4974_v7  ;;  %v1221_v27 = vrot.slane %v1219_v16, 5  ;;  %v1349_v59 = vrot.slane %v4945_v44, 5  ;;  %v1352_v31 = vrot.slane %v1087_v11, 5  ;;  %v474_v36 = vshrl.u32 %v4995_v53, 16  ;;  %v5052_v11 = vld [vmem:[%s4694_s14 + $0x3c] sm:$0xf] }
  0x4f   : > { %4061 = vmatpush3.bf16.msra.mxu1 %v4411_v13  ;;  %v1207_v42 = vrot.slane %v1206_v37, 4  ;;  %v477_v32 = vshll.u32 %v4995_v53, 16  ;;  %v487_v35 = vshrl.u32 %v4998_v58, 16  ;;  %v1217_v38 = vrot.slane %v1216_v33, 4  ;;  %v4433_v37 = vld [vmem:[%s6481_s3 + $0x28] sm:$0xff]  }
  0x50   : > { %810 = vrot.lane.b32.xlu1 %v4727_v55, %s4526_s10  ;;  %870 = vrot.lane.b32.xlu0 %v4972_v6, %s4526_s10  ;;  %v4420_v55 = vld [vmem:[%s6481_s3 + $0x10] sm:$0xff]   ;;  %v483_v45 = vshll.u32 %v4998_v58, 16  ;;  %v1350_v40 = vsel %vm4659_vm4, %v3757_v26, %v1349_v59  ;;  %v1351_v47 = vrot.slane %v1349_v59, 4  ;;  %v5024_v46 = vcombine.low %v4915_v23, %v4945_v44 }
  0x51   : > { %4062 = vmatprep.subr.bf16.mxu1 %v4413_v48  ;;  %v3716_v50 = vrot.slane %v4866_v41, 9  ;;  %v622_v61 = vrot.slane %v4909_v57, 5  ;;  %v621_v23 = vrot.slane %v619_v28, 4  ;;  %v476_v41 = vrot.slane %v474_v36, 4  ;;  %v1090_v48 = vld [vmem:[%s4694_s14 + $0x44] sm:$0x1] }
  0x52   : > { %v1353_v63 = vsel %vm4659_vm4, %v1351_v47, %v1352_v31  ;;  %v479_v44 = vrot.slane %v477_v32, 5  ;;  %v1212_v14 = vsel %vm4746_vm5, %v1207_v42, %v1211_v18  ;;  %v1222_v19 = vsel %vm4746_vm5, %v1217_v38, %v1221_v27 }
  0x53   : > { %4063 = vmatpush3.bf16.msra.mxu1 %v4415_v20  ;;  %v5037_v57 = vcombine.low %v1350_v40, %v1353_v63  ;;  %v5046_v30 = vrot.slane %v483_v45, 5  ;;  %v489_v4 = vrot.slane %v487_v35, 4  ;;  %v5063_v13 = vcombine.low %v1212_v14, %v1222_v19  ;;  %v4435_v35 = vld [vmem:[%s6481_s3 + $0x70] sm:$0xff]  }
  0x54   : > { %829 = vrot.lane.b32.xlu1 %v4645_v15, %s4525_s29  ;;  %889 = vrot.lane.b32.xlu0 %v4992_v22, %s4525_s29  ;;  %v480_v9 = vor.u32 %v479_v44, %v476_v41  ;;  %v620_v8 = vsel %vm4659_vm4, %v3716_v50, %v619_v28  ;;  %v623_v12 = vsel %vm4659_vm4, %v621_v23, %v622_v61  ;;  %v493_v24 = vshll.u32 %v5049_v5, 16  ;;  %v4437_v50 = vld [vmem:[%s6481_s3 + $0x30] sm:$0xff]   ;;  %v4440_v41 = vld [vmem:[%s6481_s3 + $0x78] sm:$0xff]  }
  0x55   : > { %4064 = vmatprep.subr.bf16.mxu1 %v4418_v25  ;;  %4216 = vmatprep.mubr.msk.bf16.mxu1 %vm906_vm6, %v5037_v57  ;;  %v490_v18 = vor.u32 %v489_v4, %v5046_v30  ;;  %v1224_v16 = vshrl.u32 %v5052_v11, 16  ;;  %v1227_v20 = vshll.u32 %v5052_v11, 16  ;;  %v1237_v33 = vshrl.u32 %v5066_v17, 16  ;;  %v5133_v4 = vld [vmem:[%s4694_s14 + $0x48] sm:$0xf] }
  0x56   : > { %v1233_v25 = vshll.u32 %v5066_v17, 16  ;;  %v3758_v26 = vrot.slane %v5052_v11, 9  ;;  %v5091_v27 = vcombine.low %v620_v8, %v623_v12  ;;  %v481_v28 = vrot.slane %v480_v9, 4  ;;  %v5146_v12 = vld [vmem:[%s4694_s14 + $0x4c] sm:$0xf] }
  0x57   : > { %4065 = vmatpush3.bf16.msra.mxu1 %v4420_v55  ;;  %v1356_v55 = vrot.slane %v5066_v17, 5  ;;  %v1359_v59 = vrot.slane %v1090_v48, 5  ;;  %v491_v31 = vrot.slane %v490_v18, 4  ;;  %v495_v42 = vrot.slane %v493_v24, 5  ;;  %v5149_v18 = vld [vmem:[%s4694_s14 + $0x50] sm:$0x1] }
  0x58   : > { %1495 = vrot.lane.b32.xlu1 %v4854_v34, %s4527_s27  ;;  %1576 = vrot.lane.b32.xlu0 %v4974_v7, %s4527_s27  ;;  %6506 = vst [vmem:[#allocation5_spill] sm:$0xff] %v5091_v27  ;;  %v1226_v38 = vrot.slane %v1224_v16, 4  ;;  %v1229_v45 = vrot.slane %v1227_v20, 5  ;;  %v5098_v40 = vrot.slane %v1233_v25, 5  ;;  %v1239_v47 = vrot.slane %v1237_v33, 4 }
  0x59   : > { %4066 = vmatprep.subr.bf16.mxu1 %v4422_v54  ;;  %v1357_v36 = vsel %vm4659_vm4, %v3758_v26, %v1356_v55  ;;  %v1358_v32 = vrot.slane %v1356_v55, 4  ;;  %v5111_v61 = vcombine.low %v4995_v53, %v4998_v58  ;;  %v496_v23 = vsel %vm4746_vm5, %v491_v31, %v495_v42  ;;  %v5155_v16 = vld [vmem:[%s4694_s14 + $0x54] sm:$0xf]  ;;  %v5159_v33 = vld [vmem:[%s4694_s14 + $0x58] sm:$0xf] }
  0x5a   : > { %v1230_v44 = vor.u32 %v1229_v45, %v1226_v38  ;;  %v1240_v14 = vor.u32 %v1239_v47, %v5098_v40  ;;  %v1243_v19 = vshll.u32 %v1090_v48, 16  ;;  %v6484_v8 = vrot.slane %v4998_v58, 5  ;;  %v5162_v25 = vld [vmem:[%s4694_s14 + $0x5c] sm:$0x1]  ;;  %v5167_v31 = vld [vmem:[%s4694_s14 + $0x60] sm:$0xf] }
  0x5b   : > { %4067 = vmatpush3.bf16.msra.mxu1 %v4424_v1  ;;  %v1360_v54 = vsel %vm4659_vm4, %v1358_v32, %v1359_v59  ;;  %v486_v1 = vsel %vm4746_vm5, %v481_v28, %v5046_v30  ;;  %v5130_v30 = vld [vmem:[%s4621_s26 + $0x40] sm:$0xf]  ;;  %v3759_v48 = vrot.slane %v5133_v4, 9  ;;  %v3717_v28 = vrot.slane %v4995_v53, 9  ;;  %v5182_v38 = vld [vmem:[%s4694_s14 + $0x68] sm:$0x1] }
  0x5c   : > { %1535 = vrot.lane.b32.xlu1 %v4879_v62, %s4526_s10  ;;  %1595 = vrot.lane.b32.xlu0 %v5024_v46, %s4526_s10  ;;  %v4431_v62 = vld [vmem:[%s6481_s3 + $0x68] sm:$0xff]   ;;  %v5113_v63 = vcombine.low %v1357_v36, %v1360_v54  ;;  %v5142_v9 = vcombine.low %v486_v1, %v496_v23  ;;  %v1231_v20 = vrot.slane %v1230_v44, 4  ;;  %v1241_v26 = vrot.slane %v1240_v14, 4  ;;  %v5185_v45 = vld [vmem:[%s4621_s26 + $0x44] sm:$0x1] }
  0x5d   : > { %4068 = vmatprep.subr.bf16.mxu1 %v4426_v3  ;;  %v5124_v3 = vld [vmem:[%s4621_s26 + $0x3c] sm:$0xf]  ;;  %v1245_v55 = vrot.slane %v1243_v19, 5  ;;  %v1366_v59 = vrot.slane %v5149_v18, 5  ;;  %v628_v42 = vrot.slane %v6484_v8, 4  ;;  %v629_v36 = vrot.slane %v5049_v5, 5 }
  0x5e   : > { %4217 = vmatmul.mubr.msk.bf16.gmra.mrb[4].mxu1 %vm906_vm6, %v5113_v63  ;;  %v498_v24 = vshrl.u32 %v5124_v3, 16  ;;  %v511_v53 = vshrl.u32 %v5130_v30, 16  ;;  %v507_v32 = vshll.u32 %v5130_v30, 16  ;;  %v3760_v1 = vrot.slane %v5155_v16, 9  ;;  %v5191_v23 = vld [vmem:[%s4694_s14 + $0x6c] sm:$0xf] }
  0x5f   : > { %4069 = vmatpush3.bf16.msra.mxu1 %v4428_v56  ;;  %v4443_v56 = vld [vmem:[%s6481_s3 + $0x38] sm:$0xff]   ;;  %v5194_v5 = vld [vmem:[%s4694_s14 + $0x70] sm:$0xf]  ;;  %v1370_v14 = vrot.slane %v5159_v33, 5  ;;  %v5201_v19 = vld [vmem:[%s4694_s14 + $0x74] sm:$0x1] }
  0x60   : > { %1554 = vrot.lane.b32.xlu1 %v4863_v39, %s4525_s29  ;;  %1614 = vrot.lane.b32.xlu0 %v5063_v13, %s4525_s29  ;;  %v500_v47 = vrot.slane %v498_v24, 4  ;;  %v1407_v8 = vrot.slane %v5182_v38, 5  ;;  %v6507_v39 = vrot.slane %v4998_v58, 5 }
  0x61   : > { %4070 = vmatprep.subr.bf16.mxu1 %v4431_v62  ;;  %v1363_v62 = vrot.slane %v5146_v12, 5 }
  0x63   : > { %4071 = vmatpush3.bf16.msra.mxu1 %v4433_v37  ;;  %v501_v37 = vshll.u32 %v5124_v3, 16  ;;  %v1364_v54 = vsel %vm4659_vm4, %v3759_v48, %v1363_v62  ;;  %v1373_v48 = vrot.slane %v5162_v25, 5 }
  0x64   : > { %772 = vrot.lane.b32.xlu1 %v4785_v2, %s4527_s27  ;;  %853 = vrot.lane.b32.xlu0 %v5091_v27, %s4527_s27 }
  0x65   : > { %4072 = vmatprep.subr.bf16.mxu1 %v4435_v35  ;;  %v5179_v35 = vld [vmem:[%s4694_s14 + $0x64] sm:$0xf]  ;;  %v503_v44 = vrot.slane %v501_v37, 5  ;;  %v513_v37 = vrot.slane %v511_v53, 4 }
  0x67   : > { %4073 = vmatpush3.bf16.msra.mxu1 %v4437_v50  ;;  %v1365_v50 = vrot.slane %v1363_v62, 4  ;;  %v3761_v62 = vrot.slane %v5167_v31, 9 }
  0x68   : > { %812 = vrot.lane.b32.xlu1 %v4936_v43, %s4526_s10  ;;  %872 = vrot.lane.b32.xlu0 %v5111_v61, %s4526_s10 }
  0x69   : > { %4074 = vmatprep.subr.bf16.mxu1 %v4440_v41  ;;  %v1236_v41 = vsel %vm4746_vm5, %v1231_v20, %v5098_v40  ;;  %v1367_v24 = vsel %vm4659_vm4, %v1365_v50, %v1366_v59  ;;  %v5215_v40 = vcombine.low %v5052_v11, %v5066_v17  ;;  %v509_v20 = vrot.slane %v507_v32, 5 }
  0x6a   : > { %v1372_v59 = vrot.slane %v1370_v14, 4  ;;  %v1404_v50 = vrot.slane %v5179_v35, 5  ;;  %v3762_v11 = vrot.slane %v5191_v23, 9  ;;  %v1438_v17 = vrot.slane %v5194_v5, 5 }
  0x6b   : > { %4075 = vmatpush3.bf16.msra.mxu1 %v4443_v56  ;;  %v1246_v56 = vsel %vm4746_vm5, %v1241_v26, %v1245_v55  ;;  %v5217_v26 = vcombine.low %v1364_v54, %v1367_v24  ;;  %v1371_v55 = vsel %vm4659_vm4, %v3760_v1, %v1370_v14  ;;  %v1441_v1 = vrot.slane %v5201_v19, 5 }
  0x6c   : > { %831 = vrot.lane.b32.xlu1 %v4972_v6, %s4525_s29  ;;  %891 = vrot.lane.b32.xlu0 %v5142_v9, %s4525_s29  ;;  %v5223_v43 = vcombine.low %v1236_v41, %v1246_v56  ;;  %v517_v6 = vshll.u32 %v5185_v45, 16  ;;  %v1374_v53 = vsel %vm4659_vm4, %v1372_v59, %v1373_v48  ;;  %v1405_v32 = vsel %vm4659_vm4, %v3761_v62, %v1404_v50 }
  0x6d   : > { %4220 = vmatprep.mubr.msk.bf16.mxu1 %vm906_vm6, %v5217_v26  ;;  %v1406_v54 = vrot.slane %v1404_v50, 4  ;;  %v504_v41 = vor.u32 %v503_v44, %v500_v47  ;;  %v514_v14 = vor.u32 %v513_v37, %v509_v20  ;;  %v5239_v56 = vcombine.low %v1371_v55, %v1374_v53 }
  0x6e   : > { %v1440_v24 = vrot.slane %v1438_v17, 4  ;;  %v627_v48 = vsel %vm4659_vm4, %v3717_v28, %v6507_v39  ;;  %v630_v62 = vsel %vm4659_vm4, %v628_v42, %v629_v36  ;;  %v1251_v50 = vshll.u32 %v5133_v4, 16 }
  0x6f   : > { %v1408_v59 = vsel %vm4659_vm4, %v1406_v54, %v1407_v8  ;;  %4221 = vmatmul.mubr.msk.bf16.gmra.mrb[8].mxu1 %vm906_vm6, %v5239_v56  ;;  %v1439_v58 = vsel %vm4659_vm4, %v3762_v11, %v1438_v17  ;;  %v5263_v8 = vcombine.low %v627_v48, %v630_v62  ;;  %v505_v28 = vrot.slane %v504_v41, 4  ;;  %v5291_v62 = vld [vmem:[%s4621_s26 + $0x4c] sm:$0xf] }
  0x70   : > { %1497 = vrot.lane.b32.xlu1 %v4932_v29, %s4527_s27  ;;  %1578 = vrot.lane.b32.xlu0 %v5037_v57, %s4527_s27  ;;  %v5253_v47 = vcombine.low %v1405_v32, %v1408_v59  ;;  %v1442_v39 = vsel %vm4659_vm4, %v1440_v24, %v1441_v1  ;;  %v515_v42 = vrot.slane %v514_v14, 4  ;;  %v519_v36 = vrot.slane %v517_v6, 5  ;;  %v5285_v24 = vld [vmem:[%s4621_s26 + $0x48] sm:$0xf] }
  0x71   : > { %6508 = vst [vmem:[#allocation6_spill] sm:$0xff] %v5263_v8  ;;  %v1261_v44 = vshrl.u32 %v5146_v12, 16  ;;  %v1257_v37 = vshll.u32 %v5146_v12, 16  ;;  %v1253_v11 = vrot.slane %v1251_v50, 5  ;;  %v3792_v17 = vcombine.low %v1439_v58, %v1442_v39 }
  0x72   : > { %4224 = vmatprep.mubr.msk.bf16.mxu1 %vm906_vm6, %v5253_v47  ;;  %v5275_v6 = vcombine.low %v5124_v3, %v5130_v30  ;;  %v510_v53 = vsel %vm4746_vm5, %v505_v28, %v509_v20  ;;  %v520_v32 = vsel %vm4746_vm5, %v515_v42, %v519_v36  ;;  %v1267_v54 = vshll.u32 %v5149_v18, 16 }
  0x73   : > { %v5282_v1 = vrot.slane %v1257_v37, 5  ;;  %v1263_v41 = vrot.slane %v1261_v44, 4  ;;  %v5288_v48 = vcombine.low %v510_v53, %v520_v32  ;;  %v5295_v20 = vcombine.low %v5167_v31, %v5179_v35 }
  0x74   : > { %1537 = vrot.lane.b32.xlu1 %v4974_v7, %s4526_s10  ;;  %1597 = vrot.lane.b32.xlu0 %v5215_v40, %s4526_s10  ;;  %v1248_v7 = vshrl.u32 %v5133_v4, 16  ;;  %6509 = vst [vmem:[#allocation7_spill] sm:$0xff] %v5275_v6  ;;  %v1376_v59 = vshrl.u32 %v5167_v31, 16  ;;  %v1379_v18 = vshll.u32 %v5167_v31, 16  ;;  %v3718_v50 = vrot.slane %v5124_v3, 9 }
  0x75   : > { %v1385_v58 = vshll.u32 %v5179_v35, 16  ;;  %v1389_v39 = vshrl.u32 %v5179_v35, 16  ;;  %v1264_v28 = vor.u32 %v1263_v41, %v5282_v1  ;;  %v1395_v44 = vshll.u32 %v5182_v38, 16 }
  0x76   : > { %v1250_v55 = vrot.slane %v1248_v7, 4  ;;  %v1269_v7 = vrot.slane %v1267_v54, 5  ;;  %v1378_v42 = vrot.slane %v1376_v59, 4  ;;  %v1381_v36 = vrot.slane %v1379_v18, 5  ;;  %v5319_v18 = vld [vmem:[%s4621_s26 + $0x50] sm:$0x1] }
  0x77   : > { %4225 = vmatmul.mubr.msk.bf16.gmra.mrb[12].mxu1 %vm906_vm6, %v3792_v17  ;;  %v633_v37 = vrot.slane %v5130_v30, 5  ;;  %v522_v17 = vshrl.u32 %v5285_v24, 16  ;;  %v525_v3 = vshll.u32 %v5285_v24, 16  ;;  %v535_v53 = vshrl.u32 %v5291_v62, 16 }
  0x78   : > { %1556 = vrot.lane.b32.xlu1 %v5024_v46, %s4525_s29  ;;  %1616 = vrot.lane.b32.xlu0 %v5223_v43, %s4525_s29  ;;  %v1254_v14 = vor.u32 %v1253_v11, %v1250_v55  ;;  %v1387_v55 = vrot.slane %v1385_v58, 5  ;;  %v1391_v11 = vrot.slane %v1389_v39, 4  ;;  %v1382_v32 = vor.u32 %v1381_v36, %v1378_v42 }
  0x79   : > { %v531_v35 = vshll.u32 %v5291_v62, 16  ;;  %v1397_v30 = vrot.slane %v1395_v44, 5  ;;  %v1265_v54 = vrot.slane %v1264_v28, 4  ;;  %v636_v59 = vrot.slane %v5185_v45, 5 }
  0x7a   : > { %v1255_v31 = vrot.slane %v1254_v14, 4  ;;  %v1392_v38 = vor.u32 %v1391_v11, %v1387_v55  ;;  %v1383_v41 = vrot.slane %v1382_v32, 4  ;;  %v635_v14 = vrot.slane %v633_v37, 4 }
  0x7b   : > { %v5323_v39 = vcombine.low %v5133_v4, %v5146_v12  ;;  %v524_v42 = vrot.slane %v522_v17, 4  ;;  %v527_v36 = vrot.slane %v525_v3, 5  ;;  %v634_v28 = vsel %vm4659_vm4, %v3718_v50, %v633_v37 }
  0x7c   : > { %774 = vrot.lane.b32.xlu1 %v4992_v22, %s4527_s27  ;;  %855 = vrot.lane.b32.xlu0 %v5263_v8, %s4527_s27  ;;  %v1393_v58 = vrot.slane %v1392_v38, 4  ;;  %v1260_v45 = vsel %vm4746_vm5, %v1255_v31, %v5282_v1  ;;  %v537_v4 = vrot.slane %v535_v53, 4  ;;  %v1270_v44 = vsel %vm4746_vm5, %v1265_v54, %v1269_v7 }
  0x7d   : > { %v637_v3 = vsel %vm4659_vm4, %v635_v14, %v636_v59  ;;  %v1410_v1 = vshrl.u32 %v5191_v23, 16  ;;  %v1413_v50 = vshll.u32 %v5191_v23, 16  ;;  %v1419_v31 = vshll.u32 %v5194_v5, 16 }
  0x7e   : > { %v1398_v12 = vsel %vm4746_vm5, %v1393_v58, %v1397_v30  ;;  %v528_v37 = vor.u32 %v527_v36, %v524_v42  ;;  %v541_v53 = vshll.u32 %v5319_v18, 16  ;;  %v1423_v7 = vshrl.u32 %v5194_v5, 16 }
  0x7f   : > { %v5356_v32 = vcombine.low %v1260_v45, %v1270_v44  ;;  %v1415_v38 = vrot.slane %v1413_v50, 5  ;;  %v1421_v30 = vrot.slane %v1419_v31, 5  ;;  %v5358_v59 = vcombine.low %v634_v28, %v637_v3 }
  0x80   : > { %814 = vrot.lane.b32.xlu1 %v5091_v27, %s4526_s10  ;;  %874 = vrot.lane.b32.xlu0 %v5275_v6, %s4526_s10  ;;  %v1388_v27 = vsel %vm4746_vm5, %v1383_v41, %v1387_v55  ;;  %v533_v55 = vrot.slane %v531_v35, 5  ;;  %v1412_v35 = vrot.slane %v1410_v1, 4  ;;  %v1425_v41 = vrot.slane %v1423_v7, 4 }
  0x81   : > { %v5340_v11 = vcombine.low %v1388_v27, %v1398_v12  ;;  %v1429_v27 = vshll.u32 %v5201_v19, 16  ;;  %6510 = vst [vmem:[#allocation8_spill] sm:$0xff] %v5358_v59  ;;  %v543_v58 = vrot.slane %v541_v53, 5  ;;  %v529_v19 = vrot.slane %v528_v37, 4 }
  0x82   : > { %v538_v54 = vor.u32 %v537_v4, %v533_v55  ;;  %v1416_v14 = vor.u32 %v1415_v38, %v1412_v35  ;;  %v1426_v42 = vor.u32 %v1425_v41, %v1421_v30  ;;  %v1272_v45 = vshrl.u32 %v5155_v16, 16 }
  0x83   : > { %v1431_v36 = vrot.slane %v1429_v27, 5  ;;  %v1275_v4 = vshll.u32 %v5155_v16, 16  ;;  %v1281_v3 = vshll.u32 %v5159_v33, 16  ;;  %v1285_v1 = vshrl.u32 %v5159_v33, 16 }
  0x84   : > { %833 = vrot.lane.b32.xlu1 %v5111_v61, %s4525_s29  ;;  %893 = vrot.lane.b32.xlu0 %v5288_v48, %s4525_s29  ;;  %v1417_v12 = vrot.slane %v1416_v14, 4  ;;  %v539_v28 = vrot.slane %v538_v54, 4  ;;  %v1427_v50 = vrot.slane %v1426_v42, 4  ;;  %v5380_v37 = vcombine.low %v5285_v24, %v5291_v62 }
  0x85   : > { %v1274_v7 = vrot.slane %v1272_v45, 4  ;;  %v1277_v27 = vrot.slane %v1275_v4, 5  ;;  %v534_v38 = vsel %vm4746_vm5, %v529_v19, %v533_v55  ;;  %v1283_v54 = vrot.slane %v1281_v3, 5  ;;  %v5398_v19 = vld [vmem:[%s4621_s26 + $0x54] sm:$0xf] }
  0x86   : > { %v1422_v31 = vsel %vm4746_vm5, %v1417_v12, %v1421_v30  ;;  %v1432_v53 = vsel %vm4746_vm5, %v1427_v50, %v1431_v36  ;;  %v544_v30 = vsel %vm4746_vm5, %v539_v28, %v543_v58  ;;  %v1287_v41 = vrot.slane %v1285_v1, 4  ;;  %v5403_v12 = vld [vmem:[%s4621_s26 + $0x58] sm:$0xf] }
  0x87   : > { %v5382_v35 = vcombine.low %v1422_v31, %v1432_v53  ;;  %v5394_v36 = vcombine.low %v534_v38, %v544_v30  ;;  %v1278_v45 = vor.u32 %v1277_v27, %v1274_v7  ;;  %v1291_v55 = vshll.u32 %v5162_v25, 16 }
  0x88   : > { %1499 = vrot.lane.b32.xlu1 %v5063_v13, %s4527_s27  ;;  %1580 = vrot.lane.b32.xlu0 %v5113_v63, %s4527_s27  ;;  %v1288_v4 = vor.u32 %v1287_v41, %v1283_v54  ;;  %v640_v3 = vrot.slane %v5291_v62, 5  ;;  %v546_v1 = vshrl.u32 %v5398_v19, 16  ;;  %v549_v50 = vshll.u32 %v5398_v19, 16 }
  0x89   : > { %v1279_v28 = vrot.slane %v1278_v45, 4  ;;  %v1293_v53 = vrot.slane %v1291_v55, 5  ;;  %v559_v7 = vshrl.u32 %v5403_v12, 16  ;;  %v555_v27 = vshll.u32 %v5403_v12, 16 }
  0x8a   : > { %v1289_v31 = vrot.slane %v1288_v4, 4  ;;  %v5418_v30 = vcombine.low %v5155_v16, %v5159_v33  ;;  %v3719_v41 = vrot.slane %v5285_v24, 9  ;;  %v643_v45 = vrot.slane %v5319_v18, 5 }
  0x8b   : > { %v548_v4 = vrot.slane %v546_v1, 4  ;;  %v551_v16 = vrot.slane %v549_v50, 5  ;;  %v557_v18 = vrot.slane %v555_v27, 5  ;;  %v561_v17 = vrot.slane %v559_v7, 4 }
  0x8c   : > { %1539 = vrot.lane.b32.xlu1 %v5037_v57, %s4526_s10  ;;  %1599 = vrot.lane.b32.xlu0 %v5323_v39, %s4526_s10  ;;  %v1294_v55 = vsel %vm4746_vm5, %v1289_v31, %v1293_v53  ;;  %v4479_v53 = vld [vmem:[%s4694_s14] sm:$0xf] }
  0x8d   : > { %v552_v50 = vor.u32 %v551_v16, %v548_v4  ;;  %v562_v31 = vor.u32 %v561_v17, %v557_v18 }
  0x8f   : > { %v5364_v57 = vpop.permute.xlu1 %827 }
  0x90   : > { %1558 = vrot.lane.b32.xlu1 %v5215_v40, %s4525_s29  ;;  %1618 = vrot.lane.b32.xlu0 %v5356_v32, %s4525_s29  ;;  %v869_v44 = vpop.permute.xlu0 %868 }
  0x94   : > { %776 = vrot.lane.b32.xlu1 %v5142_v9, %s4527_s27  ;;  %857 = vrot.lane.b32.xlu0 %v5358_v59, %s4527_s27 }
  0x97   : > { %v5388_v14 = vpop.permute.xlu1 %1591  ;;  %v850_v42 = vpop.permute.xlu0 %849 }
  0x98   : > { %816 = vrot.lane.b32.xlu1 %v5263_v8, %s4526_s10  ;;  %876 = vrot.lane.b32.xlu0 %v5380_v37, %s4526_s10  ;;  %v975_v38 = vsel %vm906_vm6, %v4941_v49, %v850_v42  ;;  %v1284_v49 = vsel %vm4746_vm5, %v1279_v28, %v1283_v54  ;;  %v642_v42 = vrot.slane %v640_v3, 4 }
  0x99   : > { %v998_v24 = vsel %vm931_vm7, %v975_v38, %v869_v44  ;;  %v5439_v54 = vcombine.low %v1284_v49, %v1294_v55  ;;  %v641_v44 = vsel %vm4659_vm4, %v3719_v41, %v640_v3  ;;  %v4481_v3 = vld [vmem:[%s4621_s26] sm:$0xf]  ;;  %v4482_v41 = vld [vmem:[%s4621_s26 + $0x4] sm:$0xf] }
  0x9a   : > { %v644_v1 = vsel %vm4659_vm4, %v642_v42, %v643_v45  ;;  %v3723_v49 = vcombine.low %v4481_v3, %v4482_v41  ;;  %v553_v45 = vrot.slane %v552_v50, 4  ;;  %v563_v42 = vrot.slane %v562_v31, 4 }
  0x9b   : > { %v5400_v58 = vpop.permute.xlu1 %1550  ;;  %v5452_v38 = vcombine.low %v641_v44, %v644_v1 }
  0x9c   : > { %835 = vrot.lane.b32.xlu1 %v5275_v6, %s4525_s29  ;;  %895 = vrot.lane.b32.xlu0 %v5394_v36, %s4525_s29  ;;  %v5433_v6 = vld [vmem:[%s4621_s26 + $0x5c] sm:$0x1] }
  0x9d   : > { %v1573_v25 = vpop.permute.xlu0 %1572  ;;  %6511 = vst [vmem:[#allocation9_spill] sm:$0xff] %v5452_v38 }
  0x9e   : > { %v1695_v4 = vsel %vm906_vm6, %v4884_v51, %v1573_v25  ;;  %v558_v51 = vsel %vm4746_vm5, %v553_v45, %v557_v18  ;;  %v5488_v18 = vld [vmem:[%s4621_s26 + $0x60] sm:$0xf] }
  0x9f   : > { %v809_v62 = vpop.permute.xlu1 %808  ;;  %v1718_v50 = vsel %vm931_vm7, %v1695_v4, %v5388_v14 }
  0xa0   : > { %1501 = vrot.lane.b32.xlu1 %v5223_v43, %s4527_s27  ;;  %1582 = vrot.lane.b32.xlu0 %v5217_v26, %s4527_s27 }
  0xa1   : > { %v888_v33 = vpop.permute.xlu0 %887 }
  0xa2   : > { %v1014_v8 = vsel %vm948_vm8, %v998_v24, %v888_v33  ;;  %v5466_v24 = vcombine.low %v5398_v19, %v5403_v12 }
  0xa3   : > { %2284 = vmatprep.mubr.bf16.mxu1 %v1014_v8  ;;  %v1532_v28 = vpop.permute.xlu1 %1531  ;;  %v565_v8 = vshll.u32 %v5433_v6, 16 }
  0xa4   : > { %1541 = vrot.lane.b32.xlu1 %v5113_v63, %s4526_s10  ;;  %1601 = vrot.lane.b32.xlu0 %v5418_v30, %s4526_s10  ;;  %v4480_v63 = vld [vmem:[%s4694_s14 + $0x4] sm:$0xf]  ;;  %s323_s14 = sadd.s32 2, %s4507_s18  ;;  %s6554_s18 = smov (!%p336_p9, %s4507_s18), 3 }
  0xa5   : > { %v3763_v7 = vcombine.low %v4479_v53, %v4480_v63  ;;  %v567_v17 = vrot.slane %v565_v8, 5  ;;  %v5491_v63 = vld [vmem:[%s4621_s26 + $0x64] sm:$0xf]  ;;  %p5503_p8 = scmp.lt.s32.totalorder %s323_s14, 5 }
  0xa6   : > { %v666_v3 = vshrl.u32 %v5491_v63, 16  ;;  %v662_v41 = vshll.u32 %v5491_v63, 16 }
  0xa7   : > { %v568_v25 = vsel %vm4746_vm5, %v563_v42, %v567_v17  ;;  %v3720_v42 = vrot.slane %v5398_v19, 9  ;;  %v650_v17 = vrot.slane %v5433_v6, 5  ;;  %s6552_s14 = smov (!%p5503_p8, %s323_s14), 5 }
  0xa8   : > { %1560 = vrot.lane.b32.xlu1 %v5323_v39, %s4525_s29  ;;  %1620 = vrot.lane.b32.xlu0 %v5439_v54, %s4525_s29  ;;  %v1492_v27 = vpop.permute.xlu0 %1491  ;;  %v668_v19 = vrot.slane %v666_v3, 4  ;;  %s4351_s9 = smul.u32 30, %s6552_s14 }
  0xa9   : > { %v1631_v16 = vsel %vm906_vm6, %v3763_v7, %v1492_v27  ;;  %v647_v7 = vrot.slane %v5403_v12, 5  ;;  %v653_v27 = vshrl.u32 %v5488_v18, 16 }
  0xaa   : > { %v1654_v31 = vsel %vm931_vm7, %v1631_v16, %v1532_v28  ;;  %s330_s12 = sadd.s32 %s4351_s9, %s4601_s30 }
  0xab   : > { %v769_v33 = vpop.permute.xlu1 %768  ;;  %v1670_v14 = vsel %vm948_vm8, %v1654_v31, %v5400_v58  ;;  %v656_v58 = vshll.u32 %v5488_v18, 16  ;;  %v649_v12 = vrot.slane %v647_v7, 4  ;;  %v655_v4 = vrot.slane %v653_v27, 4  ;;  %v4457_v27 = vld [vmem:[%s6481_s3 + $0x160] sm:$0xff]   ;;  %s3709_s30 = sshll.u32 %s330_s12, 2 }
  0xac   : > { %778 = vrot.lane.b32.xlu1 %v5288_v48, %s4527_s27  ;;  %859 = vrot.lane.b32.xlu0 %v5452_v38, %s4527_s27  ;;  %v909_v55 = vsel %vm906_vm6, %v3723_v49, %v769_v33  ;;  %s5586_s7 = scalar_lea.vmem %s6480_s2, %s3709_s30 }
  0xad   : > { %v933_v44 = vsel %vm931_vm7, %v909_v55, %v809_v62  ;;  %v5483_v62 = vcombine.low %v558_v51, %v568_v25  ;;  %v658_v16 = vrot.slane %v656_v58, 5  ;;  %4134 = vmatprep.subr.bf16.mxu0 %v4457_v27 }
  0xae   : > { %v1611_v1 = vpop.permute.xlu0 %1610  ;;  %v950_v8 = vsel %vm948_vm8, %v933_v44, %v5364_v57  ;;  %v5517_v44 = vrot.slane %v662_v41, 5 }
  0xaf   : > { %v1734_v53 = vsel %vm948_vm8, %v1718_v50, %v1611_v1  ;;  %2285 = vmatmul.mubr.bf16.vlgmr.msra.gmra.mrb[16].mxu1 %v950_v8  ;;  %v5523_v50 = vld [vmem:[%s4621_s26 + $0x68] sm:$0x1] }
  0xb0   : > { %818 = vrot.lane.b32.xlu1 %v5358_v59, %s4526_s10  ;;  %878 = vrot.lane.b32.xlu0 %v5466_v24, %s4526_s10 }
  0xb1   : > { %1958 = vmatprep.mubr.bf16.mxu0 %v1734_v53  ;;  %v659_v53 = vor.u32 %v658_v16, %v655_v4  ;;  %v5563_v4 = vld [vmem:[%s4621_s26 + $0x70] sm:$0xf]  ;;  %v4460_v16 = vld [vmem:[%s6481_s3 + $0x80] sm:$0xff]  }
  0xb2   : > { %1959 = vmatmul.mubr.bf16.vlgmr.msra.gmra.mrb[0].mxu0 %v1670_v14  ;;  %v1494_v28 = vpop.permute.xlu1 %1493  ;;  %v1575_v57 = vpop.permute.xlu0 %1574  ;;  %v669_v14 = vor.u32 %v668_v19, %v5517_v44  ;;  %4228 = vmatprep.subr.bf16.mxu1 %v4460_v16 }
  0xb3   : > { %v1634_v33 = vsel %vm906_vm6, %v4739_v60, %v1494_v28  ;;  %v1698_v55 = vsel %vm906_vm6, %v4854_v34, %v1575_v57  ;;  %v648_v60 = vsel %vm4659_vm4, %v3720_v42, %v647_v7  ;;  %v651_v34 = vsel %vm4659_vm4, %v649_v12, %v650_v17  ;;  %v4459_v42 = vld [vmem:[%s6481_s3 + $0x120] sm:$0xff]   ;;  %v5552_v12 = vld [vmem:[%s4621_s26 + $0x6c] sm:$0xf]  ;;  %4229 = vmatpush3.bf16.msra.mxu1 %v4460_v16  ;;  %v5616_v16 = vld [vmem:[%s4621_s26 + $0x74] sm:$0x1] }
  0xb4   : > { %837 = vrot.lane.b32.xlu1 %v5380_v37, %s4525_s29  ;;  %897 = vrot.lane.b32.xlu0 %v5483_v62, %s4525_s29  ;;  %v672_v28 = vshll.u32 %v5523_v50, 16  ;;  %v5542_v7 = vcombine.low %v648_v60, %v651_v34  ;;  %v660_v58 = vrot.slane %v659_v53, 4  ;;  %v670_v3 = vrot.slane %v669_v14, 4 }
  0xb5   : > { %v5560_v17 = vcombine.low %v5488_v18, %v5491_v63  ;;  %4135 = vmatpush3.bf16.msra.mxu0 %v4459_v42  ;;  %v690_v60 = vshll.u32 %v5552_v12, 16  ;;  %v696_v34 = vshll.u32 %v5563_v4, 16  ;;  %v681_v42 = vrot.slane %v5491_v63, 5 }
  0xb6   : > { %v1534_v49 = vpop.permute.xlu1 %1533  ;;  %v1594_v45 = vpop.permute.xlu0 %1593  ;;  %v674_v41 = vrot.slane %v672_v28, 5  ;;  %v665_v19 = vsel %vm4746_vm5, %v660_v58, %v5517_v44  ;;  %v4461_v44 = vld [vmem:[%s6481_s3 + $0x168] sm:$0xff]  }
  0xb7   : > { %v1720_v51 = vsel %vm931_vm7, %v1698_v55, %v1594_v45  ;;  %v1656_v31 = vsel %vm931_vm7, %v1634_v33, %v1534_v49  ;;  %4136 = vmatprep.subr.bf16.mxu0 %v4461_v44  ;;  %v692_v58 = vrot.slane %v690_v60, 5  ;;  %v683_v44 = vrot.slane %v681_v42, 4 }
  0xb8   : > { %1503 = vrot.lane.b32.xlu1 %v5356_v32, %s4527_s27  ;;  %1584 = vrot.lane.b32.xlu0 %v5239_v56, %s4527_s27 }
  0xba   : > { %v1553_v25 = vpop.permute.xlu1 %1552  ;;  %v1613_v1 = vpop.permute.xlu0 %1612 }
  0xbb   : > { %v1737_v6 = vsel %vm948_vm8, %v1720_v51, %v1613_v1  ;;  %v1673_v8 = vsel %vm948_vm8, %v1656_v31, %v1553_v25  ;;  %v675_v51 = vsel %vm4746_vm5, %v670_v3, %v674_v41  ;;  %v687_v31 = vshrl.u32 %v5552_v12, 16  ;;  %v5603_v3 = vld [vmem:[%s5586_s7] sm:$0xf] }
  0xbc   : > { %1543 = vrot.lane.b32.xlu1 %v5217_v26, %s4526_s10  ;;  %1603 = vrot.lane.b32.xlu0 %v5295_v20, %s4526_s10  ;;  %v5599_v14 = vcombine.low %v665_v19, %v675_v51  ;;  %v5605_v41 = vrot.slane %v696_v34, 5  ;;  %v2480_v19 = vshll.u32 %v5603_v3, 16  ;;  %v4464_v51 = vld [vmem:[%s6481_s3 + $0x130] sm:$0xff]   ;;  %v3721_v34 = vrot.slane %v5488_v18, 9 }
  0xbd   : > { %1966 = vmatprep.mubr.bf16.mxu0 %v1737_v6  ;;  %v689_v27 = vrot.slane %v687_v31, 4 }
  0xbe   : > { %1967 = vmatmul.mubr.bf16.gmra.mrb[4].mxu0 %v1673_v8  ;;  %v771_v26 = vpop.permute.xlu1 %770  ;;  %v852_v57 = vpop.permute.xlu0 %851  ;;  %v4462_v8 = vld [vmem:[%s6481_s3 + $0x128] sm:$0xff]   ;;  %6513 = vst [vmem:[#allocation10_spill] sm:$0xff] %v5599_v14 }
  0xbf   : > { %v912_v33 = vsel %vm906_vm6, %v4635_v10, %v771_v26  ;;  %v978_v55 = vsel %vm906_vm6, %v4785_v2, %v852_v57  ;;  %v700_v2 = vshrl.u32 %v5563_v4, 16  ;;  %4137 = vmatpush3.bf16.msra.mxu0 %v4462_v8  ;;  %v684_v8 = vrot.slane %v5523_v50, 5 }
  0xc0   : > { %1562 = vrot.lane.b32.xlu1 %v5418_v30, %s4525_s29  ;;  %1622 = vrot.lane.b32.xlu0 %v5340_v11, %s4525_s29 }
  0xc2   : > { %v811_v49 = vpop.permute.xlu1 %810  ;;  %v871_v45 = vpop.permute.xlu0 %870 }
  0xc3   : > { %v1000_v25 = vsel %vm931_vm7, %v978_v55, %v871_v45  ;;  %v935_v53 = vsel %vm931_vm7, %v912_v33, %v811_v49  ;;  %v702_v49 = vrot.slane %v700_v2, 4  ;;  %v5608_v45 = vld [vmem:[%s5586_s7 + $0x4] sm:$0xf]  ;;  %v4463_v33 = vld [vmem:[%s6481_s3 + $0x170] sm:$0xff]   ;;  %v2477_v55 = vshrl.u32 %v5603_v3, 16  ;;  %v4465_v2 = vld [vmem:[%s6481_s3 + $0x178] sm:$0xff]  }
  0xc4   : > { %780 = vrot.lane.b32.xlu1 %v5394_v36, %s4527_s27  ;;  %861 = vrot.lane.b32.xlu0 %v5542_v7, %s4527_s27  ;;  %v2486_v63 = vshll.u32 %v5608_v45, 16  ;;  %v2490_v31 = vshrl.u32 %v5608_v45, 16 }
  0xc5   : > { %4138 = vmatprep.subr.bf16.mxu0 %v4463_v33  ;;  %v703_v60 = vor.u32 %v702_v49, %v5605_v41  ;;  %v2482_v49 = vrot.slane %v2480_v19, 5  ;;  %v4467_v19 = vld [vmem:[%s6481_s3 + $0x180] sm:$0xff]  }
  0xc6   : > { %v830_v1 = vpop.permute.xlu1 %829  ;;  %v890_v6 = vpop.permute.xlu0 %889  ;;  %4139 = vmatpush3.bf16.msra.mxu0 %v4464_v51 }
  0xc7   : > { %v1017_v10 = vsel %vm948_vm8, %v1000_v25, %v890_v6  ;;  %v953_v28 = vsel %vm948_vm8, %v935_v53, %v830_v1  ;;  %v693_v6 = vor.u32 %v692_v58, %v689_v27  ;;  %v5644_v27 = vld [vmem:[%s5586_s7 + $0x8] sm:$0x1]  ;;  %v2479_v58 = vrot.slane %v2477_v55, 4  ;;  %4140 = vmatprep.subr.bf16.mxu0 %v4465_v2 }
  0xc8   : > { %820 = vrot.lane.b32.xlu1 %v5452_v38, %s4526_s10  ;;  %880 = vrot.lane.b32.xlu0 %v5560_v17, %s4526_s10 }
  0xc9   : > { %2292 = vmatprep.mubr.bf16.mxu1 %v1017_v10  ;;  %v706_v10 = vshll.u32 %v5616_v16, 16  ;;  %v694_v51 = vrot.slane %v693_v6, 4  ;;  %v6514_v6 = vcombine.low %v5191_v23, %v5194_v5  ;;  %v2483_v2 = vor.u32 %v2482_v49, %v2479_v58  ;;  %v5676_v23 = vld [vmem:[%s5586_s7 + $0x1c] sm:$0xf]  ;;  %v4468_v5 = vld [vmem:[%s6481_s3 + $0x140] sm:$0xff]  }
  0xca   : > { %2293 = vmatmul.mubr.bf16.gmra.mrb[20].mxu1 %v953_v28  ;;  %v1496_v26 = vpop.permute.xlu1 %1495  ;;  %v1577_v57 = vpop.permute.xlu0 %1576  ;;  %v5693_v49 = vld [vmem:[%s5586_s7 + $0x14] sm:$0x1] }
  0xcb   : > { %v1637_v53 = vsel %vm906_vm6, %v4719_v52, %v1496_v26  ;;  %v1701_v28 = vsel %vm906_vm6, %v4932_v29, %v1577_v57  ;;  %v5650_v52 = vrot.slane %v2486_v63, 5  ;;  %v2492_v26 = vrot.slane %v2490_v31, 4 }
  0xcc   : > { %839 = vrot.lane.b32.xlu1 %v5466_v24, %s4525_s29  ;;  %899 = vrot.lane.b32.xlu0 %v5599_v14, %s4525_s29  ;;  %v704_v57 = vrot.slane %v703_v60, 4  ;;  %v708_v55 = vrot.slane %v706_v10, 5  ;;  %v682_v63 = vsel %vm4659_vm4, %v3721_v34, %v681_v42  ;;  %v2496_v31 = vshll.u32 %v5644_v27, 16  ;;  %v5667_v60 = vld [vmem:[%s5586_s7 + $0x10] sm:$0xf] }
  0xcd   : > { %v5670_v10 = vld [vmem:[%s5586_s7 + $0x18] sm:$0xf]  ;;  %v5765_v14 = vld [vmem:[%s5586_s7 + $0x24] sm:$0xf] }
  0xce   : > { %v1536_v25 = vpop.permute.xlu1 %1535  ;;  %v1596_v1 = vpop.permute.xlu0 %1595  ;;  %v709_v58 = vsel %vm4746_vm5, %v704_v57, %v708_v55  ;;  %v5711_v57 = vrot.slane %v2483_v2, 4 }
  0xcf   : > { %v1722_v18 = vsel %vm931_vm7, %v1701_v28, %v1596_v1  ;;  %v1658_v1 = vsel %vm931_vm7, %v1637_v53, %v1536_v25  ;;  %v699_v28 = vsel %vm4746_vm5, %v694_v51, %v5605_v41  ;;  %v2538_v51 = vshrl.u32 %v5676_v23, 16  ;;  %v4472_v53 = vld [vmem:[%s6481_s3 + $0x88] sm:$0xff]  }
  0xd0   : > { %1505 = vrot.lane.b32.xlu1 %v5439_v54, %s4527_s27  ;;  %1586 = vrot.lane.b32.xlu0 %v5253_v47, %s4527_s27  ;;  %v4466_v47 = vld [vmem:[%s6481_s3 + $0x138] sm:$0xff]  }
  0xd1   : > { %4141 = vmatpush3.bf16.msra.mxu0 %v4466_v47  ;;  %v2701_v47 = vrot.slane %v5667_v60, 5  ;;  %4230 = vmatprep.subr.bf16.mxu1 %v4472_v53 }
  0xd2   : > { %v1555_v33 = vpop.permute.xlu1 %1554  ;;  %v1615_v50 = vpop.permute.xlu0 %1614  ;;  %4142 = vmatprep.subr.bf16.mxu0 %v4467_v19  ;;  %v4471_v19 = vld [vmem:[%s6481_s3 + $0x148] sm:$0xff]   ;;  %4231 = vmatpush3.bf16.msra.mxu1 %v4472_v53  ;;  %v6516_v53 = vcombine.low %v5552_v12, %v5563_v4 }
  0xd3   : > { %v1740_v29 = vsel %vm948_vm8, %v1722_v18, %v1615_v50  ;;  %v1676_v25 = vsel %vm948_vm8, %v1658_v1, %v1555_v33  ;;  %v2525_v18 = vshrl.u32 %v5670_v10, 16  ;;  %v2528_v33 = vshll.u32 %v5670_v10, 16 }
  0xd4   : > { %1545 = vrot.lane.b32.xlu1 %v5239_v56, %s4526_s10  ;;  %1605 = vrot.lane.b32.xlu0 %v6514_v6, %s4526_s10  ;;  %v685_v56 = vsel %vm4659_vm4, %v683_v44, %v684_v8  ;;  %v2493_v44 = vor.u32 %v2492_v26, %v5650_v52  ;;  %v5688_v8 = vld [vmem:[%s5586_s7 + $0xc] sm:$0xf]  ;;  %v5704_v50 = vrot.slane %v2496_v31, 5  ;;  %v2534_v26 = vshll.u32 %v5676_v23, 16 }
  0xd5   : > { %1974 = vmatprep.mubr.bf16.mxu0 %v1740_v29  ;;  %4143 = vmatpush3.bf16.msra.mxu0 %v4468_v5  ;;  %v5702_v41 = vcombine.low %v682_v63, %v685_v56  ;;  %v4469_v29 = vld [vmem:[%s6481_s3 + $0x188] sm:$0xff]   ;;  %v5719_v63 = vcombine.low %v699_v28, %v709_v58  ;;  %v3881_v56 = vrot.slane %v5603_v3, 9  ;;  %v2703_v2 = vrot.slane %v2701_v47, 4  ;;  %v4473_v28 = vld [vmem:[%s6481_s3 + $0x190] sm:$0xff]   ;;  %v5735_v3 = vld [vmem:[%s5586_s7 + $0x20] sm:$0x1] }
  0xd6   : > { %1975 = vmatmul.mubr.bf16.gmra.mrb[8].mxu0 %v1676_v25  ;;  %v773_v42 = vpop.permute.xlu1 %772  ;;  %v854_v34 = vpop.permute.xlu0 %853  ;;  %v2494_v31 = vrot.slane %v2493_v44, 4  ;;  %v2704_v25 = vrot.slane %v5693_v49, 5  ;;  %4144 = vmatprep.subr.bf16.mxu0 %v4469_v29  ;;  %v2694_v5 = vrot.slane %v5608_v45, 5  ;;  %v2530_v55 = vrot.slane %v2528_v33, 5 }
  0xd7   : > { %6515 = vst [vmem:[#allocation11_spill] sm:$0xff] %v5702_v41  ;;  %v5737_v45 = vrot.slane %v2534_v26, 5  ;;  %v2540_v44 = vrot.slane %v2538_v51, 4  ;;  %v2501_v58 = vshrl.u32 %v5688_v8, 16  ;;  %v915_v33 = vsel %vm906_vm6, %v4645_v15, %v773_v42  ;;  %v4474_v51 = vld [vmem:[%s6481_s3 + $0x150] sm:$0xff]  }
  0xd8   : > { %1564 = vrot.lane.b32.xlu1 %v5295_v20, %s4525_s29  ;;  %1624 = vrot.lane.b32.xlu0 %v5382_v35, %s4525_s29  ;;  %v3882_v35 = vrot.slane %v5688_v8, 9  ;;  %v2527_v20 = vrot.slane %v2525_v18, 4  ;;  %v2504_v18 = vshll.u32 %v5688_v8, 16  ;;  %v981_v29 = vsel %vm906_vm6, %v4992_v22, %v854_v34 }
  0xd9   : > { %4145 = vmatpush3.bf16.msra.mxu0 %v4471_v19  ;;  %v2510_v19 = vshll.u32 %v5667_v60, 16  ;;  %v2489_v15 = vsel %vm4746_vm5, %v5711_v57, %v5650_v52  ;;  %v2499_v22 = vsel %vm4746_vm5, %v2494_v31, %v5704_v50  ;;  %v2503_v50 = vrot.slane %v2501_v58, 4  ;;  %v5776_v57 = vld [vmem:[%s5586_s7 + $0x28] sm:$0xf] }
  0xda   : > { %v813_v1 = vpop.permute.xlu1 %812  ;;  %v873_v6 = vpop.permute.xlu0 %872  ;;  %4146 = vmatprep.subr.bf16.mxu0 %v4473_v28  ;;  %v2702_v42 = vsel %vm4659_vm4, %v3882_v35, %v2701_v47  ;;  %v2696_v28 = vrot.slane %v2694_v5, 4  ;;  %v2541_v47 = vor.u32 %v2540_v44, %v5737_v45  ;;  %v4475_v35 = vld [vmem:[%s6481_s3 + $0x198] sm:$0xff]   ;;  %v2506_v31 = vrot.slane %v2504_v18, 5 }
  0xdb   : > { %v1002_v26 = vsel %vm931_vm7, %v981_v29, %v873_v6  ;;  %v2705_v6 = vsel %vm4659_vm4, %v2703_v2, %v2704_v25  ;;  %v2544_v29 = vshll.u32 %v5735_v3, 16  ;;  %v937_v52 = vsel %vm931_vm7, %v915_v33, %v813_v1 }
  0xdc   : > { %782 = vrot.lane.b32.xlu1 %v5483_v62, %s4527_s27  ;;  %863 = vrot.lane.b32.xlu0 %v5702_v41, %s4527_s27  ;;  %v2514_v41 = vshrl.u32 %v5667_v60, 16  ;;  %v5782_v25 = vrot.slane %v2510_v19, 5  ;;  %v3899_v58 = vcombine.low %v2489_v15, %v2499_v22  ;;  %v2695_v33 = vsel %vm4659_vm4, %v3881_v56, %v2694_v5 }
  0xdd   : > { %4147 = vmatpush3.bf16.msra.mxu0 %v4474_v51  ;;  %v2549_v51 = vshrl.u32 %v5765_v14, 16  ;;  %v2562_v19 = vshrl.u32 %v5776_v57, 16  ;;  %v2542_v5 = vrot.slane %v2541_v47, 4  ;;  %v2546_v15 = vrot.slane %v2544_v29, 5 }
  0xde   : > { %v832_v38 = vpop.permute.xlu1 %831  ;;  %v892_v59 = vpop.permute.xlu0 %891  ;;  %v2516_v2 = vrot.slane %v2514_v41, 4  ;;  %4148 = vmatprep.subr.bf16.mxu0 %v4475_v35  ;;  %v6517_v41 = vrot.slane %v5644_v27, 5  ;;  %v2708_v22 = vrot.slane %v5676_v23, 5  ;;  %v2507_v27 = vor.u32 %v2506_v31, %v2503_v50 }
  0xdf   : > { %v1020_v34 = vsel %vm948_vm8, %v1002_v26, %v892_v59  ;;  %v2531_v59 = vor.u32 %v2530_v55, %v2527_v20  ;;  %v956_v1 = vsel %vm948_vm8, %v937_v52, %v832_v38  ;;  %v4476_v55 = vld [vmem:[%s6481_s3 + $0x158] sm:$0xff]   ;;  %v2552_v26 = vshll.u32 %v5765_v14, 16 }
  0xe0   : > { %822 = vrot.lane.b32.xlu1 %v5542_v7, %s4526_s10  ;;  %882 = vrot.lane.b32.xlu0 %v6516_v53, %s4526_s10  ;;  %v5791_v38 = vcombine.low %v2702_v42, %v2705_v6  ;;  %v2698_v18 = vsel %vm4659_vm4, %v2696_v28, %v6517_v41  ;;  %v2517_v42 = vor.u32 %v2516_v2, %v5782_v25  ;;  %v6518_v52 = vshll.u32 %v5693_v49, 16  ;;  %v5824_v2 = vld [vmem:[%s5586_s7 + $0x2c] sm:$0x1] }
  0xe1   : > { %2300 = vmatprep.mubr.bf16.mxu1 %v1020_v34  ;;  %v2558_v34 = vshll.u32 %v5776_v57, 16  ;;  %4149 = vmatpush3.bf16.msra.mxu0 %v4476_v55  ;;  %v2532_v56 = vrot.slane %v2531_v59, 4  ;;  %v2551_v35 = vrot.slane %v2549_v51, 4  ;;  %v3907_v59 = vcombine.low %v2695_v33, %v2698_v18 }
  0xe2   : > { %2301 = vmatmul.mubr.bf16.gmra.mrb[24].mxu1 %v956_v1  ;;  %v1498_v20 = vpop.permute.xlu1 %1497  ;;  %v1579_v44 = vpop.permute.xlu0 %1578  ;;  %v2522_v53 = vrot.slane %v6518_v52, 5  ;;  %v3883_v29 = vrot.slane %v5670_v10, 9  ;;  %v2564_v50 = vrot.slane %v2562_v19, 4  ;;  %v2710_v1 = vrot.slane %v2708_v22, 4 }
  0xe3   : > { %v5812_v47 = vrot.slane %v2558_v34, 5  ;;  %v2537_v49 = vsel %vm4746_vm5, %v2532_v56, %v5737_v45  ;;  %v2711_v31 = vrot.slane %v5735_v3, 5  ;;  %v2508_v33 = vrot.slane %v2507_v27, 4 }
  0xe4   : > { %841 = vrot.lane.b32.xlu1 %v5560_v17, %s4525_s29  ;;  %901 = vrot.lane.b32.xlu0 %v5719_v63, %s4525_s29  ;;  %v5809_v17 = vcombine.low %v5670_v10, %v5676_v23  ;;  %v2554_v63 = vrot.slane %v2552_v26, 5  ;;  %v2547_v23 = vsel %vm4746_vm5, %v2542_v5, %v2546_v15  ;;  %v6519_v10 = vld [vmem:[#allocation2_spill] sm:$0xff]  ;;  %v2518_v51 = vrot.slane %v2517_v42, 4  ;;  %v5847_v5 = vld [vmem:[%s5586_s7 + $0x30] sm:$0xf] }
  0xe5   : > { %v1640_v55 = vsel %vm906_vm6, %v6519_v10, %v1498_v20  ;;  %v5834_v3 = vcombine.low %v5688_v8, %v5667_v60  ;;  %v2565_v20 = vor.u32 %v2564_v50, %v5812_v47  ;;  %v2568_v34 = vshll.u32 %v5824_v2, 16  ;;  %v5858_v42 = vld [vmem:[%s5586_s7 + $0x34] sm:$0xf] }
  0xe6   : > { %v1538_v6 = vpop.permute.xlu1 %1537  ;;  %v1598_v28 = vpop.permute.xlu0 %1597  ;;  %v2555_v18 = vor.u32 %v2554_v63, %v2551_v35  ;;  %v2709_v56 = vsel %vm4659_vm4, %v3883_v29, %v2708_v22  ;;  %v2513_v8 = vsel %vm4746_vm5, %v2508_v33, %v5782_v25  ;;  %v2523_v15 = vsel %vm4746_vm5, %v2518_v51, %v2522_v53 }
  0xe7   : > { %v2712_v27 = vsel %vm4659_vm4, %v2710_v1, %v2711_v31  ;;  %v2715_v52 = vrot.slane %v5776_v57, 5  ;;  %v2566_v35 = vrot.slane %v2565_v20, 4  ;;  %v2570_v63 = vrot.slane %v2568_v34, 5 }
  0xe8   : > { %2864 = vrot.lane.b32.xlu1 %v3899_v58, %s4527_s27  ;;  %2945 = vrot.lane.b32.xlu0 %v5791_v38, %s4527_s27  ;;  %v1704_v58 = vsel %vm906_vm6, %v5063_v13, %v1579_v44  ;;  %v1660_v13 = vsel %vm931_vm7, %v1640_v55, %v1538_v6  ;;  %v5842_v44 = vcombine.low %v2537_v49, %v2547_v23  ;;  %v2576_v25 = vshll.u32 %v5847_v5, 16 }
  0xe9   : > { %v1724_v26 = vsel %vm931_vm7, %v1704_v58, %v1598_v28  ;;  %v2556_v28 = vrot.slane %v2555_v18, 4  ;;  %v5867_v53 = vcombine.low %v2513_v8, %v2523_v15  ;;  %v5869_v29 = vcombine.low %v2709_v56, %v2712_v27 }
  0xea   : > { %v1557_v45 = vpop.permute.xlu1 %1556  ;;  %v1617_v41 = vpop.permute.xlu0 %1616  ;;  %v2586_v50 = vshrl.u32 %v5858_v42, 16  ;;  %v2582_v49 = vshll.u32 %v5858_v42, 16  ;;  %v715_v23 = vrot.slane %v5563_v4, 5  ;;  %v3884_v1 = vrot.slane %v5765_v14, 9 }
  0xeb   : > { %v1743_v19 = vsel %vm948_vm8, %v1724_v26, %v1617_v41  ;;  %v1679_v60 = vsel %vm948_vm8, %v1660_v13, %v1557_v45  ;;  %v3722_v31 = vrot.slane %v5552_v12, 9  ;;  %v718_v10 = vrot.slane %v5616_v16, 5  ;;  %v5884_v41 = vld [vmem:[%s5586_s7 + $0x38] sm:$0x1] }
  0xec   : > { %2904 = vrot.lane.b32.xlu1 %v3907_v59, %s4526_s10  ;;  %2964 = vrot.lane.b32.xlu0 %v5809_v17, %s4526_s10  ;;  %v2573_v59 = vshrl.u32 %v5847_v5, 16  ;;  %v2717_v33 = vrot.slane %v2715_v52, 4  ;;  %v2718_v51 = vrot.slane %v5824_v2, 5  ;;  %v2561_v26 = vsel %vm4746_vm5, %v2556_v28, %v5812_v47  ;;  %v6520_v2 = vld [vmem:[#allocation4_spill] sm:$0xff] }
  0xed   : > { %1982 = vmatprep.mubr.bf16.mxu0 %v1743_v19  ;;  %v2571_v45 = vsel %vm4746_vm5, %v2566_v35, %v2570_v63  ;;  %v2578_v18 = vrot.slane %v2576_v25, 5  ;;  %v5892_v12 = vcombine.low %v5765_v14, %v5776_v57  ;;  %v5894_v16 = vrot.slane %v2582_v49, 5  ;;  %v5928_v63 = vld [vmem:[%s6481_s3 + $0x1a0] sm:$0xff]   ;;  %v5932_v25 = vld [vmem:[%s5586_s7 + $0x3c] sm:$0xf] }
  0xee   : > { %1983 = vmatmul.mubr.bf16.gmra.mrb[12].mxu0 %v1679_v60  ;;  %v775_v6 = vpop.permute.xlu1 %774  ;;  %v856_v22 = vpop.permute.xlu0 %855  ;;  %v2575_v4 = vrot.slane %v2573_v59, 4  ;;  %v2588_v47 = vrot.slane %v2586_v50, 4  ;;  %v2716_v34 = vsel %vm4659_vm4, %v3884_v1, %v2715_v52  ;;  %v717_v13 = vrot.slane %v715_v23, 4  ;;  %v5935_v49 = vld [vmem:[%s5586_s7 + $0x40] sm:$0xf]  ;;  %4248 = vmatprep.subr.bf16.mxu1 %v5928_v63 }
  0xef   : > { %v918_v19 = vsel %vm906_vm6, %v6520_v2, %v775_v6  ;;  %v984_v20 = vsel %vm906_vm6, %v5142_v9, %v856_v22  ;;  %v5903_v14 = vcombine.low %v2561_v26, %v2571_v45  ;;  %v2719_v57 = vsel %vm4659_vm4, %v2717_v33, %v2718_v51 }
  0xf0   : > { %2923 = vrot.lane.b32.xlu1 %v5834_v3, %s4525_s29  ;;  %2983 = vrot.lane.b32.xlu0 %v5842_v44, %s4525_s29  ;;  %v2592_v15 = vshll.u32 %v5884_v41, 16  ;;  %v2579_v9 = vor.u32 %v2578_v18, %v2575_v4  ;;  %v5911_v6 = vsel %vm4659_vm4, %v3722_v31, %v715_v23  ;;  %v5915_v22 = vsel %vm4659_vm4, %v717_v13, %v718_v10 }
  0xf1   : > { %v2589_v52 = vor.u32 %v2588_v47, %v5894_v16  ;;  %v5938_v23 = vcombine.low %v2716_v34, %v2719_v57  ;;  %v2722_v31 = vrot.slane %v5858_v42, 5  ;;  %v2600_v33 = vshll.u32 %v5932_v25, 16 }
  0xf2   : > { %v815_v55 = vpop.permute.xlu1 %814  ;;  %v875_v58 = vpop.permute.xlu0 %874  ;;  %v2594_v1 = vrot.slane %v2592_v15, 5  ;;  %v2580_v10 = vrot.slane %v2579_v9, 4  ;;  %v2610_v51 = vshrl.u32 %v5935_v49, 16  ;;  %v2606_v26 = vshll.u32 %v5935_v49, 16 }
  0xf3   : > { %v1004_v56 = vsel %vm931_vm7, %v984_v20, %v875_v58  ;;  %v939_v28 = vsel %vm931_vm7, %v918_v19, %v815_v55  ;;  %v2590_v55 = vrot.slane %v2589_v52, 4  ;;  %v2597_v58 = vshrl.u32 %v5932_v25, 16  ;;  %v5983_v52 = vld [vmem:[%s5586_s7 + $0x48] sm:$0xf] }
  0xf4   : > { %2866 = vrot.lane.b32.xlu1 %v5867_v53, %s4527_s27  ;;  %2947 = vrot.lane.b32.xlu0 %v5869_v29, %s4527_s27  ;;  %v5951_v18 = vcombine.low %v5847_v5, %v5858_v42  ;;  %v3885_v47 = vrot.slane %v5847_v5, 9  ;;  %v2724_v2 = vrot.slane %v2722_v31, 4  ;;  %v2725_v19 = vrot.slane %v5884_v41, 5 }
  0xf5   : > { %v2585_v20 = vsel %vm4746_vm5, %v2580_v10, %v5894_v16  ;;  %v2595_v42 = vsel %vm4746_vm5, %v2590_v55, %v2594_v1  ;;  %v2599_v34 = vrot.slane %v2597_v58, 4  ;;  %v2602_v13 = vrot.slane %v2600_v33, 5  ;;  %v2463_v16 = vld [vmem:[%s5586_s7 + $0x44] sm:$0x1] }
  0xf6   : > { %v834_v60 = vpop.permute.xlu1 %833  ;;  %v894_v8 = vpop.permute.xlu0 %893  ;;  %v2723_v9 = vsel %vm4659_vm4, %v3885_v47, %v2722_v31  ;;  %v2616_v1 = vshll.u32 %v2463_v16, 16  ;;  %v5987_v31 = vld [vmem:[%s5586_s7 + $0x4c] sm:$0xf]  ;;  %v2729_v58 = vrot.slane %v5935_v49, 5  ;;  %v2621_v33 = vshrl.u32 %v5983_v52, 16 }
  0xf7   : > { %v1023_v27 = vsel %vm948_vm8, %v1004_v56, %v894_v8  ;;  %v959_v59 = vsel %vm948_vm8, %v939_v28, %v834_v60  ;;  %v2608_v56 = vrot.slane %v2606_v26, 5  ;;  %v2612_v60 = vrot.slane %v2610_v51, 4 }
  0xf8   : > { %2906 = vrot.lane.b32.xlu1 %v5791_v38, %s4526_s10  ;;  %2966 = vrot.lane.b32.xlu0 %v5892_v12, %s4526_s10  ;;  %v2624_v51 = vshll.u32 %v5983_v52, 16 }
  0xf9   : > { %2308 = vmatprep.mubr.bf16.mxu1 %v1023_v27 }
  0xfa   : > { %2309 = vmatmul.mubr.bf16.gmra.mrb[28].mxu1 %v959_v59  ;;  %v1500_v38 = vpop.permute.xlu1 %1499  ;;  %v1581_v50 = vpop.permute.xlu0 %1580 }
  0xfb   : > { %v1643_v5 = vsel %vm906_vm6, %v5024_v46, %v1500_v38  ;;  %v1707_v41 = vsel %vm906_vm6, %v5223_v43, %v1581_v50  ;;  %v5978_v43 = vcombine.low %v2585_v20, %v2595_v42  ;;  %v2726_v46 = vsel %vm4659_vm4, %v2724_v2, %v2725_v19 }
  0xfc   : > { %2925 = vrot.lane.b32.xlu1 %v5809_v17, %s4525_s29  ;;  %2985 = vrot.lane.b32.xlu0 %v5903_v14, %s4525_s29  ;;  %v2603_v38 = vor.u32 %v2602_v13, %v2599_v34  ;;  %v2613_v50 = vor.u32 %v2612_v60, %v2608_v56  ;;  %v5996_v26 = vcombine.low %v2723_v9, %v2726_v46  ;;  %v2618_v19 = vrot.slane %v2616_v1, 5  ;;  %v6020_v46 = vld [vmem:[%s5586_s7 + $0x50] sm:$0x1] }
  0xfd   : > { %v3886_v34 = vrot.slane %v5932_v25, 9  ;;  %v2731_v13 = vrot.slane %v2729_v58, 4  ;;  %v2626_v60 = vrot.slane %v2624_v51, 5  ;;  %v6042_v51 = vld [vmem:[%s5586_s7 + $0x58] sm:$0xf] }
  0xfe   : > { %v1540_v45 = vpop.permute.xlu1 %1539  ;;  %v1600_v4 = vpop.permute.xlu0 %1599  ;;  %v2604_v47 = vrot.slane %v2603_v38, 4  ;;  %v2614_v2 = vrot.slane %v2613_v50, 4 }
  0xff   : > { %v1726_v8 = vsel %vm931_vm7, %v1707_v41, %v1600_v4  ;;  %v1662_v28 = vsel %vm931_vm7, %v1643_v5, %v1540_v45  ;;  %v2634_v45 = vshrl.u32 %v5987_v31, 16  ;;  %v2630_v4 = vshll.u32 %v5987_v31, 16 }
 0x100   : > { %2868 = vrot.lane.b32.xlu1 %v5842_v44, %s4527_s27  ;;  %2949 = vrot.lane.b32.xlu0 %v5938_v23, %s4527_s27  ;;  %v2732_v5 = vrot.slane %v2463_v16, 5  ;;  %v2623_v41 = vrot.slane %v2621_v33, 4  ;;  %v2609_v9 = vsel %vm4746_vm5, %v2604_v47, %v2608_v56 }
 0x102   : > { %v1559_v57 = vpop.permute.xlu1 %1558  ;;  %v1619_v15 = vpop.permute.xlu0 %1618  ;;  %v2627_v56 = vor.u32 %v2626_v60, %v2623_v41 }
 0x103   : > { %v1746_v27 = vsel %vm948_vm8, %v1726_v8, %v1619_v15  ;;  %v1682_v59 = vsel %vm948_vm8, %v1662_v28, %v1559_v57  ;;  %v6007_v8 = vcombine.low %v5932_v25, %v5935_v49  ;;  %v6009_v57 = vrot.slane %v2630_v4, 5 }
 0x104   : > { %2908 = vrot.lane.b32.xlu1 %v5869_v29, %s4526_s10  ;;  %2968 = vrot.lane.b32.xlu0 %v5951_v18, %s4526_s10  ;;  %v2636_v15 = vrot.slane %v2634_v45, 4  ;;  %v2619_v28 = vsel %vm4746_vm5, %v2614_v2, %v2618_v19  ;;  %v6047_v2 = vld [vmem:[%s5586_s7 + $0x70] sm:$0xf]  ;;  %v2628_v19 = vrot.slane %v2627_v56, 4 }
 0x105   : > { %1990 = vmatprep.mubr.bf16.mxu0 %v1746_v27  ;;  %6521 = vst [vmem:[#allocation2_spill] sm:$0xff] %v6007_v8  ;;  %v6033_v1 = vcombine.low %v2609_v9, %v2619_v28 }
 0x106   : > { %1991 = vmatmul.mubr.bf16.gmra.mrb[16].mxu0 %v1682_v59  ;;  %v777_v10 = vpop.permute.xlu1 %776  ;;  %v858_v55 = vpop.permute.xlu0 %857  ;;  %v2633_v56 = vsel %vm4746_vm5, %v2628_v19, %v6009_v57 }
 0x107   : > { %v921_v27 = vsel %vm906_vm6, %v5111_v61, %v777_v10  ;;  %v987_v16 = vsel %vm906_vm6, %v5288_v48, %v858_v55  ;;  %v2730_v61 = vsel %vm4659_vm4, %v3886_v34, %v2729_v58  ;;  %v2733_v48 = vsel %vm4659_vm4, %v2731_v13, %v2732_v5  ;;  %v6038_v58 = vld [vmem:[%s5586_s7 + $0x54] sm:$0xf]  ;;  %v6052_v34 = vld [vmem:[%s5586_s7 + $0x6c] sm:$0xf] }
 0x108   : > { %2927 = vrot.lane.b32.xlu1 %v5892_v12, %s4525_s29  ;;  %2987 = vrot.lane.b32.xlu0 %v5978_v43, %s4525_s29  ;;  %v2637_v10 = vor.u32 %v2636_v15, %v6009_v57  ;;  %v2640_v55 = vshll.u32 %v6020_v46, 16  ;;  %v6044_v47 = vcombine.low %v2730_v61, %v2733_v48  ;;  %v2811_v13 = vrot.slane %v6047_v2, 5 }
 0x109   : > { %v2648_v60 = vshll.u32 %v6038_v58, 16  ;;  %v2658_v15 = vshrl.u32 %v6042_v51, 16  ;;  %v3890_v9 = vrot.slane %v6052_v34, 9  ;;  %v3887_v61 = vrot.slane %v5983_v52, 9 }
 0x10a   : > { %v817_v20 = vpop.permute.xlu1 %816  ;;  %v877_v42 = vpop.permute.xlu0 %876  ;;  %v2638_v5 = vrot.slane %v2637_v10, 4  ;;  %v2642_v41 = vrot.slane %v2640_v55, 5  ;;  %v2813_v28 = vrot.slane %v2811_v13, 4  ;;  %v2739_v48 = vrot.slane %v6020_v46, 5 }
 0x10b   : > { %v1006_v25 = vsel %vm931_vm7, %v987_v16, %v877_v42  ;;  %v941_v50 = vsel %vm931_vm7, %v921_v27, %v817_v20  ;;  %v2736_v20 = vrot.slane %v5987_v31, 5  ;;  %v2645_v42 = vshrl.u32 %v6038_v58, 16  ;;  %v6062_v27 = vld [vmem:[%s5586_s7 + $0x74] sm:$0x1] }
 0x10c   : > { %2870 = vrot.lane.b32.xlu1 %v5903_v14, %s4527_s27  ;;  %2951 = vrot.lane.b32.xlu0 %v5996_v26, %s4527_s27  ;;  %v2654_v16 = vshll.u32 %v6042_v51, 16  ;;  %v6078_v10 = vsel %vm4659_vm4, %v3890_v9, %v2811_v13  ;;  %v2660_v46 = vrot.slane %v2658_v15, 4  ;;  %v2643_v13 = vsel %vm4746_vm5, %v2638_v5, %v2642_v41 }
 0x10d   : > { %v2737_v57 = vsel %vm4659_vm4, %v3887_v61, %v2736_v20 }
 0x10e   : > { %v836_v49 = vpop.permute.xlu1 %835  ;;  %v896_v59 = vpop.permute.xlu0 %895  ;;  %v2656_v9 = vrot.slane %v2654_v16, 5 }
 0x10f   : > { %v1026_v38 = vsel %vm948_vm8, %v1006_v25, %v896_v59  ;;  %v962_v33 = vsel %vm948_vm8, %v941_v50, %v836_v49  ;;  %v2814_v25 = vrot.slane %v6062_v27, 5  ;;  %v2738_v50 = vrot.slane %v2736_v20, 4 }
 0x110   : > { %2910 = vrot.lane.b32.xlu1 %v5938_v23, %s4526_s10  ;;  %2970 = vrot.lane.b32.xlu0 %v6007_v8, %s4526_s10  ;;  %v2661_v20 = vor.u32 %v2660_v46, %v2656_v9 }
 0x111   : > { %2316 = vmatprep.mubr.bf16.mxu1 %v1026_v38  ;;  %v6069_v38 = vcombine.low %v5983_v52, %v5987_v31  ;;  %v6082_v55 = vsel %vm4659_vm4, %v2813_v28, %v2814_v25  ;;  %v2647_v52 = vrot.slane %v2645_v42, 4  ;;  %v2650_v31 = vrot.slane %v2648_v60, 5  ;;  %v2469_v60 = vld [vmem:[%s5586_s7 + $0x5c] sm:$0x1] }
 0x112   : > { %2317 = vmatmul.mubr.bf16.gmra.mrb[32].mxu1 %v962_v33  ;;  %v1502_v45 = vpop.permute.xlu1 %1501  ;;  %v1583_v4 = vpop.permute.xlu0 %1582  ;;  %6523 = vst [vmem:[#allocation12_spill] sm:$0xff] %v6082_v55  ;;  %v2664_v16 = vshll.u32 %v2469_v60, 16  ;;  %v2662_v46 = vrot.slane %v2661_v20, 4 }
 0x113   : > { %6522 = vst [vmem:[#allocation4_spill] sm:$0xff] %v6069_v38  ;;  %v1646_v33 = vsel %vm906_vm6, %v5215_v40, %v1502_v45  ;;  %v1710_v19 = vsel %vm906_vm6, %v5356_v32, %v1583_v4  ;;  %v6106_v32 = vcombine.low %v2633_v56, %v2643_v13  ;;  %v2740_v45 = vsel %vm4659_vm4, %v2738_v50, %v2739_v48  ;;  %v6111_v4 = vld [vmem:[%s5586_s7 + $0x60] sm:$0xf] }
 0x114   : > { %2929 = vrot.lane.b32.xlu1 %v5951_v18, %s4525_s29  ;;  %2989 = vrot.lane.b32.xlu0 %v6033_v1, %s4525_s29  ;;  %v2651_v41 = vor.u32 %v2650_v31, %v2647_v52  ;;  %v2749_v56 = vshrl.u32 %v6111_v4, 16  ;;  %v6124_v48 = vcombine.low %v2737_v57, %v2740_v45  ;;  %v2666_v13 = vrot.slane %v2664_v16, 5  ;;  %v6138_v45 = vld [vmem:[%s5586_s7 + $0x68] sm:$0x1] }
 0x115   : > { %v6135_v57 = vcombine.low %v6038_v58, %v6042_v51  ;;  %v6524_v16 = vld [vmem:[#allocation7_spill] sm:$0xff] }
 0x116   : > { %v1542_v49 = vpop.permute.xlu1 %1541  ;;  %v1602_v59 = vpop.permute.xlu0 %1601  ;;  %v2652_v31 = vrot.slane %v2651_v41, 4 }
 0x117   : > { %v1728_v28 = vsel %vm931_vm7, %v1710_v19, %v1602_v59  ;;  %v1664_v40 = vsel %vm931_vm7, %v1646_v33, %v1542_v49  ;;  %v6115_v49 = vld [vmem:[%s5586_s7 + $0x64] sm:$0xf]  ;;  %v2743_v33 = vrot.slane %v6042_v51, 5  ;;  %v2752_v19 = vshll.u32 %v6111_v4, 16 }
 0x118   : > { %2872 = vrot.lane.b32.xlu1 %v5978_v43, %s4527_s27  ;;  %2953 = vrot.lane.b32.xlu0 %v6044_v47, %s4527_s27  ;;  %v2762_v50 = vshrl.u32 %v6115_v49, 16  ;;  %v2758_v52 = vshll.u32 %v6115_v49, 16 }
 0x119   : > { %v2754_v35 = vrot.slane %v2752_v19, 5  ;;  %v2667_v19 = vsel %vm4746_vm5, %v2662_v46, %v2666_v13 }
 0x11a   : > { %v1561_v25 = vpop.permute.xlu1 %1560  ;;  %v1621_v42 = vpop.permute.xlu0 %1620  ;;  %v2760_v41 = vrot.slane %v2758_v52, 5  ;;  %v2764_v20 = vrot.slane %v2762_v50, 4 }
 0x11b   : > { %v1749_v15 = vsel %vm948_vm8, %v1728_v28, %v1621_v42  ;;  %v1685_v5 = vsel %vm948_vm8, %v1664_v40, %v1561_v25  ;;  %v3888_v42 = vrot.slane %v6038_v58, 9  ;;  %v2746_v40 = vrot.slane %v2469_v60, 5 }
 0x11c   : > { %2912 = vrot.lane.b32.xlu1 %v5996_v26, %s4526_s10  ;;  %2972 = vrot.lane.b32.xlu0 %v6069_v38, %s4526_s10 }
 0x11d   : > { %1998 = vmatprep.mubr.bf16.mxu0 %v1749_v15  ;;  %v2745_v15 = vrot.slane %v2743_v33, 4  ;;  %v2744_v52 = vsel %vm4659_vm4, %v3888_v42, %v2743_v33  ;;  %v2783_v42 = vshrl.u32 %v6052_v34, 16 }
 0x11e   : > { %1999 = vmatmul.mubr.bf16.gmra.mrb[20].mxu0 %v1685_v5  ;;  %v779_v59 = vpop.permute.xlu1 %778  ;;  %v860_v61 = vpop.permute.xlu0 %859  ;;  %v2751_v5 = vrot.slane %v2749_v56, 4  ;;  %v2657_v56 = vsel %vm4746_vm5, %v2652_v31, %v2656_v9  ;;  %v2765_v31 = vor.u32 %v2764_v20, %v2760_v41 }
 0x11f   : > { %v990_v60 = vsel %vm906_vm6, %v5394_v36, %v860_v61  ;;  %v2768_v36 = vshll.u32 %v6138_v45, 16  ;;  %v6160_v61 = vcombine.low %v2657_v56, %v2667_v19  ;;  %v3915_v56 = vcombine.low %v6111_v4, %v6115_v49 }
 0x120   : > { %2931 = vrot.lane.b32.xlu1 %v6007_v8, %s4525_s29  ;;  %2991 = vrot.lane.b32.xlu0 %v6106_v32, %s4525_s29  ;;  %v924_v8 = vsel %vm906_vm6, %v6524_v16, %v779_v59  ;;  %v2747_v59 = vsel %vm4659_vm4, %v2745_v15, %v2746_v40  ;;  %v2755_v16 = vor.u32 %v2754_v35, %v2751_v5  ;;  %v2786_v15 = vshll.u32 %v6052_v34, 16 }
 0x121   : > { %v6163_v35 = vcombine.low %v2744_v52, %v2747_v59  ;;  %v2770_v13 = vrot.slane %v2768_v36, 5  ;;  %v2796_v40 = vshrl.u32 %v6047_v2, 16  ;;  %v2792_v5 = vshll.u32 %v6047_v2, 16 }
 0x122   : > { %v819_v28 = vpop.permute.xlu1 %818  ;;  %v879_v25 = vpop.permute.xlu0 %878  ;;  %v3889_v19 = vrot.slane %v6111_v4, 9  ;;  %v2785_v59 = vrot.slane %v2783_v42, 4 }
 0x123   : > { %v1008_v55 = vsel %vm931_vm7, %v990_v60, %v879_v25  ;;  %v943_v9 = vsel %vm931_vm7, %v924_v8, %v819_v28  ;;  %v2777_v8 = vrot.slane %v6115_v49, 5  ;;  %v2756_v28 = vrot.slane %v2755_v16, 4 }
 0x124   : > { %2874 = vrot.lane.b32.xlu1 %v6033_v1, %s4527_s27  ;;  %2955 = vrot.lane.b32.xlu0 %v6124_v48, %s4527_s27  ;;  %v2766_v25 = vrot.slane %v2765_v31, 4  ;;  %v2788_v16 = vrot.slane %v2786_v15, 5  ;;  %v2798_v36 = vrot.slane %v2796_v40, 4 }
 0x125   : > { %v2761_v52 = vsel %vm4746_vm5, %v2756_v28, %v2760_v41  ;;  %v2778_v41 = vsel %vm4659_vm4, %v3889_v19, %v2777_v8 }
 0x126   : > { %v838_v58 = vpop.permute.xlu1 %837  ;;  %v898_v51 = vpop.permute.xlu0 %897 }
 0x127   : > { %v1029_v50 = vsel %vm948_vm8, %v1008_v55, %v898_v51  ;;  %v965_v55 = vsel %vm948_vm8, %v943_v9, %v838_v58  ;;  %v2779_v58 = vrot.slane %v2777_v8, 4  ;;  %v2780_v51 = vrot.slane %v6138_v45, 5 }
 0x128   : > { %2914 = vrot.lane.b32.xlu1 %v6044_v47, %s4526_s10  ;;  %2974 = vrot.lane.b32.xlu0 %v6135_v57, %s4526_s10  ;;  %v2794_v45 = vrot.slane %v2792_v5, 5 }
 0x129   : > { %2324 = vmatprep.mubr.bf16.mxu1 %v1029_v50  ;;  %v2771_v50 = vsel %vm4746_vm5, %v2766_v25, %v2770_v13  ;;  %v2802_v25 = vshll.u32 %v6062_v27, 16  ;;  %v3918_v27 = vcombine.low %v6052_v34, %v6047_v2 }
 0x12a   : > { %2325 = vmatmul.mubr.bf16.gmra.mrb[36].mxu1 %v965_v55  ;;  %v1504_v33 = vpop.permute.xlu1 %1503  ;;  %v1585_v46 = vpop.permute.xlu0 %1584  ;;  %v2799_v28 = vor.u32 %v2798_v36, %v2794_v45 }
 0x12b   : > { %v1649_v4 = vsel %vm906_vm6, %v5323_v39, %v1504_v33  ;;  %v1713_v49 = vsel %vm906_vm6, %v5439_v54, %v1585_v46  ;;  %v6198_v39 = vcombine.low %v2761_v52, %v2771_v50  ;;  %v2781_v54 = vsel %vm4659_vm4, %v2779_v58, %v2780_v51 }
 0x12c   : > { %2933 = vrot.lane.b32.xlu1 %v6069_v38, %s4525_s29  ;;  %2993 = vrot.lane.b32.xlu0 %v6160_v61, %s4525_s29  ;;  %v2789_v46 = vor.u32 %v2788_v16, %v2785_v59  ;;  %v6208_v15 = vcombine.low %v2778_v41, %v2781_v54  ;;  %v2800_v40 = vrot.slane %v2799_v28, 4  ;;  %v6525_v28 = vld [vmem:[#allocation10_spill] sm:$0xff] }
 0x12e   : > { %v1544_v20 = vpop.permute.xlu1 %1543  ;;  %v1604_v60 = vpop.permute.xlu0 %1603  ;;  %v2790_v21 = vrot.slane %v2789_v46, 4 }
 0x12f   : > { %v1730_v9 = vsel %vm931_vm7, %v1713_v49, %v1604_v60  ;;  %v1666_v13 = vsel %vm931_vm7, %v1649_v4, %v1544_v20 }
 0x130   : > { %2876 = vrot.lane.b32.xlu1 %v6106_v32, %s4527_s27  ;;  %2957 = vrot.lane.b32.xlu0 %v6163_v35, %s4527_s27  ;;  %v2795_v58 = vsel %vm4746_vm5, %v2790_v21, %v2794_v45 }
 0x132   : > { %v1563_v31 = vpop.permute.xlu1 %1562  ;;  %v1623_v55 = vpop.permute.xlu0 %1622 }
 0x133   : > { %v1752_v38 = vsel %vm948_vm8, %v1730_v9, %v1623_v55  ;;  %v1688_v33 = vsel %vm948_vm8, %v1666_v13, %v1563_v31 }
 0x134   : > { %2916 = vrot.lane.b32.xlu1 %v6124_v48, %s4526_s10  ;;  %2976 = vrot.lane.b32.xlu0 %v3915_v56, %s4526_s10 }
 0x135   : > { %2006 = vmatprep.mubr.bf16.mxu0 %v1752_v38  ;;  %v2804_v38 = vrot.slane %v2802_v25, 5 }
 0x136   : > { %2007 = vmatmul.mubr.bf16.gmra.mrb[24].mxu0 %v1688_v33  ;;  %v781_v8 = vpop.permute.xlu1 %780  ;;  %v862_v42 = vpop.permute.xlu0 %861 }
 0x137   : > { %v927_v60 = vsel %vm906_vm6, %v5380_v37, %v781_v8  ;;  %v993_v19 = vsel %vm906_vm6, %v5483_v62, %v862_v42  ;;  %v2805_v51 = vsel %vm4746_vm5, %v2800_v40, %v2804_v38 }
 0x138   : > { %2935 = vrot.lane.b32.xlu1 %v6135_v57, %s4525_s29  ;;  %2995 = vrot.lane.b32.xlu0 %v6198_v39, %s4525_s29  ;;  %v3919_v37 = vcombine.low %v2795_v58, %v2805_v51 }
 0x13a   : > { %v821_v5 = vpop.permute.xlu1 %820  ;;  %v881_v20 = vpop.permute.xlu0 %880 }
 0x13b   : > { %v1010_v52 = vsel %vm931_vm7, %v993_v19, %v881_v20  ;;  %v945_v2 = vsel %vm931_vm7, %v927_v60, %v821_v5  ;;  %v6526_v60 = vld [vmem:[#allocation3_spill] sm:$0xff]  ;;  %v4484_v19 = vld [vmem:[%s5586_s7 + $0x4] sm:$0xf] }
 0x13c   : > { %2878 = vrot.lane.b32.xlu1 %v6160_v61, %s4527_s27  ;;  %2959 = vrot.lane.b32.xlu0 %v6208_v15, %s4527_s27  ;;  %s3710_s27 = sshll.u32 %s6554_s18, 4 }
 0x13e   : > { %v840_v50 = vpop.permute.xlu1 %839  ;;  %v900_v59 = vpop.permute.xlu0 %899 }
 0x13f   : > { %v1032_v16 = vsel %vm948_vm8, %v1010_v52, %v900_v59  ;;  %v968_v62 = vsel %vm948_vm8, %v945_v2, %v840_v50  ;;  %v4478_v50 = vld [vmem:[%s6481_s3 + $0x1a8] sm:$0xff]   ;;  %v6527_v2 = vld [vmem:[#allocation5_spill] sm:$0xff] }
 0x140   : > { %2918 = vrot.lane.b32.xlu1 %v6163_v35, %s4526_s10  ;;  %2978 = vrot.lane.b32.xlu0 %v3918_v27, %s4526_s10 }
 0x141   : > { %2332 = vmatprep.mubr.bf16.mxu1 %v1032_v16 }
 0x142   : > { %2333 = vmatmul.mubr.bf16.gmra.mrb[40].mxu1 %v968_v62  ;;  %v1506_v0 = vpop.permute.xlu1 %1505  ;;  %v1587_v34 = vpop.permute.xlu0 %1586 }
 0x143   : > { %v1652_v45 = vsel %vm906_vm6, %v5418_v30, %v1506_v0  ;;  %v1716_v36 = vsel %vm906_vm6, %v5340_v11, %v1587_v34  ;;  %v6528_v34 = vld [vmem:[#allocation6_spill] sm:$0xff] }
 0x144   : > { %2937 = vrot.lane.b32.xlu1 %v3915_v56, %s4525_s29  ;;  %2997 = vrot.lane.b32.xlu0 %v3919_v37, %s4525_s29 }
 0x146   : > { %v1546_v4 = vpop.permute.xlu1 %1545  ;;  %v1606_v49 = vpop.permute.xlu0 %1605 }
 0x147   : > { %v1732_v9 = vsel %vm931_vm7, %v1716_v36, %v1606_v49  ;;  %v1668_v41 = vsel %vm931_vm7, %v1652_v45, %v1546_v4 }
 0x14a   : > { %v1565_v31 = vpop.permute.xlu1 %1564  ;;  %v1625_v55 = vpop.permute.xlu0 %1624 }
 0x14b   : > { %v1755_v13 = vsel %vm948_vm8, %v1732_v9, %v1625_v55  ;;  %v1691_v56 = vsel %vm948_vm8, %v1668_v41, %v1565_v31  ;;  %v6529_v9 = vld [vmem:[#allocation8_spill] sm:$0xff]  ;;  %v6530_v41 = vld [vmem:[#allocation9_spill] sm:$0xff] }
 0x14c   : > { %2014 = vmatprep.mubr.bf16.mxu0 %v1755_v13 }
 0x14d   : > { %2015 = vmatmul.mubr.bf16.gmra.mrb[28].mxu0 %v1691_v56 }
 0x14e   : > { %v783_v54 = vpop.permute.xlu1 %782  ;;  %v864_v33 = vpop.permute.xlu0 %863 }
 0x14f   : > { %v930_v11 = vsel %vm906_vm6, %v5466_v24, %v783_v54  ;;  %v996_v25 = vsel %vm906_vm6, %v6525_v28, %v864_v33  ;;  %v4483_v24 = vld [vmem:[%s5586_s7] sm:$0xf]  ;;  %s3711_s7 = sshll.u32 %s6548_s19, 6 }
 0x150   : > { %v3891_v58 = vcombine.low %v4483_v24, %v4484_v19  ;;  %s340_s11 = sadd.s32 %s3711_s7, %s3710_s27 }
 0x151   : > { %s3712_s15 = sshll.u32 %s340_s11, 3 }
 0x152   : > { %v823_v46 = vpop.permute.xlu1 %822  ;;  %v883_v30 = vpop.permute.xlu0 %882  ;;  %s6404_s26 = scalar_lea.vmem %s6483_s5, %s3712_s15 }
 0x153   : > { %v1012_v8 = vsel %vm931_vm7, %v996_v25, %v883_v30  ;;  %v947_v40 = vsel %vm931_vm7, %v930_v11, %v823_v46  ;;  %v6531_v25 = vld [vmem:[#allocation11_spill] sm:$0xff] }
 0x156   : > { %v842_v42 = vpop.permute.xlu1 %841  ;;  %v902_v21 = vpop.permute.xlu0 %901 }
 0x157   : > { %v1035_v38 = vsel %vm948_vm8, %v1012_v8, %v902_v21  ;;  %v971_v5 = vsel %vm948_vm8, %v947_v40, %v842_v42  ;;  %v6532_v40 = vcombine.low %v5911_v6, %v5915_v22 }
 0x158   : > { %2340 = vmatprep.mubr.bf16.mxu1 %v1035_v38 }
 0x159   : > { %2341 = vmatmul.mubr.bf16.gmra.mrb[44].mxu1 %v971_v5 }
 0x15a   : > { %v2865_v20 = vpop.permute.xlu1 %2864  ;;  %v2946_v27 = vpop.permute.xlu0 %2945  ;;  %4232 = vmatprep.mubr.msk.bf16.mxu1 %vm906_vm6, %v6526_v60 }
 0x15b   : > { %v3004_v59 = vsel %vm906_vm6, %v3891_v58, %v2865_v20  ;;  %v3068_v16 = vsel %vm906_vm6, %v5867_v53, %v2946_v27 }
 0x15e   : > { %v2905_v51 = vpop.permute.xlu1 %2904  ;;  %v2965_v52 = vpop.permute.xlu0 %2964 }
 0x15f   : > { %v3091_v37 = vsel %vm931_vm7, %v3068_v16, %v2965_v52  ;;  %v3027_v4 = vsel %vm931_vm7, %v3004_v59, %v2905_v51 }
 0x161   : > { %4233 = vmatmul.mubr.msk.bf16.vlgmr.msra.gmra.mrb[0].mxu1 %vm906_vm6, %v6527_v2 }
 0x162   : > { %v2924_v62 = vpop.permute.xlu1 %2923  ;;  %v2984_v0 = vpop.permute.xlu0 %2983  ;;  %4236 = vmatprep.mubr.msk.bf16.mxu1 %vm906_vm6, %v6528_v34  ;;  %4249 = vmatpush3.bf16.msra.mxu1 %v5928_v63 }
 0x163   : > { %v3107_v49 = vsel %vm948_vm8, %v3091_v37, %v2984_v0  ;;  %4250 = vmatprep.subr.bf16.mxu1 %v4478_v50  ;;  %v3043_v45 = vsel %vm948_vm8, %v3027_v4, %v2924_v62 }
 0x164   : > { %3331 = vmatprep.mubr.bf16.mxu0 %v3107_v49 }
 0x165   : > { %3332 = vmatmul.mubr.bf16.vlgmr.msra.gmra.mrb[32].mxu0 %v3043_v45 }
 0x166   : > { %v2867_v53 = vpop.permute.xlu1 %2866  ;;  %v2948_v36 = vpop.permute.xlu0 %2947  ;;  %4251 = vmatpush3.bf16.msra.mxu1 %v4478_v50 }
 0x167   : > { %v3007_v63 = vsel %vm906_vm6, %v5834_v3, %v2867_v53  ;;  %v3071_v13 = vsel %vm906_vm6, %v5842_v44, %v2948_v36 }
 0x169   : > { %4237 = vmatmul.mubr.msk.bf16.gmra.mrb[4].mxu1 %vm906_vm6, %v6529_v9 }
 0x16a   : > { %v2907_v31 = vpop.permute.xlu1 %2906  ;;  %v2967_v55 = vpop.permute.xlu0 %2966  ;;  %4240 = vmatprep.mubr.msk.bf16.mxu1 %vm906_vm6, %v6530_v41 }
 0x16b   : > { %v3093_v56 = vsel %vm931_vm7, %v3071_v13, %v2967_v55  ;;  %v3029_v46 = vsel %vm931_vm7, %v3007_v63, %v2907_v31 }
 0x16e   : > { %v2926_v54 = vpop.permute.xlu1 %2925  ;;  %v2986_v33 = vpop.permute.xlu0 %2985 }
 0x16f   : > { %v3110_v30 = vsel %vm948_vm8, %v3093_v56, %v2986_v33  ;;  %v3046_v11 = vsel %vm948_vm8, %v3029_v46, %v2926_v54 }
 0x170   : > { %3339 = vmatprep.mubr.bf16.mxu0 %v3110_v30 }
 0x171   : > { %4241 = vmatmul.mubr.msk.bf16.gmra.mrb[8].mxu1 %vm906_vm6, %v5542_v7  ;;  %3340 = vmatmul.mubr.bf16.gmra.mrb[36].mxu0 %v3046_v11 }
 0x172   : > { %v2869_v28 = vpop.permute.xlu1 %2868  ;;  %v2950_v3 = vpop.permute.xlu0 %2949  ;;  %4244 = vmatprep.mubr.msk.bf16.mxu1 %vm906_vm6, %v6531_v25  ;;  %v6533_v25 = vld [vmem:[#allocation12_spill] sm:$0xff] }
 0x173   : > { %v3010_v42 = vsel %vm906_vm6, %v5809_v17, %v2869_v28  ;;  %v3074_v21 = vsel %vm906_vm6, %v5903_v14, %v2950_v3 }
 0x176   : > { %v2909_v44 = vpop.permute.xlu1 %2908  ;;  %v2969_v8 = vpop.permute.xlu0 %2968 }
 0x177   : > { %v3095_v7 = vsel %vm931_vm7, %v3074_v21, %v2969_v8  ;;  %v3031_v20 = vsel %vm931_vm7, %v3010_v42, %v2909_v44  ;;  %v6535_v42 = vld [vmem:[#allocation2_spill] sm:$0xff] }
 0x179   : > { %4245 = vmatmul.mubr.msk.bf16.gmra.mrb[12].mxu1 %vm906_vm6, %v6532_v40 }
 0x17a   : > { %v2928_v38 = vpop.permute.xlu1 %2927  ;;  %v2988_v5 = vpop.permute.xlu0 %2987  ;;  %4252 = vmatprep.mubr.msk.bf16.mxu1 %vm906_vm6, %v5869_v29 }
 0x17b   : > { %v3113_v27 = vsel %vm948_vm8, %v3095_v7, %v2988_v5  ;;  %v3049_v17 = vsel %vm948_vm8, %v3031_v20, %v2928_v38 }
 0x17c   : > { %3347 = vmatprep.mubr.bf16.mxu0 %v3113_v27 }
 0x17d   : > { %3348 = vmatmul.mubr.bf16.gmra.mrb[40].mxu0 %v3049_v17 }
 0x17e   : > { %v2871_v14 = vpop.permute.xlu1 %2870  ;;  %v2952_v60 = vpop.permute.xlu0 %2951 }
 0x17f   : > { %v3013_v29 = vsel %vm906_vm6, %v5892_v12, %v2871_v14  ;;  %v3077_v50 = vsel %vm906_vm6, %v5978_v43, %v2952_v60 }
 0x181   : > { %4253 = vmatmul.mubr.msk.bf16.vlgmr.msra.gmra.mrb[0].mxu1 %vm906_vm6, %v5938_v23 }
 0x182   : > { %v2911_v6 = vpop.permute.xlu1 %2910  ;;  %v2971_v22 = vpop.permute.xlu0 %2970  ;;  %4256 = vmatprep.mubr.msk.bf16.mxu1 %vm906_vm6, %v5996_v26 }
 0x183   : > { %v4076_v24 = vpop.f32.mrb[16].mxu1  ;;  %v3033_v23 = vsel %vm931_vm7, %v3013_v29, %v2911_v6  ;;  %v3097_v2 = vsel %vm931_vm7, %v3077_v50, %v2971_v22  ;;  %v6536_v50 = vld [vmem:[#allocation4_spill] sm:$0xff] }
 0x184   : > { %v4077_v19 = vpop.f32.mrb[17].mxu1 }
 0x185   : > { %v4002_v58 = vpop.f32.mrb[0].mxu0  ;;  %v4078_v51 = vadd.f32 %v4077_v19, %v4076_v24  ;;  %v4079_v52 = vpop.f32.mrb[18].mxu1 }
 0x186   : > { %v4003_v59 = vpop.f32.mrb[1].mxu0  ;;  %v2930_v16 = vpop.permute.xlu1 %2929 }
 0x187   : > { %v4004_v37 = vadd.f32 %v4003_v59, %v4002_v58  ;;  %v2990_v62 = vpop.permute.xlu0 %2989  ;;  %v4005_v26 = vpop.f32.mrb[2].mxu0  ;;  %v3052_v4 = vsel %vm948_vm8, %v3033_v23, %v2930_v16 }
 0x188   : > { %v4006_v0 = vpop.f32.mrb[3].mxu0  ;;  %v4080_v34 = vpop.f32.mrb[19].mxu1  ;;  %v3116_v12 = vsel %vm948_vm8, %v3097_v2, %v2990_v62 }
 0x189   : > { %v6310_v49 = vadd.f32 %v4078_v51, %v4004_v37  ;;  %v4007_v45 = vadd.f32 %v4006_v0, %v4005_v26  ;;  %v4081_v53 = vadd.f32 %v4080_v34, %v4079_v52  ;;  %3355 = vmatprep.mubr.bf16.mxu0 %v3116_v12  ;;  %4257 = vmatmul.mubr.msk.bf16.gmra.mrb[4].mxu1 %vm906_vm6, %v6044_v47 }
 0x18a   : > { %3356 = vmatmul.mubr.bf16.gmra.mrb[44].mxu0 %v3052_v4  ;;  %v2873_v43 = vpop.permute.xlu1 %2872  ;;  %4260 = vmatprep.mubr.msk.bf16.mxu1 %vm906_vm6, %v6124_v48 }
 0x18b   : > { %v6316_v36 = vadd.f32 %v4081_v53, %v4007_v45  ;;  %v2954_v9 = vpop.permute.xlu0 %2953  ;;  %v3016_v41 = vsel %vm906_vm6, %v5951_v18, %v2873_v43 }
 0x18c   : > { %v3080_v47 = vsel %vm906_vm6, %v6033_v1, %v2954_v9 }
 0x18e   : > { %v2913_v31 = vpop.permute.xlu1 %2912 }
 0x18f   : > { %v2973_v55 = vpop.permute.xlu0 %2972  ;;  %v3035_v30 = vsel %vm931_vm7, %v3016_v41, %v2913_v31 }
 0x190   : > { %v3099_v48 = vsel %vm931_vm7, %v3080_v47, %v2973_v55 }
 0x191   : > { %v4008_v63 = vpop.f32.mrb[4].mxu0  ;;  %4261 = vmatmul.mubr.msk.bf16.gmra.mrb[8].mxu1 %vm906_vm6, %v6163_v35 }
 0x192   : > { %v4009_v13 = vpop.f32.mrb[5].mxu0  ;;  %v2932_v56 = vpop.permute.xlu1 %2931  ;;  %4264 = vmatprep.mubr.msk.bf16.mxu1 %vm906_vm6, %v6208_v15  ;;  %v6534_v15 = vcombine.low %v6078_v10, %v6533_v25 }
 0x193   : > { %v4010_v54 = vadd.f32 %v4009_v13, %v4008_v63  ;;  %v2992_v33 = vpop.permute.xlu0 %2991  ;;  %v4011_v46 = vpop.f32.mrb[6].mxu0  ;;  %v3055_v35 = vsel %vm948_vm8, %v3035_v30, %v2932_v56 }
 0x194   : > { %v4012_v18 = vpop.f32.mrb[7].mxu0  ;;  %v3119_v11 = vsel %vm948_vm8, %v3099_v48, %v2992_v33 }
 0x195   : > { %v4013_v28 = vadd.f32 %v4012_v18, %v4011_v46  ;;  %3363 = vmatprep.mubr.bf16.mxu0 %v3119_v11 }
 0x196   : > { %3364 = vmatmul.mubr.bf16.gmra.mrb[48].mxu0 %v3055_v35  ;;  %v2875_v1 = vpop.permute.xlu1 %2874 }
 0x197   : > { %v2956_v3 = vpop.permute.xlu0 %2955  ;;  %v3019_v21 = vsel %vm906_vm6, %v6535_v42, %v2875_v1 }
 0x198   : > { %v3083_v7 = vsel %vm906_vm6, %v6106_v32, %v2956_v3 }
 0x199   : > { %4265 = vmatmul.mubr.msk.bf16.gmra.mrb[12].mxu1 %vm906_vm6, %v6534_v15 }
 0x19a   : > { %v2915_v44 = vpop.permute.xlu1 %2914 }
 0x19b   : > { %v2975_v8 = vpop.permute.xlu0 %2974  ;;  %v3037_v10 = vsel %vm931_vm7, %v3019_v21, %v2915_v44 }
 0x19c   : > { %v3101_v20 = vsel %vm931_vm7, %v3083_v7, %v2975_v8 }
 0x19d   : > { %v4082_v40 = vpop.f32.mrb[20].mxu1 }
 0x19e   : > { %v4083_v38 = vpop.f32.mrb[21].mxu1  ;;  %v2934_v5 = vpop.permute.xlu1 %2933 }
 0x19f   : > { %v4084_v27 = vadd.f32 %v4083_v38, %v4082_v40  ;;  %v2994_v17 = vpop.permute.xlu0 %2993  ;;  %v4085_v14 = vpop.f32.mrb[22].mxu1  ;;  %v3058_v29 = vsel %vm948_vm8, %v3037_v10, %v2934_v5 }
 0x1a0   : > { %v4086_v60 = vpop.f32.mrb[23].mxu1  ;;  %v3122_v6 = vsel %vm948_vm8, %v3101_v20, %v2994_v17 }
 0x1a1   : > { %v6341_v22 = vadd.f32 %v4084_v27, %v4010_v54  ;;  %v4087_v24 = vadd.f32 %v4086_v60, %v4085_v14  ;;  %3371 = vmatprep.mubr.bf16.mxu0 %v3122_v6 }
 0x1a2   : > { %3372 = vmatmul.mubr.bf16.gmra.mrb[52].mxu0 %v3058_v29  ;;  %v2877_v32 = vpop.permute.xlu1 %2876 }
 0x1a3   : > { %v6344_v19 = vadd.f32 %v4087_v24, %v4013_v28  ;;  %v2958_v58 = vpop.permute.xlu0 %2957  ;;  %v3022_v59 = vsel %vm906_vm6, %v6536_v50, %v2877_v32 }
 0x1a4   : > { %v3086_v23 = vsel %vm906_vm6, %v6160_v61, %v2958_v58 }
 0x1a6   : > { %v2917_v51 = vpop.permute.xlu1 %2916 }
 0x1a7   : > { %v2977_v52 = vpop.permute.xlu0 %2976  ;;  %v3039_v12 = vsel %vm931_vm7, %v3022_v59, %v2917_v51 }
 0x1a8   : > { %v3103_v62 = vsel %vm931_vm7, %v3086_v23, %v2977_v52 }
 0x1a9   : > { %v4014_v16 = vpop.f32.mrb[8].mxu0 }
 0x1aa   : > { %v4015_v2 = vpop.f32.mrb[9].mxu0  ;;  %v2936_v37 = vpop.permute.xlu1 %2935 }
 0x1ab   : > { %v4016_v26 = vadd.f32 %v4015_v2, %v4014_v16  ;;  %v2996_v0 = vpop.permute.xlu0 %2995  ;;  %v4017_v34 = vpop.f32.mrb[10].mxu0  ;;  %v3061_v43 = vsel %vm948_vm8, %v3039_v12, %v2936_v37 }
 0x1ac   : > { %v4018_v4 = vpop.f32.mrb[11].mxu0  ;;  %v3125_v45 = vsel %vm948_vm8, %v3103_v62, %v2996_v0 }
 0x1ad   : > { %v4019_v53 = vadd.f32 %v4018_v4, %v4017_v34  ;;  %3379 = vmatprep.mubr.bf16.mxu0 %v3125_v45 }
 0x1ae   : > { %3380 = vmatmul.mubr.bf16.gmra.mrb[56].mxu0 %v3061_v43  ;;  %v2879_v9 = vpop.permute.xlu1 %2878 }
 0x1af   : > { %v2960_v31 = vpop.permute.xlu0 %2959  ;;  %v3025_v41 = vsel %vm906_vm6, %v6135_v57, %v2879_v9 }
 0x1b0   : > { %v3089_v47 = vsel %vm906_vm6, %v6198_v39, %v2960_v31 }
 0x1b2   : > { %v2919_v61 = vpop.permute.xlu1 %2918 }
 0x1b3   : > { %v2979_v55 = vpop.permute.xlu0 %2978  ;;  %v3041_v30 = vsel %vm931_vm7, %v3025_v41, %v2919_v61 }
 0x1b4   : > { %v3105_v48 = vsel %vm931_vm7, %v3089_v47, %v2979_v55 }
 0x1b5   : > { %v4088_v63 = vpop.f32.mrb[24].mxu1 }
 0x1b6   : > { %v4089_v13 = vpop.f32.mrb[25].mxu1  ;;  %v2938_v56 = vpop.permute.xlu1 %2937 }
 0x1b7   : > { %v4090_v54 = vadd.f32 %v4089_v13, %v4088_v63  ;;  %v2998_v33 = vpop.permute.xlu0 %2997  ;;  %v4091_v46 = vpop.f32.mrb[26].mxu1  ;;  %v3064_v57 = vsel %vm948_vm8, %v3041_v30, %v2938_v56 }
 0x1b8   : > { %v4092_v18 = vpop.f32.mrb[27].mxu1  ;;  %v3128_v11 = vsel %vm948_vm8, %v3105_v48, %v2998_v33 }
 0x1b9   : > { %v6361_v28 = vadd.f32 %v4090_v54, %v4016_v26  ;;  %v4093_v35 = vadd.f32 %v4092_v18, %v4091_v46  ;;  %3387 = vmatprep.mubr.bf16.mxu0 %v3128_v11 }
 0x1ba   : > { %3388 = vmatmul.mubr.bf16.gmra.mrb[60].mxu0 %v3064_v57 }
 0x1bb   : > { %v6364_v39 = vadd.f32 %v4093_v35, %v4019_v53 }
 0x1c1   : > { %v4020_v1 = vpop.f32.mrb[12].mxu0 }
 0x1c2   : > { %v4021_v3 = vpop.f32.mrb[13].mxu0 }
 0x1c3   : > { %v4022_v25 = vadd.f32 %v4021_v3, %v4020_v1  ;;  %v4023_v15 = vpop.f32.mrb[14].mxu0 }
 0x1c4   : > { %v4024_v44 = vpop.f32.mrb[15].mxu0 }
 0x1c5   : > { %v4025_v8 = vadd.f32 %v4024_v44, %v4023_v15 }
 0x1cd   : > { %v4094_v42 = vpop.f32.mrb[28].mxu1 }
 0x1ce   : > { %v4095_v21 = vpop.f32.mrb[29].mxu1 }
 0x1cf   : > { %v4096_v40 = vadd.f32 %v4095_v21, %v4094_v42  ;;  %v4097_v7 = vpop.f32.mrb[30].mxu1 }
 0x1d0   : > { %v4098_v38 = vpop.f32.mrb[31].mxu1 }
 0x1d1   : > { %v6366_v5 = vadd.f32 %v4096_v40, %v4022_v25  ;;  %v4099_v20 = vadd.f32 %v4098_v38, %v4097_v7 }
 0x1d3   : > { %v6368_v27 = vadd.f32 %v4099_v20, %v4025_v8 }
 0x1d9   : > { %v4026_v17 = vpop.f32.mrb[16].mxu0 }
 0x1da   : > { %v4027_v14 = vpop.f32.mrb[17].mxu0 }
 0x1db   : > { %v4028_v10 = vadd.f32 %v4027_v14, %v4026_v17  ;;  %v4029_v60 = vpop.f32.mrb[18].mxu0 }
 0x1dc   : > { %v4030_v6 = vpop.f32.mrb[19].mxu0 }
 0x1dd   : > { %v4031_v24 = vadd.f32 %v4030_v6, %v4029_v60 }
 0x1e5   : > { %v4100_v29 = vpop.f32.mrb[32].mxu1 }
 0x1e6   : > { %v4101_v32 = vpop.f32.mrb[33].mxu1 }
 0x1e7   : > { %v4102_v58 = vadd.f32 %v4101_v32, %v4100_v29  ;;  %v4103_v51 = vpop.f32.mrb[34].mxu1 }
 0x1e8   : > { %v4104_v52 = vpop.f32.mrb[35].mxu1 }
 0x1e9   : > { %v6370_v50 = vadd.f32 %v4102_v58, %v4028_v10  ;;  %v4105_v59 = vadd.f32 %v4104_v52, %v4103_v51 }
 0x1eb   : > { %v6372_v16 = vadd.f32 %v4105_v59, %v4031_v24 }
 0x1f1   : > { %v4032_v23 = vpop.f32.mrb[20].mxu0 }
 0x1f2   : > { %v4033_v2 = vpop.f32.mrb[21].mxu0 }
 0x1f3   : > { %v4034_v37 = vadd.f32 %v4033_v2, %v4032_v23  ;;  %v4035_v62 = vpop.f32.mrb[22].mxu0 }
 0x1f4   : > { %v4036_v26 = vpop.f32.mrb[23].mxu0 }
 0x1f5   : > { %v4037_v0 = vadd.f32 %v4036_v26, %v4035_v62 }
 0x1fd   : > { %v4106_v34 = vpop.f32.mrb[36].mxu1 }
 0x1fe   : > { %v4107_v12 = vpop.f32.mrb[37].mxu1 }
 0x1ff   : > { %v4108_v4 = vadd.f32 %v4107_v12, %v4106_v34  ;;  %v4109_v45 = vpop.f32.mrb[38].mxu1 }
 0x200   : > { %v4110_v53 = vpop.f32.mrb[39].mxu1 }
 0x201   : > { %v6374_v43 = vadd.f32 %v4108_v4, %v4034_v37  ;;  %v4111_v9 = vadd.f32 %v4110_v53, %v4109_v45  ;;  %v6396_v45 = vld [vmem:[%s6482_s4] ss:$0 sm:$0xff] }
 0x203   : > { %v6376_v31 = vadd.f32 %v4111_v9, %v4037_v0 }
 0x209   : > { %v4038_v61 = vpop.f32.mrb[24].mxu0 }
 0x20a   : > { %v4039_v55 = vpop.f32.mrb[25].mxu0 }
 0x20b   : > { %v4040_v41 = vadd.f32 %v4039_v55, %v4038_v61  ;;  %v4041_v63 = vpop.f32.mrb[26].mxu0 }
 0x20c   : > { %v4042_v47 = vpop.f32.mrb[27].mxu0 }
 0x20d   : > { %v4043_v13 = vadd.f32 %v4042_v47, %v4041_v63 }
 0x215   : > { %v4112_v56 = vpop.f32.mrb[40].mxu1 }
 0x216   : > { %v4113_v48 = vpop.f32.mrb[41].mxu1 }
 0x217   : > { %v4114_v54 = vadd.f32 %v4113_v48, %v4112_v56  ;;  %v4115_v33 = vpop.f32.mrb[42].mxu1 }
 0x218   : > { %v4116_v46 = vpop.f32.mrb[43].mxu1 }
 0x219   : > { %v6378_v30 = vadd.f32 %v4114_v54, %v4040_v41  ;;  %v4117_v18 = vadd.f32 %v4116_v46, %v4115_v33 }
 0x21b   : > { %v6380_v11 = vadd.f32 %v4117_v18, %v4043_v13 }
 0x220   : > { %v4044_v35 = vpop.f32.mrb[28].mxu0 }
 0x221   : > { %v4045_v57 = vpop.f32.mrb[29].mxu0 }
 0x222   : > { %v4046_v1 = vadd.f32 %v4045_v57, %v4044_v35  ;;  %v4047_v3 = vpop.f32.mrb[30].mxu0 }
 0x223   : > { %v4048_v25 = vpop.f32.mrb[31].mxu0 }
 0x224   : > { %v4049_v15 = vadd.f32 %v4048_v25, %v4047_v3 }
 0x22c   : > { %v4118_v44 = vpop.f32.mrb[44].mxu1 }
 0x22d   : > { %v4119_v8 = vpop.f32.mrb[45].mxu1 }
 0x22e   : > { %v4120_v42 = vadd.f32 %v4119_v8, %v4118_v44  ;;  %v4121_v21 = vpop.f32.mrb[46].mxu1 }
 0x22f   : > { %v4122_v40 = vpop.f32.mrb[47].mxu1 }
 0x230   : > { %v6382_v7 = vadd.f32 %v4120_v42, %v4046_v1  ;;  %v4123_v38 = vadd.f32 %v4122_v40, %v4121_v21 }
 0x232   : > { %v6384_v20 = vadd.f32 %v4123_v38, %v4049_v15 }
 0x238   : > { %v4150_v17 = vpop.f32.mrb[32].mxu0 }
 0x239   : > { %v4151_v14 = vpop.f32.mrb[33].mxu0 }
 0x23a   : > { %v4152_v10 = vadd.f32 %v4151_v14, %v4150_v17  ;;  %v4153_v60 = vpop.f32.mrb[34].mxu0 }
 0x23b   : > { %v4154_v6 = vpop.f32.mrb[35].mxu0 }
 0x23c   : > { %v4155_v24 = vadd.f32 %v4154_v6, %v4153_v60  ;;  %v4272_v29 = vadd.f32 %v6310_v49, %v4152_v10 }
 0x23e   : > { %v4278_v32 = vadd.f32 %v6316_v36, %v4155_v24 }
 0x244   : > { %v4156_v58 = vpop.f32.mrb[36].mxu0 }
 0x245   : > { %v4157_v51 = vpop.f32.mrb[37].mxu0 }
 0x246   : > { %v4158_v52 = vadd.f32 %v4157_v51, %v4156_v58  ;;  %v4159_v59 = vpop.f32.mrb[38].mxu0 }
 0x247   : > { %v4160_v23 = vpop.f32.mrb[39].mxu0 }
 0x248   : > { %v4161_v2 = vadd.f32 %v4160_v23, %v4159_v59  ;;  %v4269_v37 = vadd.f32 %v6341_v22, %v4158_v52 }
 0x24a   : > { %v4275_v62 = vadd.f32 %v6344_v19, %v4161_v2 }
 0x250   : > { %v4162_v26 = vpop.f32.mrb[40].mxu0 }
 0x251   : > { %v4163_v0 = vpop.f32.mrb[41].mxu0 }
 0x252   : > { %v4164_v34 = vadd.f32 %v4163_v0, %v4162_v26  ;;  %v4165_v49 = vpop.f32.mrb[42].mxu0 }
 0x253   : > { %v4166_v36 = vpop.f32.mrb[43].mxu0 }
 0x254   : > { %v4167_v12 = vadd.f32 %v4166_v36, %v4165_v49  ;;  %v4254_v4 = vpop.f32.mrb[0].mxu1  ;;  %v4284_v22 = vadd.f32 %v6361_v28, %v4164_v34 }
 0x255   : > { %v4270_v19 = vadd.f32 %v4269_v37, %v4254_v4  ;;  %v3430_v53 = vpop.f32.mrb[1].mxu1 }
 0x256   : > { %v4273_v9 = vadd.f32 %v4272_v29, %v3430_v53  ;;  %v4255_v61 = vpop.f32.mrb[2].mxu1  ;;  %v4290_v55 = vadd.f32 %v6364_v39, %v4167_v12 }
 0x257   : > { %v3518_v41 = vadd.f32 %v4270_v19, %v6396_v45  ;;  %v4276_v63 = vadd.f32 %v4275_v62, %v4255_v61  ;;  %v3433_v47 = vpop.f32.mrb[3].mxu1 }
 0x258   : > { %v3516_v28 = vadd.f32 %v4273_v9, %v6396_v45  ;;  %v4279_v13 = vadd.f32 %v4278_v32, %v3433_v47 }
 0x259   : > { %v3534_v56 = vmax.f32 %v3518_v41, 0.0  ;;  %v3519_v39 = vadd.f32 %v4276_v63, %v6396_v45 }
 0x25a   : > { %v3532_v48 = vmax.f32 %v3516_v28, 0.0  ;;  %v3517_v54 = vadd.f32 %v4279_v13, %v6396_v45 }
 0x25b   : > { %3551 = vst.msk [vmem:[%s6404_s26 + $0x10] sm:$0xff] %vm3548_vm9, %v3534_v56  ;;  %v3535_v33 = vmax.f32 %v3519_v39, 0.0 }
 0x25c   : > { %3549 = vst.msk [vmem:[%s6404_s26] sm:$0xff] %vm3548_vm9, %v3532_v48  ;;  %v3533_v46 = vmax.f32 %v3517_v54, 0.0  ;;  %v4258_v18 = vpop.f32.mrb[4].mxu1 }
 0x25d   : > { %3552 = vst.msk [vmem:[%s6404_s26 + $0x18] sm:$0xff] %vm3548_vm9, %v3535_v33  ;;  %v4168_v35 = vpop.f32.mrb[44].mxu0  ;;  %v3446_v57 = vpop.f32.mrb[5].mxu1 }
 0x25e   : > { %3550 = vst.msk [vmem:[%s6404_s26 + $0x8] sm:$0xff] %vm3548_vm9, %v3533_v46  ;;  %v4169_v1 = vpop.f32.mrb[45].mxu0  ;;  %v4285_v3 = vadd.f32 %v4284_v22, %v3446_v57  ;;  %v4259_v25 = vpop.f32.mrb[6].mxu1 }
 0x25f   : > { %v4170_v15 = vadd.f32 %v4169_v1, %v4168_v35  ;;  %v4171_v44 = vpop.f32.mrb[46].mxu0  ;;  %v3449_v8 = vpop.f32.mrb[7].mxu1 }
 0x260   : > { %v3520_v42 = vadd.f32 %v4285_v3, %v6396_v45  ;;  %v4172_v21 = vpop.f32.mrb[47].mxu0  ;;  %v4291_v40 = vadd.f32 %v4290_v55, %v3449_v8 }
 0x261   : > { %v4281_v38 = vadd.f32 %v6366_v5, %v4170_v15  ;;  %v4173_v17 = vadd.f32 %v4172_v21, %v4171_v44 }
 0x262   : > { %v3536_v14 = vmax.f32 %v3520_v42, 0.0  ;;  %v3521_v10 = vadd.f32 %v4291_v40, %v6396_v45 }
 0x263   : > { %v4282_v60 = vadd.f32 %v4281_v38, %v4258_v18  ;;  %v4287_v6 = vadd.f32 %v6368_v27, %v4173_v17 }
 0x264   : > { %3553 = vst.msk [vmem:[%s6404_s26 + $0x20] sm:$0xff] %vm3548_vm9, %v3536_v14  ;;  %v3537_v24 = vmax.f32 %v3521_v10, 0.0  ;;  %v4262_v29 = vpop.f32.mrb[8].mxu1 }
 0x265   : > { %v3522_v32 = vadd.f32 %v4282_v60, %v6396_v45  ;;  %v4288_v58 = vadd.f32 %v4287_v6, %v4259_v25  ;;  %v3462_v51 = vpop.f32.mrb[9].mxu1 }
 0x266   : > { %3554 = vst.msk [vmem:[%s6404_s26 + $0x28] sm:$0xff] %vm3548_vm9, %v3537_v24  ;;  %v4263_v5 = vpop.f32.mrb[10].mxu1 }
 0x267   : > { %v3538_v52 = vmax.f32 %v3522_v32, 0.0  ;;  %v3523_v59 = vadd.f32 %v4288_v58, %v6396_v45  ;;  %v3465_v23 = vpop.f32.mrb[11].mxu1 }
 0x269   : > { %3555 = vst.msk [vmem:[%s6404_s26 + $0x30] sm:$0xff] %vm3548_vm9, %v3538_v52  ;;  %v3539_v2 = vmax.f32 %v3523_v59, 0.0  ;;  %v4174_v27 = vpop.f32.mrb[48].mxu0 }
 0x26a   : > { %v4175_v37 = vpop.f32.mrb[49].mxu0 }
 0x26b   : > { %3556 = vst.msk [vmem:[%s6404_s26 + $0x38] sm:$0xff] %vm3548_vm9, %v3539_v2  ;;  %v4176_v62 = vadd.f32 %v4175_v37, %v4174_v27  ;;  %v4177_v26 = vpop.f32.mrb[50].mxu0 }
 0x26c   : > { %v4178_v0 = vpop.f32.mrb[51].mxu0  ;;  %v4266_v34 = vpop.f32.mrb[12].mxu1 }
 0x26d   : > { %v4296_v49 = vadd.f32 %v6370_v50, %v4176_v62  ;;  %v4179_v36 = vadd.f32 %v4178_v0, %v4177_v26  ;;  %v3478_v12 = vpop.f32.mrb[13].mxu1 }
 0x26e   : > { %v4267_v4 = vpop.f32.mrb[14].mxu1 }
 0x26f   : > { %v4297_v22 = vadd.f32 %v4296_v49, %v3462_v51  ;;  %v4302_v19 = vadd.f32 %v6372_v16, %v4179_v36  ;;  %v3481_v53 = vpop.f32.mrb[15].mxu1 }
 0x271   : > { %v3524_v9 = vadd.f32 %v4297_v22, %v6396_v45  ;;  %v4303_v61 = vadd.f32 %v4302_v19, %v3465_v23 }
 0x273   : > { %v3540_v55 = vmax.f32 %v3524_v9, 0.0  ;;  %v3525_v41 = vadd.f32 %v4303_v61, %v6396_v45 }
 0x275   : > { %3557 = vst.msk [vmem:[%s6404_s26 + $0x40] sm:$0xff] %vm3548_vm9, %v3540_v55  ;;  %v3541_v63 = vmax.f32 %v3525_v41, 0.0  ;;  %v4180_v47 = vpop.f32.mrb[52].mxu0 }
 0x276   : > { %v4181_v28 = vpop.f32.mrb[53].mxu0 }
 0x277   : > { %3558 = vst.msk [vmem:[%s6404_s26 + $0x48] sm:$0xff] %vm3548_vm9, %v3541_v63  ;;  %v4182_v50 = vadd.f32 %v4181_v28, %v4180_v47  ;;  %v4183_v13 = vpop.f32.mrb[54].mxu0 }
 0x278   : > { %v4184_v56 = vpop.f32.mrb[55].mxu0 }
 0x279   : > { %v4293_v16 = vadd.f32 %v6374_v43, %v4182_v50  ;;  %v4185_v39 = vadd.f32 %v4184_v56, %v4183_v13 }
 0x27b   : > { %v4294_v48 = vadd.f32 %v4293_v16, %v4262_v29  ;;  %v4299_v54 = vadd.f32 %v6376_v31, %v4185_v39 }
 0x27d   : > { %v3526_v33 = vadd.f32 %v4294_v48, %v6396_v45  ;;  %v4300_v46 = vadd.f32 %v4299_v54, %v4263_v5 }
 0x27f   : > { %v3542_v18 = vmax.f32 %v3526_v33, 0.0  ;;  %v3527_v35 = vadd.f32 %v4300_v46, %v6396_v45 }
 0x281   : > { %3559 = vst.msk [vmem:[%s6404_s26 + $0x50] sm:$0xff] %vm3548_vm9, %v3542_v18  ;;  %v3543_v57 = vmax.f32 %v3527_v35, 0.0  ;;  %v4186_v1 = vpop.f32.mrb[56].mxu0 }
 0x282   : > { %v4187_v3 = vpop.f32.mrb[57].mxu0 }
 0x283   : > { %3560 = vst.msk [vmem:[%s6404_s26 + $0x58] sm:$0xff] %vm3548_vm9, %v3543_v57  ;;  %v4188_v43 = vadd.f32 %v4187_v3, %v4186_v1  ;;  %v4189_v25 = vpop.f32.mrb[58].mxu0 }
 0x284   : > { %v4190_v15 = vpop.f32.mrb[59].mxu0 }
 0x285   : > { %v4308_v31 = vadd.f32 %v6378_v30, %v4188_v43  ;;  %v4191_v44 = vadd.f32 %v4190_v15, %v4189_v25 }
 0x287   : > { %v4309_v8 = vadd.f32 %v4308_v31, %v3478_v12  ;;  %v4314_v42 = vadd.f32 %v6380_v11, %v4191_v44 }
 0x289   : > { %v3528_v21 = vadd.f32 %v4309_v8, %v6396_v45  ;;  %v4315_v40 = vadd.f32 %v4314_v42, %v3481_v53 }
 0x28b   : > { %v3544_v38 = vmax.f32 %v3528_v21, 0.0  ;;  %v3529_v17 = vadd.f32 %v4315_v40, %v6396_v45 }
 0x28d   : > { %3561 = vst.msk [vmem:[%s6404_s26 + $0x60] sm:$0xff] %vm3548_vm9, %v3544_v38  ;;  %v3545_v14 = vmax.f32 %v3529_v17, 0.0  ;;  %v4192_v10 = vpop.f32.mrb[60].mxu0 }
 0x28e   : > { %v4193_v60 = vpop.f32.mrb[61].mxu0 }
 0x28f   : > { %3562 = vst.msk [vmem:[%s6404_s26 + $0x68] sm:$0xff] %vm3548_vm9, %v3545_v14  ;;  %v4194_v30 = vadd.f32 %v4193_v60, %v4192_v10  ;;  %v4195_v6 = vpop.f32.mrb[62].mxu0 }
 0x290   : > { %v4196_v24 = vpop.f32.mrb[63].mxu0 }
 0x291   : > { %v4305_v11 = vadd.f32 %v6382_v7, %v4194_v30  ;;  %v4197_v29 = vadd.f32 %v4196_v24, %v4195_v6 }
 0x293   : > { %v4306_v32 = vadd.f32 %v4305_v11, %v4266_v34  ;;  %v4311_v58 = vadd.f32 %v6384_v20, %v4197_v29 }
 0x295   : > { %v3530_v51 = vadd.f32 %v4306_v32, %v6396_v45  ;;  %v4312_v5 = vadd.f32 %v4311_v58, %v4267_v4 }
 0x297   : > { %v3546_v52 = vmax.f32 %v3530_v51, 0.0  ;;  %v3531_v59 = vadd.f32 %v4312_v5, %v6396_v45 }
 0x299   : > { %3563 = vst.msk [vmem:[%s6404_s26 + $0x70] sm:$0xff] %vm3548_vm9, %v3546_v52  ;;  %v3547_v23 = vmax.f32 %v3531_v59, 0.0 }
 0x29b   : > { %3564 = vst.msk [vmem:[%s6404_s26 + $0x78] sm:$0xff] %vm3548_vm9, %v3547_v23 }
 0x29c PF: > { %s15_s22 = sadd.s32 1, %s4523_s22   ;;  %s6537_s18 = smov %s4515_s20 }
 0x29d   : > { %p12_p10 = scmp.ge.s32.totalorder %s15_s22, 10   ;;  %s6538_s19 = smov %s4519_s21 }
 0x29e   : > { %s6539_s20 = smov %s6542_s23  ;;  %s6540_s21 = smov %s6546_s24 }
 0x29f   :  { %14 = sbr.rel (!%p12_p10) target bundleno = 3 (0x3), region = 78 }

// kernel: attnet3d_channel.3
= control target key start
LH: loop header
LB: loop body
LE: loop exit
PB: predicated region body
PF: predicated region fallthrough
CT: control target
= control target key end

     0   :  { %s4654_s18 = smov 0   ;;  %s4656_s19 = smov 0   ;;  %s6574_s0 = inlined_call_operand.vmem [shape: bf16[2,6,10,18,32], index: 0, kind: input, shape index: {}, may-alias: {0,1,2}]   ;;  %s6575_s1 = inlined_call_operand.vmem [shape: bf16[2,6,10,18,32], index: 1, kind: input, shape index: {}, may-alias: {0,1,2}]   ;;  %s6576_s2 = inlined_call_operand.vmem [shape: bf16[2,6,10,18,32], index: 2, kind: input, shape index: {}, may-alias: {0,1,2}]   ;;  %s6577_s3 = inlined_call_operand.vmem [shape: bf16[3,288,32], index: 3, kind: input, shape index: {}]   ;;  %s6578_s4 = inlined_call_operand.vmem [shape: f32[1,32], index: 4, kind: input, shape index: {}]   ;;  %s6579_s5 = inlined_call_operand.vmem [shape: bf16[2,4,128,32], index: 5, kind: output, shape index: {}]  }
   0x1   :  { %s4658_s20 = smov 0   ;;  %s4660_s21 = smov 0  }
   0x2   :  { %s4662_s22 = smov 0  }
   0x3 LB: > { %s24_s23 = sadd.s32 1, %s4611_s20  ;;  %s27_s24 = sadd.s32 1, %s4615_s21  ;;  %s4619_s22 = sphi %s4662_s22, %s15_s22   ;;  %s4615_s21 = sphi %s4660_s21, %s6636_s21   ;;  %s4611_s20 = sphi %s4658_s20, %s6635_s20   ;;  %s4607_s19 = sphi %s4656_s19, %s6634_s19   ;;  %s4603_s18 = sphi %s4654_s18, %s6633_s18  }
   0x4   : > { %p25_p0 = scmp.ge.s32.totalorder %s24_s23, 4  ;;  %p3770_p1 = scmp.ge.s32.totalorder %s4619_s22, 1 }
   0x5   : > { %p247_p2 = scmp.lt.s32.totalorder %s4619_s22, 9 }
   0x6   : > { %s6638_s23 = smov (%p25_p0, %s24_s23), 0  ;;  %s6640_s24 = smov (!%p25_p0, %s27_s24), %s4615_s21 }
   0x7   : > { %p248_p3 = pnand %p3770_p1, %p247_p2  ;;  %p29_p4 = scmp.ge.s32.totalorder %s6640_s24, 2 }
   0x9   : > { %s6642_s24 = smov (%p29_p4, %s6640_s24), 0  ;;  %251 = sbr.rel (%p248_p3) target bundleno = 670 (0x29e), region = 40 }
  0x10   : > { %p303_p5 = scmp.lt.s32.totalorder %s4607_s19, 1  ;;  %p305_p6 = scmp.lt.s32.totalorder %s4603_s18, 5  ;;  %vm593_vm0 = vcmask 1042432   ;;  %v4501_v0 = vld [vmem:[%s6577_s3 + $0x110] sm:$0xff]   ;;  %v4502_v1 = vld [vmem:[%s6577_s3 + $0x118] sm:$0xff]   ;;  %vm594_vm1 = vcmask 1046532  }
  0x11   : > { %s312_s6 = sadd.s32 1, %s4603_s18  ;;  %4304 = vmatprep.subr.bf16.mxu1 %v4501_v0  ;;  %v4504_v2 = vld [vmem:[%s6577_s3 + $0xd0] sm:$0xff]   ;;  %v4505_v3 = vld [vmem:[%s6577_s3 + $0x40] sm:$0xff]   ;;  %v4508_v5 = vld [vmem:[%s6577_s3 + $0xd8] sm:$0xff]   ;;  %vm374_vm2 = vsmask.f32 3328 }
  0x12   : > { %s6644_s19 = smov (!%p303_p5, %s4607_s19), 1  ;;  %4305 = vmatpush3.bf16.msra.mxu1 %v4501_v0  ;;  %p4706_p7 = scmp.lt.s32.totalorder %s312_s6, 5  ;;  %v4506_v4 = vld [vmem:[%s6577_s3 + $0x90] sm:$0xff]   ;;  %4082 = vmatprep.subr.bf16.mxu0 %v4504_v2  ;;  %vm375_vm3 = vsmask.f32 7440  ;;  %vm4755_vm4 = vmor %vm593_vm0, %vm594_vm1  ;;  %v4510_v23 = vld [vmem:[%s6577_s3 + $0x98] sm:$0xff]  }
  0x13   : > { %s306_s27 = scalar_select %p305_p6, %s4603_s18, 5  ;;  %4306 = vmatprep.subr.bf16.mxu1 %v4502_v1  ;;  %4083 = vmatpush3.bf16.msra.mxu0 %v4506_v4  ;;  %v4513_v54 = vld [vmem:[%s6577_s3 + $0xe0] sm:$0xff]   ;;  %vm4842_vm5 = vmor %vm374_vm2, %vm375_vm3  ;;  %vm906_vm6 = vcmask 261120   ;;  %vm931_vm7 = vcmask 523264   ;;  %vm948_vm8 = vcmask 785408   ;;  %vm3612_vm9 = vcmask 257024  }
  0x14   : > { %s4697_s30 = smul.u32 180, %s6644_s19  ;;  %s6646_s6 = smov (!%p4706_p7, %s312_s6), 5  ;;  %4084 = vmatprep.subr.bf16.mxu0 %v4508_v5  ;;  %v4515_v2 = vld [vmem:[%s6577_s3 + $0xa0] sm:$0xff]  }
  0x15   : > { %s4444_s7 = smul.u32 30, %s306_s27  ;;  %s4621_s29 = smov 96  }
  0x16   : > { %4307 = vmatpush3.bf16.msra.mxu1 %v4502_v1  ;;  %s4622_s10 = smov 64   ;;  %s4623_s27 = smov 32  }
  0x17   : > { %s309_s15 = sadd.s32 %s4697_s30, %s4444_s7  ;;  %4156 = vmatprep.subr.bf16.mxu1 %v4505_v3  ;;  %s4446_s7 = smul.u32 30, %s6646_s6  ;;  %4085 = vmatpush3.bf16.msra.mxu0 %v4510_v23 }
  0x18   : > { %s3771_s16 = sshll.u32 %s309_s15, 2  ;;  %4086 = vmatprep.subr.bf16.mxu0 %v4513_v54  ;;  %p336_p9 = scmp.lt.s32.totalorder %s4603_s18, 3 }
  0x19   : > { %s4717_s26 = scalar_lea.vmem %s6574_s0, %s3771_s16  ;;  %s319_s6 = sadd.s32 %s4446_s7, %s4697_s30 }
  0x1a   : > { %v347_v6 = vld [vmem:[%s4717_s26 + $0xc] sm:$0xf]  ;;  %v4724_v7 = vld [vmem:[%s4717_s26 + $0x10] sm:$0xf]  ;;  %v4727_v8 = vld [vmem:[%s4717_s26 + $0x18] sm:$0xf] }
  0x1b   : > { %v411_v9 = vshll.u32 %v4724_v7, 16  ;;  %v4731_v10 = vcombine.low %v347_v6, %v4724_v7  ;;  %v402_v11 = vshrl.u32 %v347_v6, 16  ;;  %v4734_v12 = vld [vmem:[%s4717_s26 + $0x1c] sm:$0xf]  ;;  %v415_v13 = vshrl.u32 %v4724_v7, 16  ;;  %s3772_s11 = sshll.u32 %s319_s6, 2  ;;  %4087 = vmatpush3.bf16.msra.mxu0 %v4515_v2 }
  0x1c   : > { %v405_v14 = vshll.u32 %v347_v6, 16  ;;  %v4741_v15 = vcombine.low %v4727_v8, %v4734_v12  ;;  %v426_v16 = vshrl.u32 %v4727_v8, 16  ;;  %v4745_v17 = vld [vmem:[%s4717_s26 + $0x14] sm:$0x1]  ;;  %v439_v19 = vshrl.u32 %v4734_v12, 16  ;;  %s4790_s14 = scalar_lea.vmem %s6575_s1, %s3772_s11 }
  0x1d   : > { %827 = vrot.lane.b32.xlu1 %v4731_v10, %s4621_s29  ;;  %v4749_v18 = vrot.slane %v402_v11, 4  ;;  %v429_v20 = vshll.u32 %v4727_v8, 16  ;;  %v3778_v22 = vrot.slane %v347_v6, 9  ;;  %v605_v25 = vrot.slane %v4724_v7, 5  ;;  %v4769_v27 = vld [vmem:[%s4717_s26] sm:$0xf] }
  0x1e   : > { %v4762_v24 = vrot.slane %v405_v14, 5  ;;  %868 = vrot.lane.b32.xlu0 %v4741_v15, %s4622_s10  ;;  %v608_v26 = vrot.slane %v4745_v17, 5  ;;  %v428_v28 = vrot.slane %v426_v16, 4  ;;  %v4773_v29 = vld [vmem:[%s4717_s26 + $0x4] sm:$0xf]  ;;  %v3777_v31 = vrot.slane %v4769_v27, 9 }
  0x1f   : > { %v4776_v30 = vld [vmem:[%s4717_s26 + $0x8] sm:$0x1]  ;;  %v431_v32 = vrot.slane %v429_v20, 5  ;;  %v4779_v33 = vrot.slane %v415_v13, 4  ;;  %v606_v34 = vsel %vm4755_vm4, %v3778_v22, %v605_v25  ;;  %v607_v35 = vrot.slane %v605_v25, 4 }
  0x20   : > { %v598_v36 = vrot.slane %v4773_v29, 5  ;;  %v4785_v37 = vld [vmem:[%s4717_s26 + $0x20] sm:$0x1]  ;;  %v601_v38 = vrot.slane %v4776_v30, 5  ;;  %v435_v39 = vshll.u32 %v4734_v12, 16  ;;  %v441_v40 = vrot.slane %v439_v19, 4 }
  0x21   : > { %v445_v41 = vshll.u32 %v4785_v37, 16  ;;  %v4796_v42 = vld [vmem:[%s4790_s14 + $0x18] sm:$0xf]  ;;  %v4799_v43 = vld [vmem:[%s4790_s14 + $0x1c] sm:$0xf]  ;;  %v609_v44 = vsel %vm4755_vm4, %v607_v35, %v608_v26  ;;  %v432_v47 = vor.u32 %v431_v32, %v428_v28  ;;  %v408_v48 = vor.u32 %v4762_v24, %v4749_v18  ;;  %v4517_v28 = vld [vmem:[%s6577_s3 + $0xe8] sm:$0xff]  }
  0x22   : > { %v4804_v45 = vld [vmem:[%s4790_s14 + $0xc] sm:$0xf]  ;;  %v599_v46 = vsel %vm4755_vm4, %v3777_v31, %v598_v36  ;;  %v1152_v49 = vshrl.u32 %v4796_v42, 16  ;;  %v1155_v50 = vshll.u32 %v4796_v42, 16  ;;  %v1165_v51 = vshrl.u32 %v4799_v43, 16  ;;  %4088 = vmatprep.subr.bf16.mxu0 %v4517_v28 }
  0x23   : > { %v4815_v52 = vcombine.low %v4796_v42, %v4799_v43  ;;  %v4818_v53 = vld [vmem:[%s4790_s14 + $0x10] sm:$0xf]  ;;  %v4823_v55 = vcombine.low %v606_v34, %v609_v44  ;;  %v1128_v56 = vshrl.u32 %v4804_v45, 16  ;;  %v1131_v57 = vshll.u32 %v4804_v45, 16  ;;  %v4829_v59 = vld [vmem:[%s4790_s14 + $0x14] sm:$0x1] }
  0x24   : > { %v1141_v58 = vshrl.u32 %v4818_v53, 16  ;;  %v4835_v60 = vcombine.low %v4804_v45, %v4818_v53  ;;  %v3818_v61 = vrot.slane %v4804_v45, 9  ;;  %v1328_v62 = vrot.slane %v4818_v53, 5  ;;  %v1073_v1 = vld [vmem:[%s4790_s14] sm:$0xf] }
  0x25   : > { %1591 = vrot.lane.b32.xlu1 %v4815_v52, %s4622_s10  ;;  %v1331_v63 = vrot.slane %v4829_v59, 5  ;;  %849 = vrot.lane.b32.xlu0 %v4823_v55, %s4623_s27  ;;  %v600_v3 = vrot.slane %v598_v36, 4  ;;  %v433_v4 = vrot.slane %v432_v47, 4  ;;  %v437_v5 = vrot.slane %v435_v39, 5  ;;  %v1074_v11 = vld [vmem:[%s4790_s14 + $0x4] sm:$0xf] }
  0x26   : > { %v447_v6 = vrot.slane %v445_v41, 5  ;;  %v1329_v13 = vsel %vm4755_vm4, %v3818_v61, %v1328_v62  ;;  %v1330_v14 = vrot.slane %v1328_v62, 4  ;;  %v1075_v16 = vld [vmem:[%s4790_s14 + $0x8] sm:$0x1]  ;;  %v3817_v19 = vrot.slane %v1073_v1, 9 }
  0x27   : > { %v1321_v20 = vrot.slane %v1074_v11, 5  ;;  %v602_v22 = vsel %vm4755_vm4, %v600_v3, %v601_v38  ;;  %v438_v23 = vsel %vm4842_vm5, %v433_v4, %v437_v5  ;;  %v442_v25 = vor.u32 %v441_v40, %v437_v5  ;;  %v4519_v41 = vld [vmem:[%s6577_s3 + $0xa8] sm:$0xff]  }
  0x28   : > { %v1324_v26 = vrot.slane %v1075_v16, 5  ;;  %v1332_v31 = vsel %vm4755_vm4, %v1330_v14, %v1331_v63  ;;  %v3803_v32 = vcombine.low %v599_v46, %v602_v22  ;;  %v1104_v39 = vshrl.u32 %v1073_v1, 16  ;;  %4089 = vmatpush3.bf16.msra.mxu0 %v4519_v41 }
  0x29   : > { %1550 = vrot.lane.b32.xlu1 %v4835_v60, %s4621_s29  ;;  %v1322_v34 = vsel %vm4755_vm4, %v3817_v19, %v1321_v20  ;;  %v1323_v35 = vrot.slane %v1321_v20, 4  ;;  %v4869_v36 = vcombine.low %v1329_v13, %v1332_v31  ;;  %v443_v38 = vrot.slane %v442_v25, 4  ;;  %v4523_v25 = vld [vmem:[%s6577_s3 + $0xb0] sm:$0xff]  }
  0x2a   : > { %v1107_v40 = vshll.u32 %v1073_v1, 16  ;;  %v1113_v47 = vshll.u32 %v1074_v11, 16  ;;  %v1117_v54 = vshrl.u32 %v1074_v11, 16  ;;  %v1123_v46 = vshll.u32 %v1075_v16, 16  ;;  %v4521_v11 = vld [vmem:[%s6577_s3 + $0xf0] sm:$0xff]  }
  0x2b   : > { %v1325_v44 = vsel %vm4755_vm4, %v1323_v35, %v1324_v26  ;;  %1572 = vrot.lane.b32.xlu0 %v4869_v36, %s4623_s27  ;;  %v448_v61 = vsel %vm4842_vm5, %v443_v38, %v447_v6  ;;  %v1106_v63 = vrot.slane %v1104_v39, 4  ;;  %v378_v14 = vshrl.u32 %v4769_v27, 16  ;;  %4090 = vmatprep.subr.bf16.mxu0 %v4521_v11 }
  0x2c   : > { %v3843_v62 = vcombine.low %v1322_v34, %v1325_v44  ;;  %v1109_v1 = vrot.slane %v1107_v40, 5  ;;  %v4881_v2 = vcombine.low %v438_v23, %v448_v61  ;;  %v1115_v3 = vrot.slane %v1113_v47, 5  ;;  %4091 = vmatpush3.bf16.msra.mxu0 %v4523_v25 }
  0x2d   : > { %808 = vrot.lane.b32.xlu1 %v3803_v32, %s4622_s10  ;;  %v1119_v4 = vrot.slane %v1117_v54, 4  ;;  %v1125_v5 = vrot.slane %v1123_v46, 5  ;;  %v381_v6 = vshll.u32 %v4769_v27, 16  ;;  %v387_v16 = vshll.u32 %v4773_v29, 16  ;;  %v4899_v32 = vld [vmem:[%s4790_s14 + $0x20] sm:$0x1] }
  0x2e   : > { %v1110_v13 = vor.u32 %v1109_v1, %v1106_v63  ;;  %v391_v20 = vshrl.u32 %v4773_v29, 16  ;;  %v397_v22 = vshll.u32 %v4776_v30, 16  ;;  %v1154_v23 = vrot.slane %v1152_v49, 4  ;;  %v4526_v63 = vld [vmem:[%s6577_s3 + $0xf8] sm:$0xff]  }
  0x2f   : > { %v1120_v19 = vor.u32 %v1119_v4, %v1115_v3  ;;  %887 = vrot.lane.b32.xlu0 %v4881_v2, %s4621_s29  ;;  %v380_v27 = vrot.slane %v378_v14, 4  ;;  %v383_v28 = vrot.slane %v381_v6, 5  ;;  %v389_v31 = vrot.slane %v387_v16, 5  ;;  %v4926_v14 = vld [vmem:[%s4790_s14 + $0x24] sm:$0xf]  ;;  %4092 = vmatprep.subr.bf16.mxu0 %v4526_v63 }
  0x30   : > { %v1111_v26 = vrot.slane %v1110_v13, 4  ;;  %v393_v30 = vrot.slane %v391_v20, 4  ;;  %v399_v34 = vrot.slane %v397_v22, 5  ;;  %v1157_v49 = vrot.slane %v1155_v50, 5 }
  0x31   : > { %1531 = vrot.lane.b32.xlu1 %v3843_v62, %s4622_s10  ;;  %v1121_v29 = vrot.slane %v1120_v19, 4  ;;  %v384_v38 = vor.u32 %v383_v28, %v380_v27  ;;  %v1161_v39 = vshll.u32 %v4799_v43, 16  ;;  %v1167_v40 = vrot.slane %v1165_v51, 4  ;;  %v4934_v19 = vld [vmem:[%s4790_s14 + $0x28] sm:$0xf] }
  0x32   : > { %v1116_v35 = vsel %vm4842_vm5, %v1111_v26, %v1115_v3  ;;  %v394_v44 = vor.u32 %v393_v30, %v389_v31  ;;  %v1158_v47 = vor.u32 %v1157_v49, %v1154_v23  ;;  %v1171_v54 = vshll.u32 %v4899_v32, 16  ;;  %v4948_v30 = vld [vmem:[%s4790_s14 + $0x2c] sm:$0x1] }
  0x33   : > { %v1126_v41 = vsel %vm4842_vm5, %v1121_v29, %v1125_v5  ;;  %v385_v50 = vrot.slane %v384_v38, 4  ;;  %v1163_v61 = vrot.slane %v1161_v39, 5  ;;  %v1130_v62 = vrot.slane %v1128_v56, 4 }
  0x34   : > { %v3835_v46 = vcombine.low %v1116_v35, %v1126_v41  ;;  %v395_v1 = vrot.slane %v394_v44, 4  ;;  %v1159_v51 = vrot.slane %v1158_v47, 4  ;;  %v1173_v3 = vrot.slane %v1171_v54, 5  ;;  %v4962_v41 = vld [vmem:[%s4717_s26 + $0x24] sm:$0xf] }
  0x35   : > { %v1133_v4 = vrot.slane %v1131_v57, 5  ;;  %v390_v5 = vsel %vm4842_vm5, %v385_v50, %v389_v31  ;;  %v1168_v11 = vor.u32 %v1167_v40, %v1163_v61  ;;  %v1137_v56 = vshll.u32 %v4818_v53, 16  ;;  %v4530_v44 = vld [vmem:[%s6577_s3 + $0x100] sm:$0xff]  }
  0x36   : > { %1491 = vrot.lane.b32.xlu0 %v3835_v46, %s4623_s27  ;;  %v1143_v13 = vrot.slane %v1141_v58, 4  ;;  %v400_v6 = vsel %vm4842_vm5, %v395_v1, %v399_v34  ;;  %v1164_v45 = vsel %vm4842_vm5, %v1159_v51, %v1163_v61  ;;  %v1147_v16 = vshll.u32 %v4829_v59, 16  ;;  %v4528_v58 = vld [vmem:[%s6577_s3 + $0xb8] sm:$0xff]  }
  0x37   : > { %v1134_v57 = vor.u32 %v1133_v4, %v1130_v62  ;;  %v3795_v20 = vcombine.low %v390_v5, %v400_v6  ;;  %v1169_v22 = vrot.slane %v1168_v11, 4  ;;  %v1139_v23 = vrot.slane %v1137_v56, 5  ;;  %4093 = vmatpush3.bf16.msra.mxu0 %v4528_v58 }
  0x38   : > { %v3819_v53 = vrot.slane %v4796_v42, 9  ;;  %v1149_v26 = vrot.slane %v1147_v16, 5  ;;  %v1335_v27 = vrot.slane %v4799_v43, 5  ;;  %v1338_v28 = vrot.slane %v4899_v32, 5  ;;  %4094 = vmatprep.subr.bf16.mxu0 %v4530_v44  ;;  %v5041_v44 = vld [vmem:[%s4790_s14 + $0x34] sm:$0xf] }
  0x39   : > { %v1135_v25 = vrot.slane %v1134_v57, 4  ;;  %768 = vrot.lane.b32.xlu1 %v3795_v20, %s4623_s27  ;;  %v1174_v59 = vsel %vm4842_vm5, %v1169_v22, %v1173_v3  ;;  %v1144_v31 = vor.u32 %v1143_v13, %v1139_v23  ;;  %v1176_v29 = vshrl.u32 %v4926_v14, 16  ;;  %v5005_v57 = vld [vmem:[%s4717_s26 + $0x2c] sm:$0x1] }
  0x3a   : > { %v1179_v42 = vshll.u32 %v4926_v14, 16  ;;  %v4950_v34 = vcombine.low %v1164_v45, %v1174_v59  ;;  %v1336_v32 = vsel %vm4755_vm4, %v3819_v53, %v1335_v27  ;;  %v1337_v49 = vrot.slane %v1335_v27, 4  ;;  %v4988_v45 = vld [vmem:[%s4717_s26 + $0x28] sm:$0xf] }
  0x3b   : > { %v1140_v43 = vsel %vm4842_vm5, %v1135_v25, %v1139_v23  ;;  %v1145_v35 = vrot.slane %v1144_v31, 4  ;;  %v1189_v38 = vshrl.u32 %v4934_v19, 16  ;;  %v4959_v39 = vcombine.low %v4926_v14, %v4934_v19  ;;  %v5011_v23 = vld [vmem:[%s4790_s14 + $0x30] sm:$0xf] }
  0x3c   : > { %v1178_v40 = vrot.slane %v1176_v29, 4  ;;  %1610 = vrot.lane.b32.xlu0 %v4950_v34, %s4621_s29  ;;  %v1339_v47 = vsel %vm4755_vm4, %v1337_v49, %v1338_v28  ;;  %v1181_v54 = vrot.slane %v1179_v42, 5  ;;  %v1185_v46 = vshll.u32 %v4934_v19, 16 }
  0x3d   : > { %6599 = vst [vmem:[#allocation2_spill] sm:$0xff] %v4959_v39  ;;  %v1195_v50 = vshll.u32 %v4948_v30, 16  ;;  %v1150_v61 = vsel %vm4842_vm5, %v1145_v35, %v1149_v26  ;;  %v4975_v62 = vcombine.low %v1336_v32, %v1339_v47  ;;  %v1191_v63 = vrot.slane %v1189_v38, 4  ;;  %v4538_v32 = vld [vmem:[%s6577_s3 + $0xc8] sm:$0xff]  }
  0x3e   : > { %v409_v1 = vrot.slane %v408_v48, 4  ;;  %v4980_v51 = vcombine.low %v1140_v43, %v1150_v61  ;;  %v1182_v3 = vor.u32 %v1181_v54, %v1178_v40  ;;  %v1187_v4 = vrot.slane %v1185_v46, 5 }
  0x3f   : > { %v1197_v5 = vrot.slane %v1195_v50, 5  ;;  %v413_v11 = vrot.slane %v411_v9, 5  ;;  %v421_v56 = vshll.u32 %v4745_v17, 16  ;;  %v3779_v13 = vrot.slane %v4727_v8, 9  ;;  %4308 = vmatprep.mubr.msk.bf16.mxu1 %vm906_vm6, %v4975_v62 }
  0x40   : > { %v612_v6 = vrot.slane %v4734_v12, 5  ;;  %1493 = vrot.lane.b32.xlu1 %v4980_v51, %s4623_s27  ;;  %1574 = vrot.lane.b32.xlu0 %v4975_v62, %s4623_s27  ;;  %v1183_v7 = vrot.slane %v1182_v3, 4  ;;  %v1192_v9 = vor.u32 %v1191_v63, %v1187_v4  ;;  %v615_v17 = vrot.slane %v4785_v37, 5  ;;  %v4532_v12 = vld [vmem:[%s6577_s3 + $0xc0] sm:$0xff]  }
  0x41   : > { %v450_v8 = vshrl.u32 %v4962_v41, 16  ;;  %v418_v18 = vor.u32 %v4779_v33, %v413_v11  ;;  %v423_v24 = vrot.slane %v421_v56, 5  ;;  %v453_v37 = vshll.u32 %v4962_v41, 16  ;;  %4095 = vmatpush3.bf16.msra.mxu0 %v4532_v12  ;;  %v4535_v33 = vld [vmem:[%s6577_s3 + $0x108] sm:$0xff]  }
  0x42   : > { %v613_v48 = vsel %vm4755_vm4, %v3779_v13, %v612_v6  ;;  %v1188_v16 = vsel %vm4842_vm5, %v1183_v7, %v1187_v4  ;;  %v1193_v20 = vrot.slane %v1192_v9, 4  ;;  %v614_v22 = vrot.slane %v612_v6, 4  ;;  %4096 = vmatprep.subr.bf16.mxu0 %v4535_v33  ;;  %v4507_v13 = vld [vmem:[%s6577_s3] sm:$0xff]  }
  0x43   : > { %v414_v53 = vsel %vm4842_vm5, %v409_v1, %v413_v11  ;;  %v419_v58 = vrot.slane %v418_v18, 4  ;;  %v463_v25 = vshrl.u32 %v4988_v45, 16  ;;  %v452_v26 = vrot.slane %v450_v8, 4  ;;  %v1087_v11 = vld [vmem:[%s4790_s14 + $0x38] sm:$0x1] }
  0x44   : > { %1533 = vrot.lane.b32.xlu1 %v4869_v36, %s4622_s10  ;;  %1593 = vrot.lane.b32.xlu0 %v4959_v39, %s4622_s10  ;;  %v1198_v27 = vsel %vm4842_vm5, %v1193_v20, %v1197_v5  ;;  %v616_v28 = vsel %vm4755_vm4, %v614_v22, %v615_v17  ;;  %v455_v59 = vrot.slane %v453_v37, 5  ;;  %v459_v31 = vshll.u32 %v4988_v45, 16  ;;  %v4511_v20 = vld [vmem:[%s6577_s3 + $0x8] sm:$0xff]  }
  0x45   : > { %v5028_v29 = vcombine.low %v1188_v16, %v1198_v27  ;;  %v424_v42 = vsel %vm4842_vm5, %v419_v58, %v423_v24  ;;  %v5032_v43 = vcombine.low %v613_v48, %v616_v28  ;;  %v465_v36 = vrot.slane %v463_v25, 4  ;;  %4097 = vmatpush3.bf16.msra.mxu0 %v4538_v32  ;;  %v4509_v48 = vld [vmem:[%s6577_s3 + $0x48] sm:$0xff]   ;;  %v5094_v58 = vld [vmem:[%s4717_s26 + $0x34] sm:$0xf] }
  0x46   : > { %v5037_v49 = vcombine.low %v414_v53, %v424_v42  ;;  %v456_v35 = vor.u32 %v455_v59, %v452_v26  ;;  %v461_v38 = vrot.slane %v459_v31, 5  ;;  %v469_v40 = vshll.u32 %v5005_v57, 16  ;;  %v5091_v53 = vld [vmem:[%s4717_s26 + $0x30] sm:$0xf] }
  0x47   : > { %6600 = vst [vmem:[#allocation3_spill] sm:$0xff] %v5032_v43  ;;  %v3820_v47 = vrot.slane %v4926_v14, 9  ;;  %v1342_v54 = vrot.slane %v4934_v19, 5  ;;  %v1345_v46 = vrot.slane %v4948_v30, 5  ;;  %v1200_v50 = vshrl.u32 %v5011_v23, 16  ;;  %v4514_v25 = vld [vmem:[%s6577_s3 + $0x50] sm:$0xff]  }
  0x48   : > { %1552 = vrot.lane.b32.xlu1 %v4815_v52, %s4621_s29  ;;  %1612 = vrot.lane.b32.xlu0 %v5028_v29, %s4621_s29  ;;  %v457_v61 = vrot.slane %v456_v35, 4  ;;  %v466_v63 = vor.u32 %v465_v36, %v461_v38  ;;  %v471_v1 = vrot.slane %v469_v40, 5  ;;  %v1203_v3 = vshll.u32 %v5011_v23, 16 }
  0x49   : > { %v1343_v14 = vsel %vm4755_vm4, %v3820_v47, %v1342_v54  ;;  %v1344_v19 = vrot.slane %v1342_v54, 4  ;;  %v1213_v30 = vshrl.u32 %v5041_v44, 16  ;;  %v1209_v56 = vshll.u32 %v5041_v44, 16  ;;  %v4518_v54 = vld [vmem:[%s6577_s3 + $0x58] sm:$0xff]  }
  0x4a   : > { %v467_v4 = vrot.slane %v466_v63, 4  ;;  %v5068_v6 = vcombine.low %v4962_v41, %v4988_v45  ;;  %v1202_v9 = vrot.slane %v1200_v50, 4  ;;  %v1205_v17 = vrot.slane %v1203_v3, 5  ;;  %v4522_v3 = vld [vmem:[%s6577_s3 + $0x60] sm:$0xff]  }
  0x4b   : > { %v1346_v5 = vsel %vm4755_vm4, %v1344_v19, %v1345_v46  ;;  %v462_v8 = vsel %vm4842_vm5, %v457_v61, %v461_v38  ;;  %v1211_v18 = vrot.slane %v1209_v56, 5  ;;  %v1215_v24 = vrot.slane %v1213_v30, 4  ;;  %v4524_v56 = vld [vmem:[%s6577_s3 + $0x20] sm:$0xff]  }
  0x4c   : > { %770 = vrot.lane.b32.xlu1 %v5037_v49, %s4623_s27  ;;  %851 = vrot.lane.b32.xlu0 %v5032_v43, %s4623_s27  ;;  %6601 = vst [vmem:[#allocation4_spill] sm:$0xff] %v5068_v6  ;;  %v5070_v7 = vcombine.low %v1343_v14, %v1346_v5  ;;  %v472_v12 = vsel %vm4842_vm5, %v467_v4, %v471_v1  ;;  %v1219_v16 = vshll.u32 %v1087_v11, 16  ;;  %v3821_v26 = vrot.slane %v5011_v23, 9  ;;  %v4520_v1 = vld [vmem:[%s6577_s3 + $0x18] sm:$0xff]  }
  0x4d   : > { %v5088_v22 = vcombine.low %v462_v8, %v472_v12  ;;  %v1206_v37 = vor.u32 %v1205_v17, %v1202_v9  ;;  %v1216_v33 = vor.u32 %v1215_v24, %v1211_v18  ;;  %v619_v28 = vrot.slane %v4988_v45, 5  ;;  %v5145_v5 = vld [vmem:[%s4717_s26 + $0x38] sm:$0x1]  ;;  %v5162_v17 = vld [vmem:[%s4790_s14 + $0x40] sm:$0xf] }
  0x4e   : > { %4309 = vmatmul.mubr.msk.bf16.vlgmr.msra.gmra.mrb[0].mxu1 %vm906_vm6, %v5070_v7  ;;  %v1221_v27 = vrot.slane %v1219_v16, 5  ;;  %v1349_v59 = vrot.slane %v5041_v44, 5  ;;  %v1352_v31 = vrot.slane %v1087_v11, 5  ;;  %v474_v36 = vshrl.u32 %v5091_v53, 16  ;;  %v5148_v11 = vld [vmem:[%s4790_s14 + $0x3c] sm:$0xf] }
  0x4f   : > { %4157 = vmatpush3.bf16.msra.mxu1 %v4507_v13  ;;  %v1207_v42 = vrot.slane %v1206_v37, 4  ;;  %v477_v32 = vshll.u32 %v5091_v53, 16  ;;  %v487_v35 = vshrl.u32 %v5094_v58, 16  ;;  %v1217_v38 = vrot.slane %v1216_v33, 4  ;;  %v4529_v37 = vld [vmem:[%s6577_s3 + $0x28] sm:$0xff]  }
  0x50   : > { %810 = vrot.lane.b32.xlu1 %v4823_v55, %s4622_s10  ;;  %870 = vrot.lane.b32.xlu0 %v5068_v6, %s4622_s10  ;;  %v4516_v55 = vld [vmem:[%s6577_s3 + $0x10] sm:$0xff]   ;;  %v483_v45 = vshll.u32 %v5094_v58, 16  ;;  %v1350_v40 = vsel %vm4755_vm4, %v3821_v26, %v1349_v59  ;;  %v1351_v47 = vrot.slane %v1349_v59, 4  ;;  %v5120_v46 = vcombine.low %v5011_v23, %v5041_v44 }
  0x51   : > { %4158 = vmatprep.subr.bf16.mxu1 %v4509_v48  ;;  %v3780_v50 = vrot.slane %v4962_v41, 9  ;;  %v622_v61 = vrot.slane %v5005_v57, 5  ;;  %v621_v23 = vrot.slane %v619_v28, 4  ;;  %v476_v41 = vrot.slane %v474_v36, 4  ;;  %v1090_v48 = vld [vmem:[%s4790_s14 + $0x44] sm:$0x1] }
  0x52   : > { %v1353_v63 = vsel %vm4755_vm4, %v1351_v47, %v1352_v31  ;;  %v479_v44 = vrot.slane %v477_v32, 5  ;;  %v1212_v14 = vsel %vm4842_vm5, %v1207_v42, %v1211_v18  ;;  %v1222_v19 = vsel %vm4842_vm5, %v1217_v38, %v1221_v27 }
  0x53   : > { %4159 = vmatpush3.bf16.msra.mxu1 %v4511_v20  ;;  %v5133_v57 = vcombine.low %v1350_v40, %v1353_v63  ;;  %v5142_v30 = vrot.slane %v483_v45, 5  ;;  %v489_v4 = vrot.slane %v487_v35, 4  ;;  %v5159_v13 = vcombine.low %v1212_v14, %v1222_v19  ;;  %v4531_v35 = vld [vmem:[%s6577_s3 + $0x70] sm:$0xff]  }
  0x54   : > { %829 = vrot.lane.b32.xlu1 %v4741_v15, %s4621_s29  ;;  %889 = vrot.lane.b32.xlu0 %v5088_v22, %s4621_s29  ;;  %v480_v9 = vor.u32 %v479_v44, %v476_v41  ;;  %v620_v8 = vsel %vm4755_vm4, %v3780_v50, %v619_v28  ;;  %v623_v12 = vsel %vm4755_vm4, %v621_v23, %v622_v61  ;;  %v493_v24 = vshll.u32 %v5145_v5, 16  ;;  %v4533_v50 = vld [vmem:[%s6577_s3 + $0x30] sm:$0xff]   ;;  %v4536_v41 = vld [vmem:[%s6577_s3 + $0x78] sm:$0xff]  }
  0x55   : > { %4160 = vmatprep.subr.bf16.mxu1 %v4514_v25  ;;  %4312 = vmatprep.mubr.msk.bf16.mxu1 %vm906_vm6, %v5133_v57  ;;  %v490_v18 = vor.u32 %v489_v4, %v5142_v30  ;;  %v1224_v16 = vshrl.u32 %v5148_v11, 16  ;;  %v1227_v20 = vshll.u32 %v5148_v11, 16  ;;  %v1237_v33 = vshrl.u32 %v5162_v17, 16  ;;  %v5229_v4 = vld [vmem:[%s4790_s14 + $0x48] sm:$0xf] }
  0x56   : > { %v1233_v25 = vshll.u32 %v5162_v17, 16  ;;  %v3822_v26 = vrot.slane %v5148_v11, 9  ;;  %v5187_v27 = vcombine.low %v620_v8, %v623_v12  ;;  %v481_v28 = vrot.slane %v480_v9, 4  ;;  %v5242_v12 = vld [vmem:[%s4790_s14 + $0x4c] sm:$0xf] }
  0x57   : > { %4161 = vmatpush3.bf16.msra.mxu1 %v4516_v55  ;;  %v1356_v55 = vrot.slane %v5162_v17, 5  ;;  %v1359_v59 = vrot.slane %v1090_v48, 5  ;;  %v491_v31 = vrot.slane %v490_v18, 4  ;;  %v495_v42 = vrot.slane %v493_v24, 5  ;;  %v5245_v18 = vld [vmem:[%s4790_s14 + $0x50] sm:$0x1] }
  0x58   : > { %1495 = vrot.lane.b32.xlu1 %v4950_v34, %s4623_s27  ;;  %1576 = vrot.lane.b32.xlu0 %v5070_v7, %s4623_s27  ;;  %6602 = vst [vmem:[#allocation5_spill] sm:$0xff] %v5187_v27  ;;  %v1226_v38 = vrot.slane %v1224_v16, 4  ;;  %v1229_v45 = vrot.slane %v1227_v20, 5  ;;  %v5194_v40 = vrot.slane %v1233_v25, 5  ;;  %v1239_v47 = vrot.slane %v1237_v33, 4 }
  0x59   : > { %4162 = vmatprep.subr.bf16.mxu1 %v4518_v54  ;;  %v1357_v36 = vsel %vm4755_vm4, %v3822_v26, %v1356_v55  ;;  %v1358_v32 = vrot.slane %v1356_v55, 4  ;;  %v5207_v61 = vcombine.low %v5091_v53, %v5094_v58  ;;  %v496_v23 = vsel %vm4842_vm5, %v491_v31, %v495_v42  ;;  %v5251_v16 = vld [vmem:[%s4790_s14 + $0x54] sm:$0xf]  ;;  %v5255_v33 = vld [vmem:[%s4790_s14 + $0x58] sm:$0xf] }
  0x5a   : > { %v1230_v44 = vor.u32 %v1229_v45, %v1226_v38  ;;  %v1240_v14 = vor.u32 %v1239_v47, %v5194_v40  ;;  %v1243_v19 = vshll.u32 %v1090_v48, 16  ;;  %v6580_v8 = vrot.slane %v5094_v58, 5  ;;  %v5258_v25 = vld [vmem:[%s4790_s14 + $0x5c] sm:$0x1]  ;;  %v5263_v31 = vld [vmem:[%s4790_s14 + $0x60] sm:$0xf] }
  0x5b   : > { %4163 = vmatpush3.bf16.msra.mxu1 %v4520_v1  ;;  %v1360_v54 = vsel %vm4755_vm4, %v1358_v32, %v1359_v59  ;;  %v486_v1 = vsel %vm4842_vm5, %v481_v28, %v5142_v30  ;;  %v5226_v30 = vld [vmem:[%s4717_s26 + $0x40] sm:$0xf]  ;;  %v3823_v48 = vrot.slane %v5229_v4, 9  ;;  %v3781_v28 = vrot.slane %v5091_v53, 9  ;;  %v5278_v38 = vld [vmem:[%s4790_s14 + $0x68] sm:$0x1] }
  0x5c   : > { %1535 = vrot.lane.b32.xlu1 %v4975_v62, %s4622_s10  ;;  %1595 = vrot.lane.b32.xlu0 %v5120_v46, %s4622_s10  ;;  %v4527_v62 = vld [vmem:[%s6577_s3 + $0x68] sm:$0xff]   ;;  %v5209_v63 = vcombine.low %v1357_v36, %v1360_v54  ;;  %v5238_v9 = vcombine.low %v486_v1, %v496_v23  ;;  %v1231_v20 = vrot.slane %v1230_v44, 4  ;;  %v1241_v26 = vrot.slane %v1240_v14, 4  ;;  %v5281_v45 = vld [vmem:[%s4717_s26 + $0x44] sm:$0x1] }
  0x5d   : > { %4164 = vmatprep.subr.bf16.mxu1 %v4522_v3  ;;  %v5220_v3 = vld [vmem:[%s4717_s26 + $0x3c] sm:$0xf]  ;;  %v1245_v55 = vrot.slane %v1243_v19, 5  ;;  %v1366_v59 = vrot.slane %v5245_v18, 5  ;;  %v628_v42 = vrot.slane %v6580_v8, 4  ;;  %v629_v36 = vrot.slane %v5145_v5, 5 }
  0x5e   : > { %4313 = vmatmul.mubr.msk.bf16.gmra.mrb[4].mxu1 %vm906_vm6, %v5209_v63  ;;  %v498_v24 = vshrl.u32 %v5220_v3, 16  ;;  %v511_v53 = vshrl.u32 %v5226_v30, 16  ;;  %v507_v32 = vshll.u32 %v5226_v30, 16  ;;  %v3824_v1 = vrot.slane %v5251_v16, 9  ;;  %v5287_v23 = vld [vmem:[%s4790_s14 + $0x6c] sm:$0xf] }
  0x5f   : > { %4165 = vmatpush3.bf16.msra.mxu1 %v4524_v56  ;;  %v4539_v56 = vld [vmem:[%s6577_s3 + $0x38] sm:$0xff]   ;;  %v5290_v5 = vld [vmem:[%s4790_s14 + $0x70] sm:$0xf]  ;;  %v1370_v14 = vrot.slane %v5255_v33, 5  ;;  %v5297_v19 = vld [vmem:[%s4790_s14 + $0x74] sm:$0x1] }
  0x60   : > { %1554 = vrot.lane.b32.xlu1 %v4959_v39, %s4621_s29  ;;  %1614 = vrot.lane.b32.xlu0 %v5159_v13, %s4621_s29  ;;  %v500_v47 = vrot.slane %v498_v24, 4  ;;  %v1407_v8 = vrot.slane %v5278_v38, 5  ;;  %v6603_v39 = vrot.slane %v5094_v58, 5 }
  0x61   : > { %4166 = vmatprep.subr.bf16.mxu1 %v4527_v62  ;;  %v1363_v62 = vrot.slane %v5242_v12, 5 }
  0x63   : > { %4167 = vmatpush3.bf16.msra.mxu1 %v4529_v37  ;;  %v501_v37 = vshll.u32 %v5220_v3, 16  ;;  %v1364_v54 = vsel %vm4755_vm4, %v3823_v48, %v1363_v62  ;;  %v1373_v48 = vrot.slane %v5258_v25, 5 }
  0x64   : > { %772 = vrot.lane.b32.xlu1 %v4881_v2, %s4623_s27  ;;  %853 = vrot.lane.b32.xlu0 %v5187_v27, %s4623_s27 }
  0x65   : > { %4168 = vmatprep.subr.bf16.mxu1 %v4531_v35  ;;  %v5275_v35 = vld [vmem:[%s4790_s14 + $0x64] sm:$0xf]  ;;  %v503_v44 = vrot.slane %v501_v37, 5  ;;  %v513_v37 = vrot.slane %v511_v53, 4 }
  0x67   : > { %4169 = vmatpush3.bf16.msra.mxu1 %v4533_v50  ;;  %v1365_v50 = vrot.slane %v1363_v62, 4  ;;  %v3825_v62 = vrot.slane %v5263_v31, 9 }
  0x68   : > { %812 = vrot.lane.b32.xlu1 %v5032_v43, %s4622_s10  ;;  %872 = vrot.lane.b32.xlu0 %v5207_v61, %s4622_s10 }
  0x69   : > { %4170 = vmatprep.subr.bf16.mxu1 %v4536_v41  ;;  %v1236_v41 = vsel %vm4842_vm5, %v1231_v20, %v5194_v40  ;;  %v1367_v24 = vsel %vm4755_vm4, %v1365_v50, %v1366_v59  ;;  %v5311_v40 = vcombine.low %v5148_v11, %v5162_v17  ;;  %v509_v20 = vrot.slane %v507_v32, 5 }
  0x6a   : > { %v1372_v59 = vrot.slane %v1370_v14, 4  ;;  %v1404_v50 = vrot.slane %v5275_v35, 5  ;;  %v3826_v11 = vrot.slane %v5287_v23, 9  ;;  %v1438_v17 = vrot.slane %v5290_v5, 5 }
  0x6b   : > { %4171 = vmatpush3.bf16.msra.mxu1 %v4539_v56  ;;  %v1246_v56 = vsel %vm4842_vm5, %v1241_v26, %v1245_v55  ;;  %v5313_v26 = vcombine.low %v1364_v54, %v1367_v24  ;;  %v1371_v55 = vsel %vm4755_vm4, %v3824_v1, %v1370_v14  ;;  %v1441_v1 = vrot.slane %v5297_v19, 5 }
  0x6c   : > { %831 = vrot.lane.b32.xlu1 %v5068_v6, %s4621_s29  ;;  %891 = vrot.lane.b32.xlu0 %v5238_v9, %s4621_s29  ;;  %v5319_v43 = vcombine.low %v1236_v41, %v1246_v56  ;;  %v517_v6 = vshll.u32 %v5281_v45, 16  ;;  %v1374_v53 = vsel %vm4755_vm4, %v1372_v59, %v1373_v48  ;;  %v1405_v32 = vsel %vm4755_vm4, %v3825_v62, %v1404_v50 }
  0x6d   : > { %4316 = vmatprep.mubr.msk.bf16.mxu1 %vm906_vm6, %v5313_v26  ;;  %v1406_v54 = vrot.slane %v1404_v50, 4  ;;  %v504_v41 = vor.u32 %v503_v44, %v500_v47  ;;  %v514_v14 = vor.u32 %v513_v37, %v509_v20  ;;  %v5335_v56 = vcombine.low %v1371_v55, %v1374_v53 }
  0x6e   : > { %v1440_v24 = vrot.slane %v1438_v17, 4  ;;  %v627_v48 = vsel %vm4755_vm4, %v3781_v28, %v6603_v39  ;;  %v630_v62 = vsel %vm4755_vm4, %v628_v42, %v629_v36  ;;  %v1251_v50 = vshll.u32 %v5229_v4, 16 }
  0x6f   : > { %v1408_v59 = vsel %vm4755_vm4, %v1406_v54, %v1407_v8  ;;  %4317 = vmatmul.mubr.msk.bf16.gmra.mrb[8].mxu1 %vm906_vm6, %v5335_v56  ;;  %v1439_v58 = vsel %vm4755_vm4, %v3826_v11, %v1438_v17  ;;  %v5359_v8 = vcombine.low %v627_v48, %v630_v62  ;;  %v505_v28 = vrot.slane %v504_v41, 4  ;;  %v5387_v62 = vld [vmem:[%s4717_s26 + $0x4c] sm:$0xf] }
  0x70   : > { %1497 = vrot.lane.b32.xlu1 %v5028_v29, %s4623_s27  ;;  %1578 = vrot.lane.b32.xlu0 %v5133_v57, %s4623_s27  ;;  %v5349_v47 = vcombine.low %v1405_v32, %v1408_v59  ;;  %v1442_v39 = vsel %vm4755_vm4, %v1440_v24, %v1441_v1  ;;  %v515_v42 = vrot.slane %v514_v14, 4  ;;  %v519_v36 = vrot.slane %v517_v6, 5  ;;  %v5381_v24 = vld [vmem:[%s4717_s26 + $0x48] sm:$0xf] }
  0x71   : > { %6604 = vst [vmem:[#allocation6_spill] sm:$0xff] %v5359_v8  ;;  %v1261_v44 = vshrl.u32 %v5242_v12, 16  ;;  %v1257_v37 = vshll.u32 %v5242_v12, 16  ;;  %v1253_v11 = vrot.slane %v1251_v50, 5  ;;  %v3856_v17 = vcombine.low %v1439_v58, %v1442_v39 }
  0x72   : > { %4320 = vmatprep.mubr.msk.bf16.mxu1 %vm906_vm6, %v5349_v47  ;;  %v5371_v6 = vcombine.low %v5220_v3, %v5226_v30  ;;  %v510_v53 = vsel %vm4842_vm5, %v505_v28, %v509_v20  ;;  %v520_v32 = vsel %vm4842_vm5, %v515_v42, %v519_v36  ;;  %v1267_v54 = vshll.u32 %v5245_v18, 16 }
  0x73   : > { %v5378_v1 = vrot.slane %v1257_v37, 5  ;;  %v1263_v41 = vrot.slane %v1261_v44, 4  ;;  %v5384_v48 = vcombine.low %v510_v53, %v520_v32  ;;  %v5391_v20 = vcombine.low %v5263_v31, %v5275_v35 }
  0x74   : > { %1537 = vrot.lane.b32.xlu1 %v5070_v7, %s4622_s10  ;;  %1597 = vrot.lane.b32.xlu0 %v5311_v40, %s4622_s10  ;;  %v1248_v7 = vshrl.u32 %v5229_v4, 16  ;;  %6605 = vst [vmem:[#allocation7_spill] sm:$0xff] %v5371_v6  ;;  %v1376_v59 = vshrl.u32 %v5263_v31, 16  ;;  %v1379_v18 = vshll.u32 %v5263_v31, 16  ;;  %v3782_v50 = vrot.slane %v5220_v3, 9 }
  0x75   : > { %v1385_v58 = vshll.u32 %v5275_v35, 16  ;;  %v1389_v39 = vshrl.u32 %v5275_v35, 16  ;;  %v1264_v28 = vor.u32 %v1263_v41, %v5378_v1  ;;  %v1395_v44 = vshll.u32 %v5278_v38, 16 }
  0x76   : > { %v1250_v55 = vrot.slane %v1248_v7, 4  ;;  %v1269_v7 = vrot.slane %v1267_v54, 5  ;;  %v1378_v42 = vrot.slane %v1376_v59, 4  ;;  %v1381_v36 = vrot.slane %v1379_v18, 5  ;;  %v5415_v18 = vld [vmem:[%s4717_s26 + $0x50] sm:$0x1] }
  0x77   : > { %4321 = vmatmul.mubr.msk.bf16.gmra.mrb[12].mxu1 %vm906_vm6, %v3856_v17  ;;  %v633_v37 = vrot.slane %v5226_v30, 5  ;;  %v522_v17 = vshrl.u32 %v5381_v24, 16  ;;  %v525_v3 = vshll.u32 %v5381_v24, 16  ;;  %v535_v53 = vshrl.u32 %v5387_v62, 16 }
  0x78   : > { %1556 = vrot.lane.b32.xlu1 %v5120_v46, %s4621_s29  ;;  %1616 = vrot.lane.b32.xlu0 %v5319_v43, %s4621_s29  ;;  %v1254_v14 = vor.u32 %v1253_v11, %v1250_v55  ;;  %v1387_v55 = vrot.slane %v1385_v58, 5  ;;  %v1391_v11 = vrot.slane %v1389_v39, 4  ;;  %v1382_v32 = vor.u32 %v1381_v36, %v1378_v42 }
  0x79   : > { %v531_v35 = vshll.u32 %v5387_v62, 16  ;;  %v1397_v30 = vrot.slane %v1395_v44, 5  ;;  %v1265_v54 = vrot.slane %v1264_v28, 4  ;;  %v636_v59 = vrot.slane %v5281_v45, 5 }
  0x7a   : > { %v1255_v31 = vrot.slane %v1254_v14, 4  ;;  %v1392_v38 = vor.u32 %v1391_v11, %v1387_v55  ;;  %v1383_v41 = vrot.slane %v1382_v32, 4  ;;  %v635_v14 = vrot.slane %v633_v37, 4 }
  0x7b   : > { %v5419_v39 = vcombine.low %v5229_v4, %v5242_v12  ;;  %v524_v42 = vrot.slane %v522_v17, 4  ;;  %v527_v36 = vrot.slane %v525_v3, 5  ;;  %v634_v28 = vsel %vm4755_vm4, %v3782_v50, %v633_v37 }
  0x7c   : > { %774 = vrot.lane.b32.xlu1 %v5088_v22, %s4623_s27  ;;  %855 = vrot.lane.b32.xlu0 %v5359_v8, %s4623_s27  ;;  %v1393_v58 = vrot.slane %v1392_v38, 4  ;;  %v1260_v45 = vsel %vm4842_vm5, %v1255_v31, %v5378_v1  ;;  %v537_v4 = vrot.slane %v535_v53, 4  ;;  %v1270_v44 = vsel %vm4842_vm5, %v1265_v54, %v1269_v7 }
  0x7d   : > { %v637_v3 = vsel %vm4755_vm4, %v635_v14, %v636_v59  ;;  %v1410_v1 = vshrl.u32 %v5287_v23, 16  ;;  %v1413_v50 = vshll.u32 %v5287_v23, 16  ;;  %v1419_v31 = vshll.u32 %v5290_v5, 16 }
  0x7e   : > { %v1398_v12 = vsel %vm4842_vm5, %v1393_v58, %v1397_v30  ;;  %v528_v37 = vor.u32 %v527_v36, %v524_v42  ;;  %v541_v53 = vshll.u32 %v5415_v18, 16  ;;  %v1423_v7 = vshrl.u32 %v5290_v5, 16 }
  0x7f   : > { %v5452_v32 = vcombine.low %v1260_v45, %v1270_v44  ;;  %v1415_v38 = vrot.slane %v1413_v50, 5  ;;  %v1421_v30 = vrot.slane %v1419_v31, 5  ;;  %v5454_v59 = vcombine.low %v634_v28, %v637_v3 }
  0x80   : > { %814 = vrot.lane.b32.xlu1 %v5187_v27, %s4622_s10  ;;  %874 = vrot.lane.b32.xlu0 %v5371_v6, %s4622_s10  ;;  %v1388_v27 = vsel %vm4842_vm5, %v1383_v41, %v1387_v55  ;;  %v533_v55 = vrot.slane %v531_v35, 5  ;;  %v1412_v35 = vrot.slane %v1410_v1, 4  ;;  %v1425_v41 = vrot.slane %v1423_v7, 4 }
  0x81   : > { %v5436_v11 = vcombine.low %v1388_v27, %v1398_v12  ;;  %v1429_v27 = vshll.u32 %v5297_v19, 16  ;;  %6606 = vst [vmem:[#allocation8_spill] sm:$0xff] %v5454_v59  ;;  %v543_v58 = vrot.slane %v541_v53, 5  ;;  %v529_v19 = vrot.slane %v528_v37, 4 }
  0x82   : > { %v538_v54 = vor.u32 %v537_v4, %v533_v55  ;;  %v1416_v14 = vor.u32 %v1415_v38, %v1412_v35  ;;  %v1426_v42 = vor.u32 %v1425_v41, %v1421_v30  ;;  %v1272_v45 = vshrl.u32 %v5251_v16, 16 }
  0x83   : > { %v1431_v36 = vrot.slane %v1429_v27, 5  ;;  %v1275_v4 = vshll.u32 %v5251_v16, 16  ;;  %v1281_v3 = vshll.u32 %v5255_v33, 16  ;;  %v1285_v1 = vshrl.u32 %v5255_v33, 16 }
  0x84   : > { %833 = vrot.lane.b32.xlu1 %v5207_v61, %s4621_s29  ;;  %893 = vrot.lane.b32.xlu0 %v5384_v48, %s4621_s29  ;;  %v1417_v12 = vrot.slane %v1416_v14, 4  ;;  %v539_v28 = vrot.slane %v538_v54, 4  ;;  %v1427_v50 = vrot.slane %v1426_v42, 4  ;;  %v5476_v37 = vcombine.low %v5381_v24, %v5387_v62 }
  0x85   : > { %v1274_v7 = vrot.slane %v1272_v45, 4  ;;  %v1277_v27 = vrot.slane %v1275_v4, 5  ;;  %v534_v38 = vsel %vm4842_vm5, %v529_v19, %v533_v55  ;;  %v1283_v54 = vrot.slane %v1281_v3, 5  ;;  %v5494_v19 = vld [vmem:[%s4717_s26 + $0x54] sm:$0xf] }
  0x86   : > { %v1422_v31 = vsel %vm4842_vm5, %v1417_v12, %v1421_v30  ;;  %v1432_v53 = vsel %vm4842_vm5, %v1427_v50, %v1431_v36  ;;  %v544_v30 = vsel %vm4842_vm5, %v539_v28, %v543_v58  ;;  %v1287_v41 = vrot.slane %v1285_v1, 4  ;;  %v5499_v12 = vld [vmem:[%s4717_s26 + $0x58] sm:$0xf] }
  0x87   : > { %v5478_v35 = vcombine.low %v1422_v31, %v1432_v53  ;;  %v5490_v36 = vcombine.low %v534_v38, %v544_v30  ;;  %v1278_v45 = vor.u32 %v1277_v27, %v1274_v7  ;;  %v1291_v55 = vshll.u32 %v5258_v25, 16 }
  0x88   : > { %1499 = vrot.lane.b32.xlu1 %v5159_v13, %s4623_s27  ;;  %1580 = vrot.lane.b32.xlu0 %v5209_v63, %s4623_s27  ;;  %v1288_v4 = vor.u32 %v1287_v41, %v1283_v54  ;;  %v640_v3 = vrot.slane %v5387_v62, 5  ;;  %v546_v1 = vshrl.u32 %v5494_v19, 16  ;;  %v549_v50 = vshll.u32 %v5494_v19, 16 }
  0x89   : > { %v1279_v28 = vrot.slane %v1278_v45, 4  ;;  %v1293_v53 = vrot.slane %v1291_v55, 5  ;;  %v559_v7 = vshrl.u32 %v5499_v12, 16  ;;  %v555_v27 = vshll.u32 %v5499_v12, 16 }
  0x8a   : > { %v1289_v31 = vrot.slane %v1288_v4, 4  ;;  %v5514_v30 = vcombine.low %v5251_v16, %v5255_v33  ;;  %v3783_v41 = vrot.slane %v5381_v24, 9  ;;  %v643_v45 = vrot.slane %v5415_v18, 5 }
  0x8b   : > { %v548_v4 = vrot.slane %v546_v1, 4  ;;  %v551_v16 = vrot.slane %v549_v50, 5  ;;  %v557_v18 = vrot.slane %v555_v27, 5  ;;  %v561_v17 = vrot.slane %v559_v7, 4 }
  0x8c   : > { %1539 = vrot.lane.b32.xlu1 %v5133_v57, %s4622_s10  ;;  %1599 = vrot.lane.b32.xlu0 %v5419_v39, %s4622_s10  ;;  %v1294_v55 = vsel %vm4842_vm5, %v1289_v31, %v1293_v53  ;;  %v4575_v53 = vld [vmem:[%s4790_s14] sm:$0xf] }
  0x8d   : > { %v552_v50 = vor.u32 %v551_v16, %v548_v4  ;;  %v562_v31 = vor.u32 %v561_v17, %v557_v18 }
  0x8f   : > { %v5460_v57 = vpop.permute.xlu1 %827 }
  0x90   : > { %1558 = vrot.lane.b32.xlu1 %v5311_v40, %s4621_s29  ;;  %1618 = vrot.lane.b32.xlu0 %v5452_v32, %s4621_s29  ;;  %v869_v44 = vpop.permute.xlu0 %868 }
  0x94   : > { %776 = vrot.lane.b32.xlu1 %v5238_v9, %s4623_s27  ;;  %857 = vrot.lane.b32.xlu0 %v5454_v59, %s4623_s27 }
  0x97   : > { %v5484_v14 = vpop.permute.xlu1 %1591  ;;  %v850_v42 = vpop.permute.xlu0 %849 }
  0x98   : > { %816 = vrot.lane.b32.xlu1 %v5359_v8, %s4622_s10  ;;  %876 = vrot.lane.b32.xlu0 %v5476_v37, %s4622_s10  ;;  %v975_v38 = vsel %vm906_vm6, %v5037_v49, %v850_v42  ;;  %v1284_v49 = vsel %vm4842_vm5, %v1279_v28, %v1283_v54  ;;  %v642_v42 = vrot.slane %v640_v3, 4 }
  0x99   : > { %v998_v24 = vsel %vm931_vm7, %v975_v38, %v869_v44  ;;  %v5535_v54 = vcombine.low %v1284_v49, %v1294_v55  ;;  %v641_v44 = vsel %vm4755_vm4, %v3783_v41, %v640_v3  ;;  %v4577_v3 = vld [vmem:[%s4717_s26] sm:$0xf]  ;;  %v4578_v41 = vld [vmem:[%s4717_s26 + $0x4] sm:$0xf] }
  0x9a   : > { %v644_v1 = vsel %vm4755_vm4, %v642_v42, %v643_v45  ;;  %v3787_v49 = vcombine.low %v4577_v3, %v4578_v41  ;;  %v553_v45 = vrot.slane %v552_v50, 4  ;;  %v563_v42 = vrot.slane %v562_v31, 4 }
  0x9b   : > { %v5496_v58 = vpop.permute.xlu1 %1550  ;;  %v5548_v38 = vcombine.low %v641_v44, %v644_v1 }
  0x9c   : > { %835 = vrot.lane.b32.xlu1 %v5371_v6, %s4621_s29  ;;  %895 = vrot.lane.b32.xlu0 %v5490_v36, %s4621_s29  ;;  %v5529_v6 = vld [vmem:[%s4717_s26 + $0x5c] sm:$0x1] }
  0x9d   : > { %v1573_v25 = vpop.permute.xlu0 %1572  ;;  %6607 = vst [vmem:[#allocation9_spill] sm:$0xff] %v5548_v38 }
  0x9e   : > { %v1695_v4 = vsel %vm906_vm6, %v4980_v51, %v1573_v25  ;;  %v558_v51 = vsel %vm4842_vm5, %v553_v45, %v557_v18  ;;  %v5584_v18 = vld [vmem:[%s4717_s26 + $0x60] sm:$0xf] }
  0x9f   : > { %v809_v62 = vpop.permute.xlu1 %808  ;;  %v1718_v50 = vsel %vm931_vm7, %v1695_v4, %v5484_v14 }
  0xa0   : > { %1501 = vrot.lane.b32.xlu1 %v5319_v43, %s4623_s27  ;;  %1582 = vrot.lane.b32.xlu0 %v5313_v26, %s4623_s27 }
  0xa1   : > { %v888_v33 = vpop.permute.xlu0 %887 }
  0xa2   : > { %v1014_v8 = vsel %vm948_vm8, %v998_v24, %v888_v33  ;;  %v5562_v24 = vcombine.low %v5494_v19, %v5499_v12 }
  0xa3   : > { %2284 = vmatprep.mubr.bf16.mxu1 %v1014_v8  ;;  %v1532_v28 = vpop.permute.xlu1 %1531  ;;  %v565_v8 = vshll.u32 %v5529_v6, 16 }
  0xa4   : > { %1541 = vrot.lane.b32.xlu1 %v5209_v63, %s4622_s10  ;;  %1601 = vrot.lane.b32.xlu0 %v5514_v30, %s4622_s10  ;;  %v4576_v63 = vld [vmem:[%s4790_s14 + $0x4] sm:$0xf]  ;;  %s323_s14 = sadd.s32 2, %s4603_s18  ;;  %s6650_s18 = smov (!%p336_p9, %s4603_s18), 3 }
  0xa5   : > { %v3827_v7 = vcombine.low %v4575_v53, %v4576_v63  ;;  %v567_v17 = vrot.slane %v565_v8, 5  ;;  %v5587_v63 = vld [vmem:[%s4717_s26 + $0x64] sm:$0xf]  ;;  %p5599_p8 = scmp.lt.s32.totalorder %s323_s14, 5 }
  0xa6   : > { %v666_v3 = vshrl.u32 %v5587_v63, 16  ;;  %v662_v41 = vshll.u32 %v5587_v63, 16 }
  0xa7   : > { %v568_v25 = vsel %vm4842_vm5, %v563_v42, %v567_v17  ;;  %v3784_v42 = vrot.slane %v5494_v19, 9  ;;  %v650_v17 = vrot.slane %v5529_v6, 5  ;;  %s6648_s14 = smov (!%p5599_p8, %s323_s14), 5 }
  0xa8   : > { %1560 = vrot.lane.b32.xlu1 %v5419_v39, %s4621_s29  ;;  %1620 = vrot.lane.b32.xlu0 %v5535_v54, %s4621_s29  ;;  %v1492_v27 = vpop.permute.xlu0 %1491  ;;  %v668_v19 = vrot.slane %v666_v3, 4  ;;  %s4447_s9 = smul.u32 30, %s6648_s14 }
  0xa9   : > { %v1631_v16 = vsel %vm906_vm6, %v3827_v7, %v1492_v27  ;;  %v647_v7 = vrot.slane %v5499_v12, 5  ;;  %v653_v27 = vshrl.u32 %v5584_v18, 16 }
  0xaa   : > { %v1654_v31 = vsel %vm931_vm7, %v1631_v16, %v1532_v28  ;;  %s330_s12 = sadd.s32 %s4447_s9, %s4697_s30 }
  0xab   : > { %v769_v33 = vpop.permute.xlu1 %768  ;;  %v1670_v14 = vsel %vm948_vm8, %v1654_v31, %v5496_v58  ;;  %v656_v58 = vshll.u32 %v5584_v18, 16  ;;  %v649_v12 = vrot.slane %v647_v7, 4  ;;  %v655_v4 = vrot.slane %v653_v27, 4  ;;  %v4553_v27 = vld [vmem:[%s6577_s3 + $0x160] sm:$0xff]   ;;  %s3773_s30 = sshll.u32 %s330_s12, 2 }
  0xac   : > { %778 = vrot.lane.b32.xlu1 %v5384_v48, %s4623_s27  ;;  %859 = vrot.lane.b32.xlu0 %v5548_v38, %s4623_s27  ;;  %v909_v55 = vsel %vm906_vm6, %v3787_v49, %v769_v33  ;;  %s5682_s7 = scalar_lea.vmem %s6576_s2, %s3773_s30 }
  0xad   : > { %v933_v44 = vsel %vm931_vm7, %v909_v55, %v809_v62  ;;  %v5579_v62 = vcombine.low %v558_v51, %v568_v25  ;;  %v658_v16 = vrot.slane %v656_v58, 5  ;;  %4230 = vmatprep.subr.bf16.mxu0 %v4553_v27 }
  0xae   : > { %v1611_v1 = vpop.permute.xlu0 %1610  ;;  %v950_v8 = vsel %vm948_vm8, %v933_v44, %v5460_v57  ;;  %v5613_v44 = vrot.slane %v662_v41, 5 }
  0xaf   : > { %v1734_v53 = vsel %vm948_vm8, %v1718_v50, %v1611_v1  ;;  %2285 = vmatmul.mubr.bf16.vlgmr.msra.gmra.mrb[16].mxu1 %v950_v8  ;;  %v5619_v50 = vld [vmem:[%s4717_s26 + $0x68] sm:$0x1] }
  0xb0   : > { %818 = vrot.lane.b32.xlu1 %v5454_v59, %s4622_s10  ;;  %878 = vrot.lane.b32.xlu0 %v5562_v24, %s4622_s10 }
  0xb1   : > { %1958 = vmatprep.mubr.bf16.mxu0 %v1734_v53  ;;  %v659_v53 = vor.u32 %v658_v16, %v655_v4  ;;  %v5659_v4 = vld [vmem:[%s4717_s26 + $0x70] sm:$0xf]  ;;  %v4556_v16 = vld [vmem:[%s6577_s3 + $0x80] sm:$0xff]  }
  0xb2   : > { %1959 = vmatmul.mubr.bf16.vlgmr.msra.gmra.mrb[0].mxu0 %v1670_v14  ;;  %v1494_v28 = vpop.permute.xlu1 %1493  ;;  %v1575_v57 = vpop.permute.xlu0 %1574  ;;  %v669_v14 = vor.u32 %v668_v19, %v5613_v44  ;;  %4324 = vmatprep.subr.bf16.mxu1 %v4556_v16 }
  0xb3   : > { %v1634_v33 = vsel %vm906_vm6, %v4835_v60, %v1494_v28  ;;  %v1698_v55 = vsel %vm906_vm6, %v4950_v34, %v1575_v57  ;;  %v648_v60 = vsel %vm4755_vm4, %v3784_v42, %v647_v7  ;;  %v651_v34 = vsel %vm4755_vm4, %v649_v12, %v650_v17  ;;  %v4555_v42 = vld [vmem:[%s6577_s3 + $0x120] sm:$0xff]   ;;  %v5648_v12 = vld [vmem:[%s4717_s26 + $0x6c] sm:$0xf]  ;;  %4325 = vmatpush3.bf16.msra.mxu1 %v4556_v16  ;;  %v5712_v16 = vld [vmem:[%s4717_s26 + $0x74] sm:$0x1] }
  0xb4   : > { %837 = vrot.lane.b32.xlu1 %v5476_v37, %s4621_s29  ;;  %897 = vrot.lane.b32.xlu0 %v5579_v62, %s4621_s29  ;;  %v672_v28 = vshll.u32 %v5619_v50, 16  ;;  %v5638_v7 = vcombine.low %v648_v60, %v651_v34  ;;  %v660_v58 = vrot.slane %v659_v53, 4  ;;  %v670_v3 = vrot.slane %v669_v14, 4 }
  0xb5   : > { %v5656_v17 = vcombine.low %v5584_v18, %v5587_v63  ;;  %4231 = vmatpush3.bf16.msra.mxu0 %v4555_v42  ;;  %v690_v60 = vshll.u32 %v5648_v12, 16  ;;  %v696_v34 = vshll.u32 %v5659_v4, 16  ;;  %v681_v42 = vrot.slane %v5587_v63, 5 }
  0xb6   : > { %v1534_v49 = vpop.permute.xlu1 %1533  ;;  %v1594_v45 = vpop.permute.xlu0 %1593  ;;  %v674_v41 = vrot.slane %v672_v28, 5  ;;  %v665_v19 = vsel %vm4842_vm5, %v660_v58, %v5613_v44  ;;  %v4557_v44 = vld [vmem:[%s6577_s3 + $0x168] sm:$0xff]  }
  0xb7   : > { %v1720_v51 = vsel %vm931_vm7, %v1698_v55, %v1594_v45  ;;  %v1656_v31 = vsel %vm931_vm7, %v1634_v33, %v1534_v49  ;;  %4232 = vmatprep.subr.bf16.mxu0 %v4557_v44  ;;  %v692_v58 = vrot.slane %v690_v60, 5  ;;  %v683_v44 = vrot.slane %v681_v42, 4 }
  0xb8   : > { %1503 = vrot.lane.b32.xlu1 %v5452_v32, %s4623_s27  ;;  %1584 = vrot.lane.b32.xlu0 %v5335_v56, %s4623_s27 }
  0xba   : > { %v1553_v25 = vpop.permute.xlu1 %1552  ;;  %v1613_v1 = vpop.permute.xlu0 %1612 }
  0xbb   : > { %v1737_v6 = vsel %vm948_vm8, %v1720_v51, %v1613_v1  ;;  %v1673_v8 = vsel %vm948_vm8, %v1656_v31, %v1553_v25  ;;  %v675_v51 = vsel %vm4842_vm5, %v670_v3, %v674_v41  ;;  %v687_v31 = vshrl.u32 %v5648_v12, 16  ;;  %v5699_v3 = vld [vmem:[%s5682_s7] sm:$0xf] }
  0xbc   : > { %1543 = vrot.lane.b32.xlu1 %v5313_v26, %s4622_s10  ;;  %1603 = vrot.lane.b32.xlu0 %v5391_v20, %s4622_s10  ;;  %v5695_v14 = vcombine.low %v665_v19, %v675_v51  ;;  %v5701_v41 = vrot.slane %v696_v34, 5  ;;  %v2480_v19 = vshll.u32 %v5699_v3, 16  ;;  %v4560_v51 = vld [vmem:[%s6577_s3 + $0x130] sm:$0xff]   ;;  %v3785_v34 = vrot.slane %v5584_v18, 9 }
  0xbd   : > { %1966 = vmatprep.mubr.bf16.mxu0 %v1737_v6  ;;  %v689_v27 = vrot.slane %v687_v31, 4 }
  0xbe   : > { %1967 = vmatmul.mubr.bf16.gmra.mrb[4].mxu0 %v1673_v8  ;;  %v771_v26 = vpop.permute.xlu1 %770  ;;  %v852_v57 = vpop.permute.xlu0 %851  ;;  %v4558_v8 = vld [vmem:[%s6577_s3 + $0x128] sm:$0xff]   ;;  %6609 = vst [vmem:[#allocation10_spill] sm:$0xff] %v5695_v14 }
  0xbf   : > { %v912_v33 = vsel %vm906_vm6, %v4731_v10, %v771_v26  ;;  %v978_v55 = vsel %vm906_vm6, %v4881_v2, %v852_v57  ;;  %v700_v2 = vshrl.u32 %v5659_v4, 16  ;;  %4233 = vmatpush3.bf16.msra.mxu0 %v4558_v8  ;;  %v684_v8 = vrot.slane %v5619_v50, 5 }
  0xc0   : > { %1562 = vrot.lane.b32.xlu1 %v5514_v30, %s4621_s29  ;;  %1622 = vrot.lane.b32.xlu0 %v5436_v11, %s4621_s29 }
  0xc2   : > { %v811_v49 = vpop.permute.xlu1 %810  ;;  %v871_v45 = vpop.permute.xlu0 %870 }
  0xc3   : > { %v1000_v25 = vsel %vm931_vm7, %v978_v55, %v871_v45  ;;  %v935_v53 = vsel %vm931_vm7, %v912_v33, %v811_v49  ;;  %v702_v49 = vrot.slane %v700_v2, 4  ;;  %v5704_v45 = vld [vmem:[%s5682_s7 + $0x4] sm:$0xf]  ;;  %v4559_v33 = vld [vmem:[%s6577_s3 + $0x170] sm:$0xff]   ;;  %v2477_v55 = vshrl.u32 %v5699_v3, 16  ;;  %v4561_v2 = vld [vmem:[%s6577_s3 + $0x178] sm:$0xff]  }
  0xc4   : > { %780 = vrot.lane.b32.xlu1 %v5490_v36, %s4623_s27  ;;  %861 = vrot.lane.b32.xlu0 %v5638_v7, %s4623_s27  ;;  %v2486_v63 = vshll.u32 %v5704_v45, 16  ;;  %v2490_v31 = vshrl.u32 %v5704_v45, 16 }
  0xc5   : > { %4234 = vmatprep.subr.bf16.mxu0 %v4559_v33  ;;  %v703_v60 = vor.u32 %v702_v49, %v5701_v41  ;;  %v2482_v49 = vrot.slane %v2480_v19, 5  ;;  %v4563_v19 = vld [vmem:[%s6577_s3 + $0x180] sm:$0xff]  }
  0xc6   : > { %v830_v1 = vpop.permute.xlu1 %829  ;;  %v890_v6 = vpop.permute.xlu0 %889  ;;  %4235 = vmatpush3.bf16.msra.mxu0 %v4560_v51 }
  0xc7   : > { %v1017_v10 = vsel %vm948_vm8, %v1000_v25, %v890_v6  ;;  %v953_v28 = vsel %vm948_vm8, %v935_v53, %v830_v1  ;;  %v693_v6 = vor.u32 %v692_v58, %v689_v27  ;;  %v5740_v27 = vld [vmem:[%s5682_s7 + $0x8] sm:$0x1]  ;;  %v2479_v58 = vrot.slane %v2477_v55, 4  ;;  %4236 = vmatprep.subr.bf16.mxu0 %v4561_v2 }
  0xc8   : > { %820 = vrot.lane.b32.xlu1 %v5548_v38, %s4622_s10  ;;  %880 = vrot.lane.b32.xlu0 %v5656_v17, %s4622_s10 }
  0xc9   : > { %2292 = vmatprep.mubr.bf16.mxu1 %v1017_v10  ;;  %v706_v10 = vshll.u32 %v5712_v16, 16  ;;  %v694_v51 = vrot.slane %v693_v6, 4  ;;  %v6610_v6 = vcombine.low %v5287_v23, %v5290_v5  ;;  %v2483_v2 = vor.u32 %v2482_v49, %v2479_v58  ;;  %v5772_v23 = vld [vmem:[%s5682_s7 + $0x1c] sm:$0xf]  ;;  %v4564_v5 = vld [vmem:[%s6577_s3 + $0x140] sm:$0xff]  }
  0xca   : > { %2293 = vmatmul.mubr.bf16.gmra.mrb[20].mxu1 %v953_v28  ;;  %v1496_v26 = vpop.permute.xlu1 %1495  ;;  %v1577_v57 = vpop.permute.xlu0 %1576  ;;  %v5789_v49 = vld [vmem:[%s5682_s7 + $0x14] sm:$0x1] }
  0xcb   : > { %v1637_v53 = vsel %vm906_vm6, %v4815_v52, %v1496_v26  ;;  %v1701_v28 = vsel %vm906_vm6, %v5028_v29, %v1577_v57  ;;  %v5746_v52 = vrot.slane %v2486_v63, 5  ;;  %v2492_v26 = vrot.slane %v2490_v31, 4 }
  0xcc   : > { %839 = vrot.lane.b32.xlu1 %v5562_v24, %s4621_s29  ;;  %899 = vrot.lane.b32.xlu0 %v5695_v14, %s4621_s29  ;;  %v704_v57 = vrot.slane %v703_v60, 4  ;;  %v708_v55 = vrot.slane %v706_v10, 5  ;;  %v682_v63 = vsel %vm4755_vm4, %v3785_v34, %v681_v42  ;;  %v2496_v31 = vshll.u32 %v5740_v27, 16  ;;  %v5763_v60 = vld [vmem:[%s5682_s7 + $0x10] sm:$0xf] }
  0xcd   : > { %v5766_v10 = vld [vmem:[%s5682_s7 + $0x18] sm:$0xf]  ;;  %v5861_v14 = vld [vmem:[%s5682_s7 + $0x24] sm:$0xf] }
  0xce   : > { %v1536_v25 = vpop.permute.xlu1 %1535  ;;  %v1596_v1 = vpop.permute.xlu0 %1595  ;;  %v709_v58 = vsel %vm4842_vm5, %v704_v57, %v708_v55  ;;  %v5807_v57 = vrot.slane %v2483_v2, 4 }
  0xcf   : > { %v1722_v18 = vsel %vm931_vm7, %v1701_v28, %v1596_v1  ;;  %v1658_v1 = vsel %vm931_vm7, %v1637_v53, %v1536_v25  ;;  %v699_v28 = vsel %vm4842_vm5, %v694_v51, %v5701_v41  ;;  %v2538_v51 = vshrl.u32 %v5772_v23, 16  ;;  %v4568_v53 = vld [vmem:[%s6577_s3 + $0x88] sm:$0xff]  }
  0xd0   : > { %1505 = vrot.lane.b32.xlu1 %v5535_v54, %s4623_s27  ;;  %1586 = vrot.lane.b32.xlu0 %v5349_v47, %s4623_s27  ;;  %v4562_v47 = vld [vmem:[%s6577_s3 + $0x138] sm:$0xff]  }
  0xd1   : > { %4237 = vmatpush3.bf16.msra.mxu0 %v4562_v47  ;;  %v2701_v47 = vrot.slane %v5763_v60, 5  ;;  %4326 = vmatprep.subr.bf16.mxu1 %v4568_v53 }
  0xd2   : > { %v1555_v33 = vpop.permute.xlu1 %1554  ;;  %v1615_v50 = vpop.permute.xlu0 %1614  ;;  %4238 = vmatprep.subr.bf16.mxu0 %v4563_v19  ;;  %v4567_v19 = vld [vmem:[%s6577_s3 + $0x148] sm:$0xff]   ;;  %4327 = vmatpush3.bf16.msra.mxu1 %v4568_v53  ;;  %v6612_v53 = vcombine.low %v5648_v12, %v5659_v4 }
  0xd3   : > { %v1740_v29 = vsel %vm948_vm8, %v1722_v18, %v1615_v50  ;;  %v1676_v25 = vsel %vm948_vm8, %v1658_v1, %v1555_v33  ;;  %v2525_v18 = vshrl.u32 %v5766_v10, 16  ;;  %v2528_v33 = vshll.u32 %v5766_v10, 16 }
  0xd4   : > { %1545 = vrot.lane.b32.xlu1 %v5335_v56, %s4622_s10  ;;  %1605 = vrot.lane.b32.xlu0 %v6610_v6, %s4622_s10  ;;  %v685_v56 = vsel %vm4755_vm4, %v683_v44, %v684_v8  ;;  %v2493_v44 = vor.u32 %v2492_v26, %v5746_v52  ;;  %v5784_v8 = vld [vmem:[%s5682_s7 + $0xc] sm:$0xf]  ;;  %v5800_v50 = vrot.slane %v2496_v31, 5  ;;  %v2534_v26 = vshll.u32 %v5772_v23, 16 }
  0xd5   : > { %1974 = vmatprep.mubr.bf16.mxu0 %v1740_v29  ;;  %4239 = vmatpush3.bf16.msra.mxu0 %v4564_v5  ;;  %v5798_v41 = vcombine.low %v682_v63, %v685_v56  ;;  %v4565_v29 = vld [vmem:[%s6577_s3 + $0x188] sm:$0xff]   ;;  %v5815_v63 = vcombine.low %v699_v28, %v709_v58  ;;  %v3945_v56 = vrot.slane %v5699_v3, 9  ;;  %v2703_v2 = vrot.slane %v2701_v47, 4  ;;  %v4569_v28 = vld [vmem:[%s6577_s3 + $0x190] sm:$0xff]   ;;  %v5831_v3 = vld [vmem:[%s5682_s7 + $0x20] sm:$0x1] }
  0xd6   : > { %1975 = vmatmul.mubr.bf16.gmra.mrb[8].mxu0 %v1676_v25  ;;  %v773_v42 = vpop.permute.xlu1 %772  ;;  %v854_v34 = vpop.permute.xlu0 %853  ;;  %v2494_v31 = vrot.slane %v2493_v44, 4  ;;  %v2704_v25 = vrot.slane %v5789_v49, 5  ;;  %4240 = vmatprep.subr.bf16.mxu0 %v4565_v29  ;;  %v2694_v5 = vrot.slane %v5704_v45, 5  ;;  %v2530_v55 = vrot.slane %v2528_v33, 5 }
  0xd7   : > { %6611 = vst [vmem:[#allocation11_spill] sm:$0xff] %v5798_v41  ;;  %v5833_v45 = vrot.slane %v2534_v26, 5  ;;  %v2540_v44 = vrot.slane %v2538_v51, 4  ;;  %v2501_v58 = vshrl.u32 %v5784_v8, 16  ;;  %v915_v33 = vsel %vm906_vm6, %v4741_v15, %v773_v42  ;;  %v4570_v51 = vld [vmem:[%s6577_s3 + $0x150] sm:$0xff]  }
  0xd8   : > { %1564 = vrot.lane.b32.xlu1 %v5391_v20, %s4621_s29  ;;  %1624 = vrot.lane.b32.xlu0 %v5478_v35, %s4621_s29  ;;  %v3946_v35 = vrot.slane %v5784_v8, 9  ;;  %v2527_v20 = vrot.slane %v2525_v18, 4  ;;  %v2504_v18 = vshll.u32 %v5784_v8, 16  ;;  %v981_v29 = vsel %vm906_vm6, %v5088_v22, %v854_v34 }
  0xd9   : > { %4241 = vmatpush3.bf16.msra.mxu0 %v4567_v19  ;;  %v2510_v19 = vshll.u32 %v5763_v60, 16  ;;  %v2489_v15 = vsel %vm4842_vm5, %v5807_v57, %v5746_v52  ;;  %v2499_v22 = vsel %vm4842_vm5, %v2494_v31, %v5800_v50  ;;  %v2503_v50 = vrot.slane %v2501_v58, 4  ;;  %v5872_v57 = vld [vmem:[%s5682_s7 + $0x28] sm:$0xf] }
  0xda   : > { %v813_v1 = vpop.permute.xlu1 %812  ;;  %v873_v6 = vpop.permute.xlu0 %872  ;;  %4242 = vmatprep.subr.bf16.mxu0 %v4569_v28  ;;  %v2702_v42 = vsel %vm4755_vm4, %v3946_v35, %v2701_v47  ;;  %v2696_v28 = vrot.slane %v2694_v5, 4  ;;  %v2541_v47 = vor.u32 %v2540_v44, %v5833_v45  ;;  %v4571_v35 = vld [vmem:[%s6577_s3 + $0x198] sm:$0xff]   ;;  %v2506_v31 = vrot.slane %v2504_v18, 5 }
  0xdb   : > { %v1002_v26 = vsel %vm931_vm7, %v981_v29, %v873_v6  ;;  %v2705_v6 = vsel %vm4755_vm4, %v2703_v2, %v2704_v25  ;;  %v2544_v29 = vshll.u32 %v5831_v3, 16  ;;  %v937_v52 = vsel %vm931_vm7, %v915_v33, %v813_v1 }
  0xdc   : > { %782 = vrot.lane.b32.xlu1 %v5579_v62, %s4623_s27  ;;  %863 = vrot.lane.b32.xlu0 %v5798_v41, %s4623_s27  ;;  %v2514_v41 = vshrl.u32 %v5763_v60, 16  ;;  %v5878_v25 = vrot.slane %v2510_v19, 5  ;;  %v3963_v58 = vcombine.low %v2489_v15, %v2499_v22  ;;  %v2695_v33 = vsel %vm4755_vm4, %v3945_v56, %v2694_v5 }
  0xdd   : > { %4243 = vmatpush3.bf16.msra.mxu0 %v4570_v51  ;;  %v2549_v51 = vshrl.u32 %v5861_v14, 16  ;;  %v2562_v19 = vshrl.u32 %v5872_v57, 16  ;;  %v2542_v5 = vrot.slane %v2541_v47, 4  ;;  %v2546_v15 = vrot.slane %v2544_v29, 5 }
  0xde   : > { %v832_v38 = vpop.permute.xlu1 %831  ;;  %v892_v59 = vpop.permute.xlu0 %891  ;;  %v2516_v2 = vrot.slane %v2514_v41, 4  ;;  %4244 = vmatprep.subr.bf16.mxu0 %v4571_v35  ;;  %v6613_v41 = vrot.slane %v5740_v27, 5  ;;  %v2708_v22 = vrot.slane %v5772_v23, 5  ;;  %v2507_v27 = vor.u32 %v2506_v31, %v2503_v50 }
  0xdf   : > { %v1020_v34 = vsel %vm948_vm8, %v1002_v26, %v892_v59  ;;  %v2531_v59 = vor.u32 %v2530_v55, %v2527_v20  ;;  %v956_v1 = vsel %vm948_vm8, %v937_v52, %v832_v38  ;;  %v4572_v55 = vld [vmem:[%s6577_s3 + $0x158] sm:$0xff]   ;;  %v2552_v26 = vshll.u32 %v5861_v14, 16 }
  0xe0   : > { %822 = vrot.lane.b32.xlu1 %v5638_v7, %s4622_s10  ;;  %882 = vrot.lane.b32.xlu0 %v6612_v53, %s4622_s10  ;;  %v5887_v38 = vcombine.low %v2702_v42, %v2705_v6  ;;  %v2698_v18 = vsel %vm4755_vm4, %v2696_v28, %v6613_v41  ;;  %v2517_v42 = vor.u32 %v2516_v2, %v5878_v25  ;;  %v6614_v52 = vshll.u32 %v5789_v49, 16  ;;  %v5920_v2 = vld [vmem:[%s5682_s7 + $0x2c] sm:$0x1] }
  0xe1   : > { %2300 = vmatprep.mubr.bf16.mxu1 %v1020_v34  ;;  %v2558_v34 = vshll.u32 %v5872_v57, 16  ;;  %4245 = vmatpush3.bf16.msra.mxu0 %v4572_v55  ;;  %v2532_v56 = vrot.slane %v2531_v59, 4  ;;  %v2551_v35 = vrot.slane %v2549_v51, 4  ;;  %v3971_v59 = vcombine.low %v2695_v33, %v2698_v18 }
  0xe2   : > { %2301 = vmatmul.mubr.bf16.gmra.mrb[24].mxu1 %v956_v1  ;;  %v1498_v20 = vpop.permute.xlu1 %1497  ;;  %v1579_v44 = vpop.permute.xlu0 %1578  ;;  %v2522_v53 = vrot.slane %v6614_v52, 5  ;;  %v3947_v29 = vrot.slane %v5766_v10, 9  ;;  %v2564_v50 = vrot.slane %v2562_v19, 4  ;;  %v2710_v1 = vrot.slane %v2708_v22, 4 }
  0xe3   : > { %v5908_v47 = vrot.slane %v2558_v34, 5  ;;  %v2537_v49 = vsel %vm4842_vm5, %v2532_v56, %v5833_v45  ;;  %v2711_v31 = vrot.slane %v5831_v3, 5  ;;  %v2508_v33 = vrot.slane %v2507_v27, 4 }
  0xe4   : > { %841 = vrot.lane.b32.xlu1 %v5656_v17, %s4621_s29  ;;  %901 = vrot.lane.b32.xlu0 %v5815_v63, %s4621_s29  ;;  %v5905_v17 = vcombine.low %v5766_v10, %v5772_v23  ;;  %v2554_v63 = vrot.slane %v2552_v26, 5  ;;  %v2547_v23 = vsel %vm4842_vm5, %v2542_v5, %v2546_v15  ;;  %v6615_v10 = vld [vmem:[#allocation2_spill] sm:$0xff]  ;;  %v2518_v51 = vrot.slane %v2517_v42, 4  ;;  %v5943_v5 = vld [vmem:[%s5682_s7 + $0x30] sm:$0xf] }
  0xe5   : > { %v1640_v55 = vsel %vm906_vm6, %v6615_v10, %v1498_v20  ;;  %v5930_v3 = vcombine.low %v5784_v8, %v5763_v60  ;;  %v2565_v20 = vor.u32 %v2564_v50, %v5908_v47  ;;  %v2568_v34 = vshll.u32 %v5920_v2, 16  ;;  %v5954_v42 = vld [vmem:[%s5682_s7 + $0x34] sm:$0xf] }
  0xe6   : > { %v1538_v6 = vpop.permute.xlu1 %1537  ;;  %v1598_v28 = vpop.permute.xlu0 %1597  ;;  %v2555_v18 = vor.u32 %v2554_v63, %v2551_v35  ;;  %v2709_v56 = vsel %vm4755_vm4, %v3947_v29, %v2708_v22  ;;  %v2513_v8 = vsel %vm4842_vm5, %v2508_v33, %v5878_v25  ;;  %v2523_v15 = vsel %vm4842_vm5, %v2518_v51, %v2522_v53 }
  0xe7   : > { %v2712_v27 = vsel %vm4755_vm4, %v2710_v1, %v2711_v31  ;;  %v2715_v52 = vrot.slane %v5872_v57, 5  ;;  %v2566_v35 = vrot.slane %v2565_v20, 4  ;;  %v2570_v63 = vrot.slane %v2568_v34, 5 }
  0xe8   : > { %2864 = vrot.lane.b32.xlu1 %v3963_v58, %s4623_s27  ;;  %2945 = vrot.lane.b32.xlu0 %v5887_v38, %s4623_s27  ;;  %v1704_v58 = vsel %vm906_vm6, %v5159_v13, %v1579_v44  ;;  %v1660_v13 = vsel %vm931_vm7, %v1640_v55, %v1538_v6  ;;  %v5938_v44 = vcombine.low %v2537_v49, %v2547_v23  ;;  %v2576_v25 = vshll.u32 %v5943_v5, 16 }
  0xe9   : > { %v1724_v26 = vsel %vm931_vm7, %v1704_v58, %v1598_v28  ;;  %v2556_v28 = vrot.slane %v2555_v18, 4  ;;  %v5963_v53 = vcombine.low %v2513_v8, %v2523_v15  ;;  %v5965_v29 = vcombine.low %v2709_v56, %v2712_v27 }
  0xea   : > { %v1557_v45 = vpop.permute.xlu1 %1556  ;;  %v1617_v41 = vpop.permute.xlu0 %1616  ;;  %v2586_v50 = vshrl.u32 %v5954_v42, 16  ;;  %v2582_v49 = vshll.u32 %v5954_v42, 16  ;;  %v715_v23 = vrot.slane %v5659_v4, 5  ;;  %v3948_v1 = vrot.slane %v5861_v14, 9 }
  0xeb   : > { %v1743_v19 = vsel %vm948_vm8, %v1724_v26, %v1617_v41  ;;  %v1679_v60 = vsel %vm948_vm8, %v1660_v13, %v1557_v45  ;;  %v3786_v31 = vrot.slane %v5648_v12, 9  ;;  %v718_v10 = vrot.slane %v5712_v16, 5  ;;  %v5980_v41 = vld [vmem:[%s5682_s7 + $0x38] sm:$0x1] }
  0xec   : > { %2904 = vrot.lane.b32.xlu1 %v3971_v59, %s4622_s10  ;;  %2964 = vrot.lane.b32.xlu0 %v5905_v17, %s4622_s10  ;;  %v2573_v59 = vshrl.u32 %v5943_v5, 16  ;;  %v2717_v33 = vrot.slane %v2715_v52, 4  ;;  %v2718_v51 = vrot.slane %v5920_v2, 5  ;;  %v2561_v26 = vsel %vm4842_vm5, %v2556_v28, %v5908_v47  ;;  %v6616_v2 = vld [vmem:[#allocation4_spill] sm:$0xff] }
  0xed   : > { %1982 = vmatprep.mubr.bf16.mxu0 %v1743_v19  ;;  %v2571_v45 = vsel %vm4842_vm5, %v2566_v35, %v2570_v63  ;;  %v2578_v18 = vrot.slane %v2576_v25, 5  ;;  %v5988_v12 = vcombine.low %v5861_v14, %v5872_v57  ;;  %v5990_v16 = vrot.slane %v2582_v49, 5  ;;  %v6024_v63 = vld [vmem:[%s6577_s3 + $0x1a0] sm:$0xff]   ;;  %v6028_v25 = vld [vmem:[%s5682_s7 + $0x3c] sm:$0xf] }
  0xee   : > { %1983 = vmatmul.mubr.bf16.gmra.mrb[12].mxu0 %v1679_v60  ;;  %v775_v6 = vpop.permute.xlu1 %774  ;;  %v856_v22 = vpop.permute.xlu0 %855  ;;  %v2575_v4 = vrot.slane %v2573_v59, 4  ;;  %v2588_v47 = vrot.slane %v2586_v50, 4  ;;  %v2716_v34 = vsel %vm4755_vm4, %v3948_v1, %v2715_v52  ;;  %v717_v13 = vrot.slane %v715_v23, 4  ;;  %v6031_v49 = vld [vmem:[%s5682_s7 + $0x40] sm:$0xf]  ;;  %4344 = vmatprep.subr.bf16.mxu1 %v6024_v63 }
  0xef   : > { %v918_v19 = vsel %vm906_vm6, %v6616_v2, %v775_v6  ;;  %v984_v20 = vsel %vm906_vm6, %v5238_v9, %v856_v22  ;;  %v5999_v14 = vcombine.low %v2561_v26, %v2571_v45  ;;  %v2719_v57 = vsel %vm4755_vm4, %v2717_v33, %v2718_v51 }
  0xf0   : > { %2923 = vrot.lane.b32.xlu1 %v5930_v3, %s4621_s29  ;;  %2983 = vrot.lane.b32.xlu0 %v5938_v44, %s4621_s29  ;;  %v2592_v15 = vshll.u32 %v5980_v41, 16  ;;  %v2579_v9 = vor.u32 %v2578_v18, %v2575_v4  ;;  %v6007_v6 = vsel %vm4755_vm4, %v3786_v31, %v715_v23  ;;  %v6011_v22 = vsel %vm4755_vm4, %v717_v13, %v718_v10 }
  0xf1   : > { %v2589_v52 = vor.u32 %v2588_v47, %v5990_v16  ;;  %v6034_v23 = vcombine.low %v2716_v34, %v2719_v57  ;;  %v2722_v31 = vrot.slane %v5954_v42, 5  ;;  %v2600_v33 = vshll.u32 %v6028_v25, 16 }
  0xf2   : > { %v815_v55 = vpop.permute.xlu1 %814  ;;  %v875_v58 = vpop.permute.xlu0 %874  ;;  %v2594_v1 = vrot.slane %v2592_v15, 5  ;;  %v2580_v10 = vrot.slane %v2579_v9, 4  ;;  %v2610_v51 = vshrl.u32 %v6031_v49, 16  ;;  %v2606_v26 = vshll.u32 %v6031_v49, 16 }
  0xf3   : > { %v1004_v56 = vsel %vm931_vm7, %v984_v20, %v875_v58  ;;  %v939_v28 = vsel %vm931_vm7, %v918_v19, %v815_v55  ;;  %v2590_v55 = vrot.slane %v2589_v52, 4  ;;  %v2597_v58 = vshrl.u32 %v6028_v25, 16  ;;  %v6079_v52 = vld [vmem:[%s5682_s7 + $0x48] sm:$0xf] }
  0xf4   : > { %2866 = vrot.lane.b32.xlu1 %v5963_v53, %s4623_s27  ;;  %2947 = vrot.lane.b32.xlu0 %v5965_v29, %s4623_s27  ;;  %v6047_v18 = vcombine.low %v5943_v5, %v5954_v42  ;;  %v3949_v47 = vrot.slane %v5943_v5, 9  ;;  %v2724_v2 = vrot.slane %v2722_v31, 4  ;;  %v2725_v19 = vrot.slane %v5980_v41, 5 }
  0xf5   : > { %v2585_v20 = vsel %vm4842_vm5, %v2580_v10, %v5990_v16  ;;  %v2595_v42 = vsel %vm4842_vm5, %v2590_v55, %v2594_v1  ;;  %v2599_v34 = vrot.slane %v2597_v58, 4  ;;  %v2602_v13 = vrot.slane %v2600_v33, 5  ;;  %v2463_v16 = vld [vmem:[%s5682_s7 + $0x44] sm:$0x1] }
  0xf6   : > { %v834_v60 = vpop.permute.xlu1 %833  ;;  %v894_v8 = vpop.permute.xlu0 %893  ;;  %v2723_v9 = vsel %vm4755_vm4, %v3949_v47, %v2722_v31  ;;  %v2616_v1 = vshll.u32 %v2463_v16, 16  ;;  %v6083_v31 = vld [vmem:[%s5682_s7 + $0x4c] sm:$0xf]  ;;  %v2729_v58 = vrot.slane %v6031_v49, 5  ;;  %v2621_v33 = vshrl.u32 %v6079_v52, 16 }
  0xf7   : > { %v1023_v27 = vsel %vm948_vm8, %v1004_v56, %v894_v8  ;;  %v959_v59 = vsel %vm948_vm8, %v939_v28, %v834_v60  ;;  %v2608_v56 = vrot.slane %v2606_v26, 5  ;;  %v2612_v60 = vrot.slane %v2610_v51, 4 }
  0xf8   : > { %2906 = vrot.lane.b32.xlu1 %v5887_v38, %s4622_s10  ;;  %2966 = vrot.lane.b32.xlu0 %v5988_v12, %s4622_s10  ;;  %v2624_v51 = vshll.u32 %v6079_v52, 16 }
  0xf9   : > { %2308 = vmatprep.mubr.bf16.mxu1 %v1023_v27 }
  0xfa   : > { %2309 = vmatmul.mubr.bf16.gmra.mrb[28].mxu1 %v959_v59  ;;  %v1500_v38 = vpop.permute.xlu1 %1499  ;;  %v1581_v50 = vpop.permute.xlu0 %1580 }
  0xfb   : > { %v1643_v5 = vsel %vm906_vm6, %v5120_v46, %v1500_v38  ;;  %v1707_v41 = vsel %vm906_vm6, %v5319_v43, %v1581_v50  ;;  %v6074_v43 = vcombine.low %v2585_v20, %v2595_v42  ;;  %v2726_v46 = vsel %vm4755_vm4, %v2724_v2, %v2725_v19 }
  0xfc   : > { %2925 = vrot.lane.b32.xlu1 %v5905_v17, %s4621_s29  ;;  %2985 = vrot.lane.b32.xlu0 %v5999_v14, %s4621_s29  ;;  %v2603_v38 = vor.u32 %v2602_v13, %v2599_v34  ;;  %v2613_v50 = vor.u32 %v2612_v60, %v2608_v56  ;;  %v6092_v26 = vcombine.low %v2723_v9, %v2726_v46  ;;  %v2618_v19 = vrot.slane %v2616_v1, 5  ;;  %v6116_v46 = vld [vmem:[%s5682_s7 + $0x50] sm:$0x1] }
  0xfd   : > { %v3950_v34 = vrot.slane %v6028_v25, 9  ;;  %v2731_v13 = vrot.slane %v2729_v58, 4  ;;  %v2626_v60 = vrot.slane %v2624_v51, 5  ;;  %v6138_v51 = vld [vmem:[%s5682_s7 + $0x58] sm:$0xf] }
  0xfe   : > { %v1540_v45 = vpop.permute.xlu1 %1539  ;;  %v1600_v4 = vpop.permute.xlu0 %1599  ;;  %v2604_v47 = vrot.slane %v2603_v38, 4  ;;  %v2614_v2 = vrot.slane %v2613_v50, 4 }
  0xff   : > { %v1726_v8 = vsel %vm931_vm7, %v1707_v41, %v1600_v4  ;;  %v1662_v28 = vsel %vm931_vm7, %v1643_v5, %v1540_v45  ;;  %v2634_v45 = vshrl.u32 %v6083_v31, 16  ;;  %v2630_v4 = vshll.u32 %v6083_v31, 16 }
 0x100   : > { %2868 = vrot.lane.b32.xlu1 %v5938_v44, %s4623_s27  ;;  %2949 = vrot.lane.b32.xlu0 %v6034_v23, %s4623_s27  ;;  %v2732_v5 = vrot.slane %v2463_v16, 5  ;;  %v2623_v41 = vrot.slane %v2621_v33, 4  ;;  %v2609_v9 = vsel %vm4842_vm5, %v2604_v47, %v2608_v56 }
 0x102   : > { %v1559_v57 = vpop.permute.xlu1 %1558  ;;  %v1619_v15 = vpop.permute.xlu0 %1618  ;;  %v2627_v56 = vor.u32 %v2626_v60, %v2623_v41 }
 0x103   : > { %v1746_v27 = vsel %vm948_vm8, %v1726_v8, %v1619_v15  ;;  %v1682_v59 = vsel %vm948_vm8, %v1662_v28, %v1559_v57  ;;  %v6103_v8 = vcombine.low %v6028_v25, %v6031_v49  ;;  %v6105_v57 = vrot.slane %v2630_v4, 5 }
 0x104   : > { %2908 = vrot.lane.b32.xlu1 %v5965_v29, %s4622_s10  ;;  %2968 = vrot.lane.b32.xlu0 %v6047_v18, %s4622_s10  ;;  %v2636_v15 = vrot.slane %v2634_v45, 4  ;;  %v2619_v28 = vsel %vm4842_vm5, %v2614_v2, %v2618_v19  ;;  %v6143_v2 = vld [vmem:[%s5682_s7 + $0x70] sm:$0xf]  ;;  %v2628_v19 = vrot.slane %v2627_v56, 4 }
 0x105   : > { %1990 = vmatprep.mubr.bf16.mxu0 %v1746_v27  ;;  %6617 = vst [vmem:[#allocation2_spill] sm:$0xff] %v6103_v8  ;;  %v6129_v1 = vcombine.low %v2609_v9, %v2619_v28 }
 0x106   : > { %1991 = vmatmul.mubr.bf16.gmra.mrb[16].mxu0 %v1682_v59  ;;  %v777_v10 = vpop.permute.xlu1 %776  ;;  %v858_v55 = vpop.permute.xlu0 %857  ;;  %v2633_v56 = vsel %vm4842_vm5, %v2628_v19, %v6105_v57 }
 0x107   : > { %v921_v27 = vsel %vm906_vm6, %v5207_v61, %v777_v10  ;;  %v987_v16 = vsel %vm906_vm6, %v5384_v48, %v858_v55  ;;  %v2730_v61 = vsel %vm4755_vm4, %v3950_v34, %v2729_v58  ;;  %v2733_v48 = vsel %vm4755_vm4, %v2731_v13, %v2732_v5  ;;  %v6134_v58 = vld [vmem:[%s5682_s7 + $0x54] sm:$0xf]  ;;  %v6148_v34 = vld [vmem:[%s5682_s7 + $0x6c] sm:$0xf] }
 0x108   : > { %2927 = vrot.lane.b32.xlu1 %v5988_v12, %s4621_s29  ;;  %2987 = vrot.lane.b32.xlu0 %v6074_v43, %s4621_s29  ;;  %v2637_v10 = vor.u32 %v2636_v15, %v6105_v57  ;;  %v2640_v55 = vshll.u32 %v6116_v46, 16  ;;  %v6140_v47 = vcombine.low %v2730_v61, %v2733_v48  ;;  %v2811_v13 = vrot.slane %v6143_v2, 5 }
 0x109   : > { %v2648_v60 = vshll.u32 %v6134_v58, 16  ;;  %v2658_v15 = vshrl.u32 %v6138_v51, 16  ;;  %v3954_v9 = vrot.slane %v6148_v34, 9  ;;  %v3951_v61 = vrot.slane %v6079_v52, 9 }
 0x10a   : > { %v817_v20 = vpop.permute.xlu1 %816  ;;  %v877_v42 = vpop.permute.xlu0 %876  ;;  %v2638_v5 = vrot.slane %v2637_v10, 4  ;;  %v2642_v41 = vrot.slane %v2640_v55, 5  ;;  %v2813_v28 = vrot.slane %v2811_v13, 4  ;;  %v2739_v48 = vrot.slane %v6116_v46, 5 }
 0x10b   : > { %v1006_v25 = vsel %vm931_vm7, %v987_v16, %v877_v42  ;;  %v941_v50 = vsel %vm931_vm7, %v921_v27, %v817_v20  ;;  %v2736_v20 = vrot.slane %v6083_v31, 5  ;;  %v2645_v42 = vshrl.u32 %v6134_v58, 16  ;;  %v6158_v27 = vld [vmem:[%s5682_s7 + $0x74] sm:$0x1] }
 0x10c   : > { %2870 = vrot.lane.b32.xlu1 %v5999_v14, %s4623_s27  ;;  %2951 = vrot.lane.b32.xlu0 %v6092_v26, %s4623_s27  ;;  %v2654_v16 = vshll.u32 %v6138_v51, 16  ;;  %v6174_v10 = vsel %vm4755_vm4, %v3954_v9, %v2811_v13  ;;  %v2660_v46 = vrot.slane %v2658_v15, 4  ;;  %v2643_v13 = vsel %vm4842_vm5, %v2638_v5, %v2642_v41 }
 0x10d   : > { %v2737_v57 = vsel %vm4755_vm4, %v3951_v61, %v2736_v20 }
 0x10e   : > { %v836_v49 = vpop.permute.xlu1 %835  ;;  %v896_v59 = vpop.permute.xlu0 %895  ;;  %v2656_v9 = vrot.slane %v2654_v16, 5 }
 0x10f   : > { %v1026_v38 = vsel %vm948_vm8, %v1006_v25, %v896_v59  ;;  %v962_v33 = vsel %vm948_vm8, %v941_v50, %v836_v49  ;;  %v2814_v25 = vrot.slane %v6158_v27, 5  ;;  %v2738_v50 = vrot.slane %v2736_v20, 4 }
 0x110   : > { %2910 = vrot.lane.b32.xlu1 %v6034_v23, %s4622_s10  ;;  %2970 = vrot.lane.b32.xlu0 %v6103_v8, %s4622_s10  ;;  %v2661_v20 = vor.u32 %v2660_v46, %v2656_v9 }
 0x111   : > { %2316 = vmatprep.mubr.bf16.mxu1 %v1026_v38  ;;  %v6165_v38 = vcombine.low %v6079_v52, %v6083_v31  ;;  %v6178_v55 = vsel %vm4755_vm4, %v2813_v28, %v2814_v25  ;;  %v2647_v52 = vrot.slane %v2645_v42, 4  ;;  %v2650_v31 = vrot.slane %v2648_v60, 5  ;;  %v2469_v60 = vld [vmem:[%s5682_s7 + $0x5c] sm:$0x1] }
 0x112   : > { %2317 = vmatmul.mubr.bf16.gmra.mrb[32].mxu1 %v962_v33  ;;  %v1502_v45 = vpop.permute.xlu1 %1501  ;;  %v1583_v4 = vpop.permute.xlu0 %1582  ;;  %6619 = vst [vmem:[#allocation12_spill] sm:$0xff] %v6178_v55  ;;  %v2664_v16 = vshll.u32 %v2469_v60, 16  ;;  %v2662_v46 = vrot.slane %v2661_v20, 4 }
 0x113   : > { %6618 = vst [vmem:[#allocation4_spill] sm:$0xff] %v6165_v38  ;;  %v1646_v33 = vsel %vm906_vm6, %v5311_v40, %v1502_v45  ;;  %v1710_v19 = vsel %vm906_vm6, %v5452_v32, %v1583_v4  ;;  %v6202_v32 = vcombine.low %v2633_v56, %v2643_v13  ;;  %v2740_v45 = vsel %vm4755_vm4, %v2738_v50, %v2739_v48  ;;  %v6207_v4 = vld [vmem:[%s5682_s7 + $0x60] sm:$0xf] }
 0x114   : > { %2929 = vrot.lane.b32.xlu1 %v6047_v18, %s4621_s29  ;;  %2989 = vrot.lane.b32.xlu0 %v6129_v1, %s4621_s29  ;;  %v2651_v41 = vor.u32 %v2650_v31, %v2647_v52  ;;  %v2749_v56 = vshrl.u32 %v6207_v4, 16  ;;  %v6220_v48 = vcombine.low %v2737_v57, %v2740_v45  ;;  %v2666_v13 = vrot.slane %v2664_v16, 5  ;;  %v6234_v45 = vld [vmem:[%s5682_s7 + $0x68] sm:$0x1] }
 0x115   : > { %v6231_v57 = vcombine.low %v6134_v58, %v6138_v51  ;;  %v6620_v16 = vld [vmem:[#allocation7_spill] sm:$0xff] }
 0x116   : > { %v1542_v49 = vpop.permute.xlu1 %1541  ;;  %v1602_v59 = vpop.permute.xlu0 %1601  ;;  %v2652_v31 = vrot.slane %v2651_v41, 4 }
 0x117   : > { %v1728_v28 = vsel %vm931_vm7, %v1710_v19, %v1602_v59  ;;  %v1664_v40 = vsel %vm931_vm7, %v1646_v33, %v1542_v49  ;;  %v6211_v49 = vld [vmem:[%s5682_s7 + $0x64] sm:$0xf]  ;;  %v2743_v33 = vrot.slane %v6138_v51, 5  ;;  %v2752_v19 = vshll.u32 %v6207_v4, 16 }
 0x118   : > { %2872 = vrot.lane.b32.xlu1 %v6074_v43, %s4623_s27  ;;  %2953 = vrot.lane.b32.xlu0 %v6140_v47, %s4623_s27  ;;  %v2762_v50 = vshrl.u32 %v6211_v49, 16  ;;  %v2758_v52 = vshll.u32 %v6211_v49, 16 }
 0x119   : > { %v2754_v35 = vrot.slane %v2752_v19, 5  ;;  %v2667_v19 = vsel %vm4842_vm5, %v2662_v46, %v2666_v13 }
 0x11a   : > { %v1561_v25 = vpop.permute.xlu1 %1560  ;;  %v1621_v42 = vpop.permute.xlu0 %1620  ;;  %v2760_v41 = vrot.slane %v2758_v52, 5  ;;  %v2764_v20 = vrot.slane %v2762_v50, 4 }
 0x11b   : > { %v1749_v15 = vsel %vm948_vm8, %v1728_v28, %v1621_v42  ;;  %v1685_v5 = vsel %vm948_vm8, %v1664_v40, %v1561_v25  ;;  %v3952_v42 = vrot.slane %v6134_v58, 9  ;;  %v2746_v40 = vrot.slane %v2469_v60, 5 }
 0x11c   : > { %2912 = vrot.lane.b32.xlu1 %v6092_v26, %s4622_s10  ;;  %2972 = vrot.lane.b32.xlu0 %v6165_v38, %s4622_s10 }
 0x11d   : > { %1998 = vmatprep.mubr.bf16.mxu0 %v1749_v15  ;;  %v2745_v15 = vrot.slane %v2743_v33, 4  ;;  %v2744_v52 = vsel %vm4755_vm4, %v3952_v42, %v2743_v33  ;;  %v2783_v42 = vshrl.u32 %v6148_v34, 16 }
 0x11e   : > { %1999 = vmatmul.mubr.bf16.gmra.mrb[20].mxu0 %v1685_v5  ;;  %v779_v59 = vpop.permute.xlu1 %778  ;;  %v860_v61 = vpop.permute.xlu0 %859  ;;  %v2751_v5 = vrot.slane %v2749_v56, 4  ;;  %v2657_v56 = vsel %vm4842_vm5, %v2652_v31, %v2656_v9  ;;  %v2765_v31 = vor.u32 %v2764_v20, %v2760_v41 }
 0x11f   : > { %v990_v60 = vsel %vm906_vm6, %v5490_v36, %v860_v61  ;;  %v2768_v36 = vshll.u32 %v6234_v45, 16  ;;  %v6256_v61 = vcombine.low %v2657_v56, %v2667_v19  ;;  %v3979_v56 = vcombine.low %v6207_v4, %v6211_v49 }
 0x120   : > { %2931 = vrot.lane.b32.xlu1 %v6103_v8, %s4621_s29  ;;  %2991 = vrot.lane.b32.xlu0 %v6202_v32, %s4621_s29  ;;  %v924_v8 = vsel %vm906_vm6, %v6620_v16, %v779_v59  ;;  %v2747_v59 = vsel %vm4755_vm4, %v2745_v15, %v2746_v40  ;;  %v2755_v16 = vor.u32 %v2754_v35, %v2751_v5  ;;  %v2786_v15 = vshll.u32 %v6148_v34, 16 }
 0x121   : > { %v6259_v35 = vcombine.low %v2744_v52, %v2747_v59  ;;  %v2770_v13 = vrot.slane %v2768_v36, 5  ;;  %v2796_v40 = vshrl.u32 %v6143_v2, 16  ;;  %v2792_v5 = vshll.u32 %v6143_v2, 16 }
 0x122   : > { %v819_v28 = vpop.permute.xlu1 %818  ;;  %v879_v25 = vpop.permute.xlu0 %878  ;;  %v3953_v19 = vrot.slane %v6207_v4, 9  ;;  %v2785_v59 = vrot.slane %v2783_v42, 4 }
 0x123   : > { %v1008_v55 = vsel %vm931_vm7, %v990_v60, %v879_v25  ;;  %v943_v9 = vsel %vm931_vm7, %v924_v8, %v819_v28  ;;  %v2777_v8 = vrot.slane %v6211_v49, 5  ;;  %v2756_v28 = vrot.slane %v2755_v16, 4 }
 0x124   : > { %2874 = vrot.lane.b32.xlu1 %v6129_v1, %s4623_s27  ;;  %2955 = vrot.lane.b32.xlu0 %v6220_v48, %s4623_s27  ;;  %v2766_v25 = vrot.slane %v2765_v31, 4  ;;  %v2788_v16 = vrot.slane %v2786_v15, 5  ;;  %v2798_v36 = vrot.slane %v2796_v40, 4 }
 0x125   : > { %v2761_v52 = vsel %vm4842_vm5, %v2756_v28, %v2760_v41  ;;  %v2778_v41 = vsel %vm4755_vm4, %v3953_v19, %v2777_v8 }
 0x126   : > { %v838_v58 = vpop.permute.xlu1 %837  ;;  %v898_v51 = vpop.permute.xlu0 %897 }
 0x127   : > { %v1029_v50 = vsel %vm948_vm8, %v1008_v55, %v898_v51  ;;  %v965_v55 = vsel %vm948_vm8, %v943_v9, %v838_v58  ;;  %v2779_v58 = vrot.slane %v2777_v8, 4  ;;  %v2780_v51 = vrot.slane %v6234_v45, 5 }
 0x128   : > { %2914 = vrot.lane.b32.xlu1 %v6140_v47, %s4622_s10  ;;  %2974 = vrot.lane.b32.xlu0 %v6231_v57, %s4622_s10  ;;  %v2794_v45 = vrot.slane %v2792_v5, 5 }
 0x129   : > { %2324 = vmatprep.mubr.bf16.mxu1 %v1029_v50  ;;  %v2771_v50 = vsel %vm4842_vm5, %v2766_v25, %v2770_v13  ;;  %v2802_v25 = vshll.u32 %v6158_v27, 16  ;;  %v3982_v27 = vcombine.low %v6148_v34, %v6143_v2 }
 0x12a   : > { %2325 = vmatmul.mubr.bf16.gmra.mrb[36].mxu1 %v965_v55  ;;  %v1504_v33 = vpop.permute.xlu1 %1503  ;;  %v1585_v46 = vpop.permute.xlu0 %1584  ;;  %v2799_v28 = vor.u32 %v2798_v36, %v2794_v45 }
 0x12b   : > { %v1649_v4 = vsel %vm906_vm6, %v5419_v39, %v1504_v33  ;;  %v1713_v49 = vsel %vm906_vm6, %v5535_v54, %v1585_v46  ;;  %v6294_v39 = vcombine.low %v2761_v52, %v2771_v50  ;;  %v2781_v54 = vsel %vm4755_vm4, %v2779_v58, %v2780_v51 }
 0x12c   : > { %2933 = vrot.lane.b32.xlu1 %v6165_v38, %s4621_s29  ;;  %2993 = vrot.lane.b32.xlu0 %v6256_v61, %s4621_s29  ;;  %v2789_v46 = vor.u32 %v2788_v16, %v2785_v59  ;;  %v6304_v15 = vcombine.low %v2778_v41, %v2781_v54  ;;  %v2800_v40 = vrot.slane %v2799_v28, 4  ;;  %v6621_v28 = vld [vmem:[#allocation10_spill] sm:$0xff] }
 0x12e   : > { %v1544_v20 = vpop.permute.xlu1 %1543  ;;  %v1604_v60 = vpop.permute.xlu0 %1603  ;;  %v2790_v21 = vrot.slane %v2789_v46, 4 }
 0x12f   : > { %v1730_v9 = vsel %vm931_vm7, %v1713_v49, %v1604_v60  ;;  %v1666_v13 = vsel %vm931_vm7, %v1649_v4, %v1544_v20 }
 0x130   : > { %2876 = vrot.lane.b32.xlu1 %v6202_v32, %s4623_s27  ;;  %2957 = vrot.lane.b32.xlu0 %v6259_v35, %s4623_s27  ;;  %v2795_v58 = vsel %vm4842_vm5, %v2790_v21, %v2794_v45 }
 0x132   : > { %v1563_v31 = vpop.permute.xlu1 %1562  ;;  %v1623_v55 = vpop.permute.xlu0 %1622 }
 0x133   : > { %v1752_v38 = vsel %vm948_vm8, %v1730_v9, %v1623_v55  ;;  %v1688_v33 = vsel %vm948_vm8, %v1666_v13, %v1563_v31 }
 0x134   : > { %2916 = vrot.lane.b32.xlu1 %v6220_v48, %s4622_s10  ;;  %2976 = vrot.lane.b32.xlu0 %v3979_v56, %s4622_s10 }
 0x135   : > { %2006 = vmatprep.mubr.bf16.mxu0 %v1752_v38  ;;  %v2804_v38 = vrot.slane %v2802_v25, 5 }
 0x136   : > { %2007 = vmatmul.mubr.bf16.gmra.mrb[24].mxu0 %v1688_v33  ;;  %v781_v8 = vpop.permute.xlu1 %780  ;;  %v862_v42 = vpop.permute.xlu0 %861 }
 0x137   : > { %v927_v60 = vsel %vm906_vm6, %v5476_v37, %v781_v8  ;;  %v993_v19 = vsel %vm906_vm6, %v5579_v62, %v862_v42  ;;  %v2805_v51 = vsel %vm4842_vm5, %v2800_v40, %v2804_v38 }
 0x138   : > { %2935 = vrot.lane.b32.xlu1 %v6231_v57, %s4621_s29  ;;  %2995 = vrot.lane.b32.xlu0 %v6294_v39, %s4621_s29  ;;  %v3983_v37 = vcombine.low %v2795_v58, %v2805_v51 }
 0x13a   : > { %v821_v5 = vpop.permute.xlu1 %820  ;;  %v881_v20 = vpop.permute.xlu0 %880 }
 0x13b   : > { %v1010_v52 = vsel %vm931_vm7, %v993_v19, %v881_v20  ;;  %v945_v2 = vsel %vm931_vm7, %v927_v60, %v821_v5  ;;  %v6622_v60 = vld [vmem:[#allocation3_spill] sm:$0xff]  ;;  %v4580_v19 = vld [vmem:[%s5682_s7 + $0x4] sm:$0xf] }
 0x13c   : > { %2878 = vrot.lane.b32.xlu1 %v6256_v61, %s4623_s27  ;;  %2959 = vrot.lane.b32.xlu0 %v6304_v15, %s4623_s27  ;;  %s3774_s27 = sshll.u32 %s6650_s18, 4 }
 0x13e   : > { %v840_v50 = vpop.permute.xlu1 %839  ;;  %v900_v59 = vpop.permute.xlu0 %899 }
 0x13f   : > { %v1032_v16 = vsel %vm948_vm8, %v1010_v52, %v900_v59  ;;  %v968_v62 = vsel %vm948_vm8, %v945_v2, %v840_v50  ;;  %v4574_v50 = vld [vmem:[%s6577_s3 + $0x1a8] sm:$0xff]   ;;  %v6623_v2 = vld [vmem:[#allocation5_spill] sm:$0xff] }
 0x140   : > { %2918 = vrot.lane.b32.xlu1 %v6259_v35, %s4622_s10  ;;  %2978 = vrot.lane.b32.xlu0 %v3982_v27, %s4622_s10 }
 0x141   : > { %2332 = vmatprep.mubr.bf16.mxu1 %v1032_v16 }
 0x142   : > { %2333 = vmatmul.mubr.bf16.gmra.mrb[40].mxu1 %v968_v62  ;;  %v1506_v0 = vpop.permute.xlu1 %1505  ;;  %v1587_v34 = vpop.permute.xlu0 %1586 }
 0x143   : > { %v1652_v45 = vsel %vm906_vm6, %v5514_v30, %v1506_v0  ;;  %v1716_v36 = vsel %vm906_vm6, %v5436_v11, %v1587_v34  ;;  %v6624_v34 = vld [vmem:[#allocation6_spill] sm:$0xff] }
 0x144   : > { %2937 = vrot.lane.b32.xlu1 %v3979_v56, %s4621_s29  ;;  %2997 = vrot.lane.b32.xlu0 %v3983_v37, %s4621_s29 }
 0x146   : > { %v1546_v4 = vpop.permute.xlu1 %1545  ;;  %v1606_v49 = vpop.permute.xlu0 %1605 }
 0x147   : > { %v1732_v9 = vsel %vm931_vm7, %v1716_v36, %v1606_v49  ;;  %v1668_v41 = vsel %vm931_vm7, %v1652_v45, %v1546_v4 }
 0x14a   : > { %v1565_v31 = vpop.permute.xlu1 %1564  ;;  %v1625_v55 = vpop.permute.xlu0 %1624 }
 0x14b   : > { %v1755_v13 = vsel %vm948_vm8, %v1732_v9, %v1625_v55  ;;  %v1691_v56 = vsel %vm948_vm8, %v1668_v41, %v1565_v31  ;;  %v6625_v9 = vld [vmem:[#allocation8_spill] sm:$0xff]  ;;  %v6626_v41 = vld [vmem:[#allocation9_spill] sm:$0xff] }
 0x14c   : > { %2014 = vmatprep.mubr.bf16.mxu0 %v1755_v13 }
 0x14d   : > { %2015 = vmatmul.mubr.bf16.gmra.mrb[28].mxu0 %v1691_v56 }
 0x14e   : > { %v783_v54 = vpop.permute.xlu1 %782  ;;  %v864_v33 = vpop.permute.xlu0 %863 }
 0x14f   : > { %v930_v11 = vsel %vm906_vm6, %v5562_v24, %v783_v54  ;;  %v996_v25 = vsel %vm906_vm6, %v6621_v28, %v864_v33  ;;  %v4579_v24 = vld [vmem:[%s5682_s7] sm:$0xf]  ;;  %s3775_s7 = sshll.u32 %s6644_s19, 6 }
 0x150   : > { %v3955_v58 = vcombine.low %v4579_v24, %v4580_v19  ;;  %s340_s11 = sadd.s32 %s3775_s7, %s3774_s27 }
 0x151   : > { %s3776_s18 = sshll.u32 %s340_s11, 2 }
 0x152   : > { %v823_v46 = vpop.permute.xlu1 %822  ;;  %v883_v30 = vpop.permute.xlu0 %882  ;;  %s6502_s26 = scalar_lea.vmem %s6579_s5, %s3776_s18 }
 0x153   : > { %v1012_v8 = vsel %vm931_vm7, %v996_v25, %v883_v30  ;;  %v947_v40 = vsel %vm931_vm7, %v930_v11, %v823_v46  ;;  %v6627_v25 = vld [vmem:[#allocation11_spill] sm:$0xff] }
 0x156   : > { %v842_v42 = vpop.permute.xlu1 %841  ;;  %v902_v21 = vpop.permute.xlu0 %901 }
 0x157   : > { %v1035_v38 = vsel %vm948_vm8, %v1012_v8, %v902_v21  ;;  %v971_v5 = vsel %vm948_vm8, %v947_v40, %v842_v42  ;;  %v6628_v40 = vcombine.low %v6007_v6, %v6011_v22 }
 0x158   : > { %2340 = vmatprep.mubr.bf16.mxu1 %v1035_v38 }
 0x159   : > { %2341 = vmatmul.mubr.bf16.gmra.mrb[44].mxu1 %v971_v5 }
 0x15a   : > { %v2865_v20 = vpop.permute.xlu1 %2864  ;;  %v2946_v27 = vpop.permute.xlu0 %2945  ;;  %4328 = vmatprep.mubr.msk.bf16.mxu1 %vm906_vm6, %v6622_v60 }
 0x15b   : > { %v3004_v59 = vsel %vm906_vm6, %v3955_v58, %v2865_v20  ;;  %v3068_v16 = vsel %vm906_vm6, %v5963_v53, %v2946_v27 }
 0x15e   : > { %v2905_v51 = vpop.permute.xlu1 %2904  ;;  %v2965_v52 = vpop.permute.xlu0 %2964 }
 0x15f   : > { %v3091_v37 = vsel %vm931_vm7, %v3068_v16, %v2965_v52  ;;  %v3027_v4 = vsel %vm931_vm7, %v3004_v59, %v2905_v51 }
 0x161   : > { %4329 = vmatmul.mubr.msk.bf16.vlgmr.msra.gmra.mrb[0].mxu1 %vm906_vm6, %v6623_v2 }
 0x162   : > { %v2924_v62 = vpop.permute.xlu1 %2923  ;;  %v2984_v0 = vpop.permute.xlu0 %2983  ;;  %4332 = vmatprep.mubr.msk.bf16.mxu1 %vm906_vm6, %v6624_v34  ;;  %4345 = vmatpush3.bf16.msra.mxu1 %v6024_v63 }
 0x163   : > { %v3107_v49 = vsel %vm948_vm8, %v3091_v37, %v2984_v0  ;;  %4346 = vmatprep.subr.bf16.mxu1 %v4574_v50  ;;  %v3043_v45 = vsel %vm948_vm8, %v3027_v4, %v2924_v62 }
 0x164   : > { %3331 = vmatprep.mubr.bf16.mxu0 %v3107_v49 }
 0x165   : > { %3332 = vmatmul.mubr.bf16.vlgmr.msra.gmra.mrb[32].mxu0 %v3043_v45 }
 0x166   : > { %v2867_v53 = vpop.permute.xlu1 %2866  ;;  %v2948_v36 = vpop.permute.xlu0 %2947  ;;  %4347 = vmatpush3.bf16.msra.mxu1 %v4574_v50 }
 0x167   : > { %v3007_v63 = vsel %vm906_vm6, %v5930_v3, %v2867_v53  ;;  %v3071_v13 = vsel %vm906_vm6, %v5938_v44, %v2948_v36 }
 0x169   : > { %4333 = vmatmul.mubr.msk.bf16.gmra.mrb[4].mxu1 %vm906_vm6, %v6625_v9 }
 0x16a   : > { %v2907_v31 = vpop.permute.xlu1 %2906  ;;  %v2967_v55 = vpop.permute.xlu0 %2966  ;;  %4336 = vmatprep.mubr.msk.bf16.mxu1 %vm906_vm6, %v6626_v41 }
 0x16b   : > { %v3093_v56 = vsel %vm931_vm7, %v3071_v13, %v2967_v55  ;;  %v3029_v46 = vsel %vm931_vm7, %v3007_v63, %v2907_v31 }
 0x16e   : > { %v2926_v54 = vpop.permute.xlu1 %2925  ;;  %v2986_v33 = vpop.permute.xlu0 %2985 }
 0x16f   : > { %v3110_v30 = vsel %vm948_vm8, %v3093_v56, %v2986_v33  ;;  %v3046_v11 = vsel %vm948_vm8, %v3029_v46, %v2926_v54 }
 0x170   : > { %3339 = vmatprep.mubr.bf16.mxu0 %v3110_v30 }
 0x171   : > { %4337 = vmatmul.mubr.msk.bf16.gmra.mrb[8].mxu1 %vm906_vm6, %v5638_v7  ;;  %3340 = vmatmul.mubr.bf16.gmra.mrb[36].mxu0 %v3046_v11 }
 0x172   : > { %v2869_v28 = vpop.permute.xlu1 %2868  ;;  %v2950_v3 = vpop.permute.xlu0 %2949  ;;  %4340 = vmatprep.mubr.msk.bf16.mxu1 %vm906_vm6, %v6627_v25  ;;  %v6629_v25 = vld [vmem:[#allocation12_spill] sm:$0xff] }
 0x173   : > { %v3010_v42 = vsel %vm906_vm6, %v5905_v17, %v2869_v28  ;;  %v3074_v21 = vsel %vm906_vm6, %v5999_v14, %v2950_v3 }
 0x176   : > { %v2909_v44 = vpop.permute.xlu1 %2908  ;;  %v2969_v8 = vpop.permute.xlu0 %2968 }
 0x177   : > { %v3095_v7 = vsel %vm931_vm7, %v3074_v21, %v2969_v8  ;;  %v3031_v20 = vsel %vm931_vm7, %v3010_v42, %v2909_v44  ;;  %v6631_v42 = vld [vmem:[#allocation2_spill] sm:$0xff] }
 0x179   : > { %4341 = vmatmul.mubr.msk.bf16.gmra.mrb[12].mxu1 %vm906_vm6, %v6628_v40 }
 0x17a   : > { %v2928_v38 = vpop.permute.xlu1 %2927  ;;  %v2988_v5 = vpop.permute.xlu0 %2987  ;;  %4348 = vmatprep.mubr.msk.bf16.mxu1 %vm906_vm6, %v5965_v29 }
 0x17b   : > { %v3113_v27 = vsel %vm948_vm8, %v3095_v7, %v2988_v5  ;;  %v3049_v17 = vsel %vm948_vm8, %v3031_v20, %v2928_v38 }
 0x17c   : > { %3347 = vmatprep.mubr.bf16.mxu0 %v3113_v27 }
 0x17d   : > { %3348 = vmatmul.mubr.bf16.gmra.mrb[40].mxu0 %v3049_v17 }
 0x17e   : > { %v2871_v14 = vpop.permute.xlu1 %2870  ;;  %v2952_v60 = vpop.permute.xlu0 %2951 }
 0x17f   : > { %v3013_v29 = vsel %vm906_vm6, %v5988_v12, %v2871_v14  ;;  %v3077_v50 = vsel %vm906_vm6, %v6074_v43, %v2952_v60 }
 0x181   : > { %4349 = vmatmul.mubr.msk.bf16.vlgmr.msra.gmra.mrb[0].mxu1 %vm906_vm6, %v6034_v23 }
 0x182   : > { %v2911_v6 = vpop.permute.xlu1 %2910  ;;  %v2971_v22 = vpop.permute.xlu0 %2970  ;;  %4352 = vmatprep.mubr.msk.bf16.mxu1 %vm906_vm6, %v6092_v26 }
 0x183   : > { %v4172_v24 = vpop.f32.mrb[16].mxu1  ;;  %v3033_v23 = vsel %vm931_vm7, %v3013_v29, %v2911_v6  ;;  %v3097_v2 = vsel %vm931_vm7, %v3077_v50, %v2971_v22  ;;  %v6632_v50 = vld [vmem:[#allocation4_spill] sm:$0xff] }
 0x184   : > { %v4173_v19 = vpop.f32.mrb[17].mxu1 }
 0x185   : > { %v4098_v58 = vpop.f32.mrb[0].mxu0  ;;  %v4174_v51 = vadd.f32 %v4173_v19, %v4172_v24  ;;  %v4175_v52 = vpop.f32.mrb[18].mxu1 }
 0x186   : > { %v4099_v59 = vpop.f32.mrb[1].mxu0  ;;  %v2930_v16 = vpop.permute.xlu1 %2929 }
 0x187   : > { %v4100_v37 = vadd.f32 %v4099_v59, %v4098_v58  ;;  %v2990_v62 = vpop.permute.xlu0 %2989  ;;  %v4101_v26 = vpop.f32.mrb[2].mxu0  ;;  %v3052_v4 = vsel %vm948_vm8, %v3033_v23, %v2930_v16 }
 0x188   : > { %v4102_v0 = vpop.f32.mrb[3].mxu0  ;;  %v4176_v34 = vpop.f32.mrb[19].mxu1  ;;  %v3116_v12 = vsel %vm948_vm8, %v3097_v2, %v2990_v62 }
 0x189   : > { %v6406_v49 = vadd.f32 %v4174_v51, %v4100_v37  ;;  %v4103_v45 = vadd.f32 %v4102_v0, %v4101_v26  ;;  %v4177_v53 = vadd.f32 %v4176_v34, %v4175_v52  ;;  %3355 = vmatprep.mubr.bf16.mxu0 %v3116_v12  ;;  %4353 = vmatmul.mubr.msk.bf16.gmra.mrb[4].mxu1 %vm906_vm6, %v6140_v47 }
 0x18a   : > { %3356 = vmatmul.mubr.bf16.gmra.mrb[44].mxu0 %v3052_v4  ;;  %v2873_v43 = vpop.permute.xlu1 %2872  ;;  %4356 = vmatprep.mubr.msk.bf16.mxu1 %vm906_vm6, %v6220_v48 }
 0x18b   : > { %v6412_v36 = vadd.f32 %v4177_v53, %v4103_v45  ;;  %v2954_v9 = vpop.permute.xlu0 %2953  ;;  %v3016_v41 = vsel %vm906_vm6, %v6047_v18, %v2873_v43 }
 0x18c   : > { %v3080_v47 = vsel %vm906_vm6, %v6129_v1, %v2954_v9 }
 0x18e   : > { %v2913_v31 = vpop.permute.xlu1 %2912 }
 0x18f   : > { %v2973_v55 = vpop.permute.xlu0 %2972  ;;  %v3035_v30 = vsel %vm931_vm7, %v3016_v41, %v2913_v31 }
 0x190   : > { %v3099_v48 = vsel %vm931_vm7, %v3080_v47, %v2973_v55 }
 0x191   : > { %v4104_v63 = vpop.f32.mrb[4].mxu0  ;;  %4357 = vmatmul.mubr.msk.bf16.gmra.mrb[8].mxu1 %vm906_vm6, %v6259_v35 }
 0x192   : > { %v4105_v13 = vpop.f32.mrb[5].mxu0  ;;  %v2932_v56 = vpop.permute.xlu1 %2931  ;;  %4360 = vmatprep.mubr.msk.bf16.mxu1 %vm906_vm6, %v6304_v15  ;;  %v6630_v15 = vcombine.low %v6174_v10, %v6629_v25 }
 0x193   : > { %v4106_v54 = vadd.f32 %v4105_v13, %v4104_v63  ;;  %v2992_v33 = vpop.permute.xlu0 %2991  ;;  %v4107_v46 = vpop.f32.mrb[6].mxu0  ;;  %v3055_v35 = vsel %vm948_vm8, %v3035_v30, %v2932_v56 }
 0x194   : > { %v4108_v18 = vpop.f32.mrb[7].mxu0  ;;  %v3119_v11 = vsel %vm948_vm8, %v3099_v48, %v2992_v33 }
 0x195   : > { %v4109_v28 = vadd.f32 %v4108_v18, %v4107_v46  ;;  %3363 = vmatprep.mubr.bf16.mxu0 %v3119_v11 }
 0x196   : > { %3364 = vmatmul.mubr.bf16.gmra.mrb[48].mxu0 %v3055_v35  ;;  %v2875_v1 = vpop.permute.xlu1 %2874 }
 0x197   : > { %v2956_v3 = vpop.permute.xlu0 %2955  ;;  %v3019_v21 = vsel %vm906_vm6, %v6631_v42, %v2875_v1 }
 0x198   : > { %v3083_v7 = vsel %vm906_vm6, %v6202_v32, %v2956_v3 }
 0x199   : > { %4361 = vmatmul.mubr.msk.bf16.gmra.mrb[12].mxu1 %vm906_vm6, %v6630_v15 }
 0x19a   : > { %v2915_v44 = vpop.permute.xlu1 %2914 }
 0x19b   : > { %v2975_v8 = vpop.permute.xlu0 %2974  ;;  %v3037_v10 = vsel %vm931_vm7, %v3019_v21, %v2915_v44 }
 0x19c   : > { %v3101_v20 = vsel %vm931_vm7, %v3083_v7, %v2975_v8 }
 0x19d   : > { %v4178_v40 = vpop.f32.mrb[20].mxu1 }
 0x19e   : > { %v4179_v38 = vpop.f32.mrb[21].mxu1  ;;  %v2934_v5 = vpop.permute.xlu1 %2933 }
 0x19f   : > { %v4180_v27 = vadd.f32 %v4179_v38, %v4178_v40  ;;  %v2994_v17 = vpop.permute.xlu0 %2993  ;;  %v4181_v14 = vpop.f32.mrb[22].mxu1  ;;  %v3058_v29 = vsel %vm948_vm8, %v3037_v10, %v2934_v5 }
 0x1a0   : > { %v4182_v60 = vpop.f32.mrb[23].mxu1  ;;  %v3122_v6 = vsel %vm948_vm8, %v3101_v20, %v2994_v17 }
 0x1a1   : > { %v6437_v22 = vadd.f32 %v4180_v27, %v4106_v54  ;;  %v4183_v24 = vadd.f32 %v4182_v60, %v4181_v14  ;;  %3371 = vmatprep.mubr.bf16.mxu0 %v3122_v6 }
 0x1a2   : > { %3372 = vmatmul.mubr.bf16.gmra.mrb[52].mxu0 %v3058_v29  ;;  %v2877_v32 = vpop.permute.xlu1 %2876 }
 0x1a3   : > { %v6440_v19 = vadd.f32 %v4183_v24, %v4109_v28  ;;  %v2958_v58 = vpop.permute.xlu0 %2957  ;;  %v3022_v59 = vsel %vm906_vm6, %v6632_v50, %v2877_v32 }
 0x1a4   : > { %v3086_v23 = vsel %vm906_vm6, %v6256_v61, %v2958_v58 }
 0x1a6   : > { %v2917_v51 = vpop.permute.xlu1 %2916 }
 0x1a7   : > { %v2977_v52 = vpop.permute.xlu0 %2976  ;;  %v3039_v12 = vsel %vm931_vm7, %v3022_v59, %v2917_v51 }
 0x1a8   : > { %v3103_v62 = vsel %vm931_vm7, %v3086_v23, %v2977_v52 }
 0x1a9   : > { %v4110_v16 = vpop.f32.mrb[8].mxu0 }
 0x1aa   : > { %v4111_v2 = vpop.f32.mrb[9].mxu0  ;;  %v2936_v37 = vpop.permute.xlu1 %2935 }
 0x1ab   : > { %v4112_v26 = vadd.f32 %v4111_v2, %v4110_v16  ;;  %v2996_v0 = vpop.permute.xlu0 %2995  ;;  %v4113_v34 = vpop.f32.mrb[10].mxu0  ;;  %v3061_v43 = vsel %vm948_vm8, %v3039_v12, %v2936_v37 }
 0x1ac   : > { %v4114_v4 = vpop.f32.mrb[11].mxu0  ;;  %v3125_v45 = vsel %vm948_vm8, %v3103_v62, %v2996_v0 }
 0x1ad   : > { %v4115_v53 = vadd.f32 %v4114_v4, %v4113_v34  ;;  %3379 = vmatprep.mubr.bf16.mxu0 %v3125_v45 }
 0x1ae   : > { %3380 = vmatmul.mubr.bf16.gmra.mrb[56].mxu0 %v3061_v43  ;;  %v2879_v9 = vpop.permute.xlu1 %2878 }
 0x1af   : > { %v2960_v31 = vpop.permute.xlu0 %2959  ;;  %v3025_v41 = vsel %vm906_vm6, %v6231_v57, %v2879_v9 }
 0x1b0   : > { %v3089_v47 = vsel %vm906_vm6, %v6294_v39, %v2960_v31 }
 0x1b2   : > { %v2919_v61 = vpop.permute.xlu1 %2918 }
 0x1b3   : > { %v2979_v55 = vpop.permute.xlu0 %2978  ;;  %v3041_v30 = vsel %vm931_vm7, %v3025_v41, %v2919_v61 }
 0x1b4   : > { %v3105_v48 = vsel %vm931_vm7, %v3089_v47, %v2979_v55 }
 0x1b5   : > { %v4184_v63 = vpop.f32.mrb[24].mxu1 }
 0x1b6   : > { %v4185_v13 = vpop.f32.mrb[25].mxu1  ;;  %v2938_v56 = vpop.permute.xlu1 %2937 }
 0x1b7   : > { %v4186_v54 = vadd.f32 %v4185_v13, %v4184_v63  ;;  %v2998_v33 = vpop.permute.xlu0 %2997  ;;  %v4187_v46 = vpop.f32.mrb[26].mxu1  ;;  %v3064_v57 = vsel %vm948_vm8, %v3041_v30, %v2938_v56 }
 0x1b8   : > { %v4188_v18 = vpop.f32.mrb[27].mxu1  ;;  %v3128_v11 = vsel %vm948_vm8, %v3105_v48, %v2998_v33 }
 0x1b9   : > { %v6457_v28 = vadd.f32 %v4186_v54, %v4112_v26  ;;  %v4189_v35 = vadd.f32 %v4188_v18, %v4187_v46  ;;  %3387 = vmatprep.mubr.bf16.mxu0 %v3128_v11 }
 0x1ba   : > { %3388 = vmatmul.mubr.bf16.gmra.mrb[60].mxu0 %v3064_v57 }
 0x1bb   : > { %v6460_v39 = vadd.f32 %v4189_v35, %v4115_v53 }
 0x1c1   : > { %v4116_v1 = vpop.f32.mrb[12].mxu0 }
 0x1c2   : > { %v4117_v3 = vpop.f32.mrb[13].mxu0 }
 0x1c3   : > { %v4118_v25 = vadd.f32 %v4117_v3, %v4116_v1  ;;  %v4119_v15 = vpop.f32.mrb[14].mxu0 }
 0x1c4   : > { %v4120_v44 = vpop.f32.mrb[15].mxu0 }
 0x1c5   : > { %v4121_v8 = vadd.f32 %v4120_v44, %v4119_v15 }
 0x1cd   : > { %v4190_v42 = vpop.f32.mrb[28].mxu1 }
 0x1ce   : > { %v4191_v21 = vpop.f32.mrb[29].mxu1 }
 0x1cf   : > { %v4192_v40 = vadd.f32 %v4191_v21, %v4190_v42  ;;  %v4193_v7 = vpop.f32.mrb[30].mxu1 }
 0x1d0   : > { %v4194_v38 = vpop.f32.mrb[31].mxu1 }
 0x1d1   : > { %v6462_v5 = vadd.f32 %v4192_v40, %v4118_v25  ;;  %v4195_v20 = vadd.f32 %v4194_v38, %v4193_v7 }
 0x1d3   : > { %v6464_v27 = vadd.f32 %v4195_v20, %v4121_v8 }
 0x1d9   : > { %v4122_v17 = vpop.f32.mrb[16].mxu0 }
 0x1da   : > { %v4123_v14 = vpop.f32.mrb[17].mxu0 }
 0x1db   : > { %v4124_v10 = vadd.f32 %v4123_v14, %v4122_v17  ;;  %v4125_v60 = vpop.f32.mrb[18].mxu0 }
 0x1dc   : > { %v4126_v6 = vpop.f32.mrb[19].mxu0 }
 0x1dd   : > { %v4127_v24 = vadd.f32 %v4126_v6, %v4125_v60 }
 0x1e5   : > { %v4196_v29 = vpop.f32.mrb[32].mxu1 }
 0x1e6   : > { %v4197_v32 = vpop.f32.mrb[33].mxu1 }
 0x1e7   : > { %v4198_v58 = vadd.f32 %v4197_v32, %v4196_v29  ;;  %v4199_v51 = vpop.f32.mrb[34].mxu1 }
 0x1e8   : > { %v4200_v52 = vpop.f32.mrb[35].mxu1 }
 0x1e9   : > { %v6466_v50 = vadd.f32 %v4198_v58, %v4124_v10  ;;  %v4201_v59 = vadd.f32 %v4200_v52, %v4199_v51 }
 0x1eb   : > { %v6468_v16 = vadd.f32 %v4201_v59, %v4127_v24 }
 0x1f1   : > { %v4128_v23 = vpop.f32.mrb[20].mxu0 }
 0x1f2   : > { %v4129_v2 = vpop.f32.mrb[21].mxu0 }
 0x1f3   : > { %v4130_v37 = vadd.f32 %v4129_v2, %v4128_v23  ;;  %v4131_v62 = vpop.f32.mrb[22].mxu0 }
 0x1f4   : > { %v4132_v26 = vpop.f32.mrb[23].mxu0 }
 0x1f5   : > { %v4133_v0 = vadd.f32 %v4132_v26, %v4131_v62 }
 0x1fd   : > { %v4202_v34 = vpop.f32.mrb[36].mxu1 }
 0x1fe   : > { %v4203_v12 = vpop.f32.mrb[37].mxu1 }
 0x1ff   : > { %v4204_v4 = vadd.f32 %v4203_v12, %v4202_v34  ;;  %v4205_v45 = vpop.f32.mrb[38].mxu1 }
 0x200   : > { %v4206_v53 = vpop.f32.mrb[39].mxu1 }
 0x201   : > { %v6470_v43 = vadd.f32 %v4204_v4, %v4130_v37  ;;  %v4207_v9 = vadd.f32 %v4206_v53, %v4205_v45  ;;  %v6492_v45 = vld [vmem:[%s6578_s4] ss:$0 sm:$0xff] }
 0x203   : > { %v6472_v31 = vadd.f32 %v4207_v9, %v4133_v0 }
 0x209   : > { %v4134_v61 = vpop.f32.mrb[24].mxu0 }
 0x20a   : > { %v4135_v55 = vpop.f32.mrb[25].mxu0 }
 0x20b   : > { %v4136_v41 = vadd.f32 %v4135_v55, %v4134_v61  ;;  %v4137_v63 = vpop.f32.mrb[26].mxu0 }
 0x20c   : > { %v4138_v47 = vpop.f32.mrb[27].mxu0 }
 0x20d   : > { %v4139_v13 = vadd.f32 %v4138_v47, %v4137_v63 }
 0x215   : > { %v4208_v56 = vpop.f32.mrb[40].mxu1 }
 0x216   : > { %v4209_v48 = vpop.f32.mrb[41].mxu1 }
 0x217   : > { %v4210_v54 = vadd.f32 %v4209_v48, %v4208_v56  ;;  %v4211_v33 = vpop.f32.mrb[42].mxu1 }
 0x218   : > { %v4212_v46 = vpop.f32.mrb[43].mxu1 }
 0x219   : > { %v6474_v30 = vadd.f32 %v4210_v54, %v4136_v41  ;;  %v4213_v18 = vadd.f32 %v4212_v46, %v4211_v33 }
 0x21b   : > { %v6476_v11 = vadd.f32 %v4213_v18, %v4139_v13 }
 0x220   : > { %v4140_v35 = vpop.f32.mrb[28].mxu0 }
 0x221   : > { %v4141_v57 = vpop.f32.mrb[29].mxu0 }
 0x222   : > { %v4142_v1 = vadd.f32 %v4141_v57, %v4140_v35  ;;  %v4143_v3 = vpop.f32.mrb[30].mxu0 }
 0x223   : > { %v4144_v25 = vpop.f32.mrb[31].mxu0 }
 0x224   : > { %v4145_v15 = vadd.f32 %v4144_v25, %v4143_v3 }
 0x22c   : > { %v4214_v44 = vpop.f32.mrb[44].mxu1 }
 0x22d   : > { %v4215_v8 = vpop.f32.mrb[45].mxu1 }
 0x22e   : > { %v4216_v42 = vadd.f32 %v4215_v8, %v4214_v44  ;;  %v4217_v21 = vpop.f32.mrb[46].mxu1 }
 0x22f   : > { %v4218_v40 = vpop.f32.mrb[47].mxu1 }
 0x230   : > { %v6478_v7 = vadd.f32 %v4216_v42, %v4142_v1  ;;  %v4219_v38 = vadd.f32 %v4218_v40, %v4217_v21 }
 0x232   : > { %v6480_v20 = vadd.f32 %v4219_v38, %v4145_v15 }
 0x238   : > { %v4246_v17 = vpop.f32.mrb[32].mxu0 }
 0x239   : > { %v4247_v14 = vpop.f32.mrb[33].mxu0 }
 0x23a   : > { %v4248_v10 = vadd.f32 %v4247_v14, %v4246_v17  ;;  %v4249_v60 = vpop.f32.mrb[34].mxu0 }
 0x23b   : > { %v4250_v6 = vpop.f32.mrb[35].mxu0 }
 0x23c   : > { %v4251_v24 = vadd.f32 %v4250_v6, %v4249_v60  ;;  %v4368_v29 = vadd.f32 %v6406_v49, %v4248_v10 }
 0x23e   : > { %v4374_v32 = vadd.f32 %v6412_v36, %v4251_v24 }
 0x244   : > { %v4252_v58 = vpop.f32.mrb[36].mxu0 }
 0x245   : > { %v4253_v51 = vpop.f32.mrb[37].mxu0 }
 0x246   : > { %v4254_v52 = vadd.f32 %v4253_v51, %v4252_v58  ;;  %v4255_v59 = vpop.f32.mrb[38].mxu0 }
 0x247   : > { %v4256_v23 = vpop.f32.mrb[39].mxu0 }
 0x248   : > { %v4257_v2 = vadd.f32 %v4256_v23, %v4255_v59  ;;  %v4365_v37 = vadd.f32 %v6437_v22, %v4254_v52 }
 0x24a   : > { %v4371_v62 = vadd.f32 %v6440_v19, %v4257_v2 }
 0x250   : > { %v4258_v26 = vpop.f32.mrb[40].mxu0 }
 0x251   : > { %v4259_v0 = vpop.f32.mrb[41].mxu0 }
 0x252   : > { %v4260_v34 = vadd.f32 %v4259_v0, %v4258_v26  ;;  %v4261_v49 = vpop.f32.mrb[42].mxu0 }
 0x253   : > { %v4262_v12 = vpop.f32.mrb[43].mxu0 }
 0x254   : > { %v4263_v36 = vadd.f32 %v4262_v12, %v4261_v49  ;;  %v4350_v4 = vpop.f32.mrb[0].mxu1  ;;  %v4380_v22 = vadd.f32 %v6457_v28, %v4260_v34 }
 0x255   : > { %v4366_v53 = vadd.f32 %v4365_v37, %v4350_v4  ;;  %v3430_v19 = vpop.f32.mrb[1].mxu1 }
 0x256   : > { %v4369_v9 = vadd.f32 %v4368_v29, %v3430_v19  ;;  %v4351_v61 = vpop.f32.mrb[2].mxu1  ;;  %v4386_v55 = vadd.f32 %v6460_v39, %v4263_v36 }
 0x257   : > { %v3518_v41 = vadd.f32 %v4366_v53, %v6492_v45  ;;  %v4372_v63 = vadd.f32 %v4371_v62, %v4351_v61  ;;  %v3433_v47 = vpop.f32.mrb[3].mxu1 }
 0x258   : > { %v3516_v13 = vadd.f32 %v4369_v9, %v6492_v45  ;;  %v4375_v56 = vadd.f32 %v4374_v32, %v3433_v47 }
 0x259   : > { %v3534_v48 = vmax.f32 %v3518_v41, 0.0  ;;  %v3519_v54 = vadd.f32 %v4372_v63, %v6492_v45 }
 0x25a   : > { %v3532_v28 = vmax.f32 %v3516_v13, 0.0  ;;  %v3517_v39 = vadd.f32 %v4375_v56, %v6492_v45 }
 0x25b   : > { %v4068_v33 = vpack.c.bf16 %v3534_v48, %v3534_v48  ;;  %v3535_v46 = vmax.f32 %v3519_v54, 0.0 }
 0x25c   : > { %v4066_v18 = vpack.c.bf16 %v3532_v28, %v3532_v28  ;;  %v3533_v35 = vmax.f32 %v3517_v39, 0.0  ;;  %v4354_v57 = vpop.f32.mrb[4].mxu1 }
 0x25d   : > { %3615 = vst.msk [vmem:[%s6502_s26 + $0x8] sm:$0xf] %vm3612_vm9, %v4068_v33  ;;  %v4069_v1 = vpack.c.bf16 %v3535_v46, %v3535_v46  ;;  %v4264_v3 = vpop.f32.mrb[44].mxu0  ;;  %v3446_v25 = vpop.f32.mrb[5].mxu1 }
 0x25e   : > { %3613 = vst.msk [vmem:[%s6502_s26] sm:$0xf] %vm3612_vm9, %v4066_v18  ;;  %v4067_v15 = vpack.c.bf16 %v3533_v35, %v3533_v35  ;;  %v4265_v44 = vpop.f32.mrb[45].mxu0  ;;  %v4381_v8 = vadd.f32 %v4380_v22, %v3446_v25  ;;  %v4355_v42 = vpop.f32.mrb[6].mxu1 }
 0x25f   : > { %3616 = vst.msk [vmem:[%s6502_s26 + $0xc] sm:$0xf] %vm3612_vm9, %v4069_v1  ;;  %v4266_v21 = vadd.f32 %v4265_v44, %v4264_v3  ;;  %v4267_v40 = vpop.f32.mrb[46].mxu0  ;;  %v3449_v38 = vpop.f32.mrb[7].mxu1 }
 0x260   : > { %3614 = vst.msk [vmem:[%s6502_s26 + $0x4] sm:$0xf] %vm3612_vm9, %v4067_v15  ;;  %v3520_v17 = vadd.f32 %v4381_v8, %v6492_v45  ;;  %v4268_v14 = vpop.f32.mrb[47].mxu0  ;;  %v4387_v10 = vadd.f32 %v4386_v55, %v3449_v38 }
 0x261   : > { %v4377_v60 = vadd.f32 %v6462_v5, %v4266_v21  ;;  %v4269_v6 = vadd.f32 %v4268_v14, %v4267_v40 }
 0x262   : > { %v3536_v24 = vmax.f32 %v3520_v17, 0.0  ;;  %v3521_v29 = vadd.f32 %v4387_v10, %v6492_v45 }
 0x263   : > { %v4378_v32 = vadd.f32 %v4377_v60, %v4354_v57  ;;  %v4383_v58 = vadd.f32 %v6464_v27, %v4269_v6 }
 0x264   : > { %v4070_v51 = vpack.c.bf16 %v3536_v24, %v3536_v24  ;;  %v3537_v52 = vmax.f32 %v3521_v29, 0.0  ;;  %v4358_v59 = vpop.f32.mrb[8].mxu1 }
 0x265   : > { %v3522_v23 = vadd.f32 %v4378_v32, %v6492_v45  ;;  %v4384_v2 = vadd.f32 %v4383_v58, %v4355_v42  ;;  %v3462_v37 = vpop.f32.mrb[9].mxu1 }
 0x266   : > { %3617 = vst.msk [vmem:[%s6502_s26 + $0x10] sm:$0xf] %vm3612_vm9, %v4070_v51  ;;  %v4071_v62 = vpack.c.bf16 %v3537_v52, %v3537_v52  ;;  %v4359_v5 = vpop.f32.mrb[10].mxu1 }
 0x267   : > { %v3538_v26 = vmax.f32 %v3522_v23, 0.0  ;;  %v3523_v0 = vadd.f32 %v4384_v2, %v6492_v45  ;;  %v3465_v34 = vpop.f32.mrb[11].mxu1 }
 0x268   : > { %3618 = vst.msk [vmem:[%s6502_s26 + $0x14] sm:$0xf] %vm3612_vm9, %v4071_v62 }
 0x269   : > { %v4072_v27 = vpack.c.bf16 %v3538_v26, %v3538_v26  ;;  %v3539_v49 = vmax.f32 %v3523_v0, 0.0  ;;  %v4270_v12 = vpop.f32.mrb[48].mxu0 }
 0x26a   : > { %v4271_v36 = vpop.f32.mrb[49].mxu0 }
 0x26b   : > { %3619 = vst.msk [vmem:[%s6502_s26 + $0x18] sm:$0xf] %vm3612_vm9, %v4072_v27  ;;  %v4073_v4 = vpack.c.bf16 %v3539_v49, %v3539_v49  ;;  %v4272_v22 = vadd.f32 %v4271_v36, %v4270_v12  ;;  %v4273_v53 = vpop.f32.mrb[50].mxu0 }
 0x26c   : > { %v4274_v19 = vpop.f32.mrb[51].mxu0  ;;  %v4362_v9 = vpop.f32.mrb[12].mxu1 }
 0x26d   : > { %3620 = vst.msk [vmem:[%s6502_s26 + $0x1c] sm:$0xf] %vm3612_vm9, %v4073_v4  ;;  %v4392_v61 = vadd.f32 %v6466_v50, %v4272_v22  ;;  %v4275_v55 = vadd.f32 %v4274_v19, %v4273_v53  ;;  %v3478_v41 = vpop.f32.mrb[13].mxu1 }
 0x26e   : > { %v4363_v63 = vpop.f32.mrb[14].mxu1 }
 0x26f   : > { %v4393_v47 = vadd.f32 %v4392_v61, %v3462_v37  ;;  %v4398_v13 = vadd.f32 %v6468_v16, %v4275_v55  ;;  %v3481_v56 = vpop.f32.mrb[15].mxu1 }
 0x271   : > { %v3524_v48 = vadd.f32 %v4393_v47, %v6492_v45  ;;  %v4399_v54 = vadd.f32 %v4398_v13, %v3465_v34 }
 0x273   : > { %v3540_v28 = vmax.f32 %v3524_v48, 0.0  ;;  %v3525_v39 = vadd.f32 %v4399_v54, %v6492_v45 }
 0x275   : > { %v4074_v33 = vpack.c.bf16 %v3540_v28, %v3540_v28  ;;  %v3541_v46 = vmax.f32 %v3525_v39, 0.0  ;;  %v4276_v18 = vpop.f32.mrb[52].mxu0 }
 0x276   : > { %v4277_v35 = vpop.f32.mrb[53].mxu0 }
 0x277   : > { %3621 = vst.msk [vmem:[%s6502_s26 + $0x20] sm:$0xf] %vm3612_vm9, %v4074_v33  ;;  %v4075_v50 = vpack.c.bf16 %v3541_v46, %v3541_v46  ;;  %v4278_v57 = vadd.f32 %v4277_v35, %v4276_v18  ;;  %v4279_v1 = vpop.f32.mrb[54].mxu0 }
 0x278   : > { %v4280_v3 = vpop.f32.mrb[55].mxu0 }
 0x279   : > { %3622 = vst.msk [vmem:[%s6502_s26 + $0x24] sm:$0xf] %vm3612_vm9, %v4075_v50  ;;  %v4389_v16 = vadd.f32 %v6470_v43, %v4278_v57  ;;  %v4281_v25 = vadd.f32 %v4280_v3, %v4279_v1 }
 0x27b   : > { %v4390_v15 = vadd.f32 %v4389_v16, %v4358_v59  ;;  %v4395_v44 = vadd.f32 %v6472_v31, %v4281_v25 }
 0x27d   : > { %v3526_v8 = vadd.f32 %v4390_v15, %v6492_v45  ;;  %v4396_v42 = vadd.f32 %v4395_v44, %v4359_v5 }
 0x27f   : > { %v3542_v21 = vmax.f32 %v3526_v8, 0.0  ;;  %v3527_v40 = vadd.f32 %v4396_v42, %v6492_v45 }
 0x281   : > { %v4076_v38 = vpack.c.bf16 %v3542_v21, %v3542_v21  ;;  %v3543_v17 = vmax.f32 %v3527_v40, 0.0  ;;  %v4282_v14 = vpop.f32.mrb[56].mxu0 }
 0x282   : > { %v4283_v10 = vpop.f32.mrb[57].mxu0 }
 0x283   : > { %3623 = vst.msk [vmem:[%s6502_s26 + $0x28] sm:$0xf] %vm3612_vm9, %v4076_v38  ;;  %v4077_v60 = vpack.c.bf16 %v3543_v17, %v3543_v17  ;;  %v4284_v6 = vadd.f32 %v4283_v10, %v4282_v14  ;;  %v4285_v43 = vpop.f32.mrb[58].mxu0 }
 0x284   : > { %v4286_v24 = vpop.f32.mrb[59].mxu0 }
 0x285   : > { %3624 = vst.msk [vmem:[%s6502_s26 + $0x2c] sm:$0xf] %vm3612_vm9, %v4077_v60  ;;  %v4404_v31 = vadd.f32 %v6474_v30, %v4284_v6  ;;  %v4287_v29 = vadd.f32 %v4286_v24, %v4285_v43 }
 0x287   : > { %v4405_v32 = vadd.f32 %v4404_v31, %v3478_v41  ;;  %v4410_v58 = vadd.f32 %v6476_v11, %v4287_v29 }
 0x289   : > { %v3528_v51 = vadd.f32 %v4405_v32, %v6492_v45  ;;  %v4411_v52 = vadd.f32 %v4410_v58, %v3481_v56 }
 0x28b   : > { %v3544_v59 = vmax.f32 %v3528_v51, 0.0  ;;  %v3529_v23 = vadd.f32 %v4411_v52, %v6492_v45 }
 0x28d   : > { %v4078_v2 = vpack.c.bf16 %v3544_v59, %v3544_v59  ;;  %v3545_v37 = vmax.f32 %v3529_v23, 0.0  ;;  %v4288_v62 = vpop.f32.mrb[60].mxu0 }
 0x28e   : > { %v4289_v5 = vpop.f32.mrb[61].mxu0 }
 0x28f   : > { %3625 = vst.msk [vmem:[%s6502_s26 + $0x30] sm:$0xf] %vm3612_vm9, %v4078_v2  ;;  %v4079_v26 = vpack.c.bf16 %v3545_v37, %v3545_v37  ;;  %v4290_v30 = vadd.f32 %v4289_v5, %v4288_v62  ;;  %v4291_v0 = vpop.f32.mrb[62].mxu0 }
 0x290   : > { %v4292_v34 = vpop.f32.mrb[63].mxu0 }
 0x291   : > { %3626 = vst.msk [vmem:[%s6502_s26 + $0x34] sm:$0xf] %vm3612_vm9, %v4079_v26  ;;  %v4401_v11 = vadd.f32 %v6478_v7, %v4290_v30  ;;  %v4293_v27 = vadd.f32 %v4292_v34, %v4291_v0 }
 0x293   : > { %v4402_v49 = vadd.f32 %v4401_v11, %v4362_v9  ;;  %v4407_v12 = vadd.f32 %v6480_v20, %v4293_v27 }
 0x295   : > { %v3530_v36 = vadd.f32 %v4402_v49, %v6492_v45  ;;  %v4408_v4 = vadd.f32 %v4407_v12, %v4363_v63 }
 0x297   : > { %v3546_v22 = vmax.f32 %v3530_v36, 0.0  ;;  %v3531_v53 = vadd.f32 %v4408_v4, %v6492_v45 }
 0x299   : > { %v4080_v19 = vpack.c.bf16 %v3546_v22, %v3546_v22  ;;  %v3547_v61 = vmax.f32 %v3531_v53, 0.0 }
 0x29b   : > { %3627 = vst.msk [vmem:[%s6502_s26 + $0x38] sm:$0xf] %vm3612_vm9, %v4080_v19  ;;  %v4081_v55 = vpack.c.bf16 %v3547_v61, %v3547_v61 }
 0x29d   : > { %3628 = vst.msk [vmem:[%s6502_s26 + $0x3c] sm:$0xf] %vm3612_vm9, %v4081_v55 }
 0x29e PF: > { %s15_s22 = sadd.s32 1, %s4619_s22   ;;  %s6633_s18 = smov %s4611_s20 }
 0x29f   : > { %p12_p10 = scmp.ge.s32.totalorder %s15_s22, 10   ;;  %s6634_s19 = smov %s4615_s21 }
 0x2a0   : > { %s6635_s20 = smov %s6638_s23  ;;  %s6636_s21 = smov %s6642_s24 }
 0x2a1   :  { %14 = sbr.rel (!%p12_p10) target bundleno = 3 (0x3), region = 78 }

</bundles_post_ra>
